<compile_context>
chip_gen: v7x
topology: tpu7x:2x2x1
jax: 0.10.0
libtpu: 0.0.40
codegen_flags: <defaults>
</compile_context>

<pallas_src>
import functools

import jax
import jax.numpy as jnp
from jax.experimental import pallas as pl
from jax.experimental.pallas import tpu as pltpu

# ----------------------------- model config ------------------------------
VOCAB = 64          # args.vocab_size
D = 32              # args.encoder_embed_dim
HEADS = 4
DH = D // HEADS
FFN = 64            # args.encoder_ffn_embed_dim
LAYERS = 2          # args.encoder_layers
IMG = 16            # args.img_size
PATCH = 8           # args.patch_size
CHANS = 3           # args.in_chans
NPATCH = (IMG // PATCH) ** 2
TV = NPATCH + 1     # vision tokens incl. prepended cls token
MAX_SRC_POS = 64    # args.max_source_positions
LN_EPS = 1e-5
NEG_INF = -1e30     # key-padding fill, kept in f32 (would overflow bf16)
SUBLANE = 8


def _round_up(x, m):
    return (x + m - 1) // m * m


def _gelu_exact(x):
    # Exact (erf) GELU like F.gelu; erf via Abramowitz & Stegun 7.1.26
    # (|abs err| < 1.5e-7) so only exp is needed inside the kernel.
    # TODO(synk): replace with lax.erf once its Mosaic lowering is guaranteed.
    z = x * 0.7071067811865476
    az = jnp.abs(z)
    t = 1.0 / (1.0 + 0.3275911 * az)
    poly = ((((1.061405429 * t - 1.453152027) * t + 1.421413741) * t
             - 0.284496736) * t + 0.254829592) * t
    erf_abs = 1.0 - poly * jnp.exp(-az * az)
    erf = jnp.where(z >= 0, erf_abs, -erf_abs)
    return 0.5 * x * (1.0 + erf)


def _layernorm(x, g, b):
    mu = jnp.mean(x, axis=-1, keepdims=True)
    xc = x - mu
    var = jnp.mean(xc * xc, axis=-1, keepdims=True)
    return xc * jax.lax.rsqrt(var + LN_EPS) * g + b


# ----------------------- single fused Pallas kernel -----------------------
def _beit3_kernel(
        # embeddings (precombined in the wrapper)
        patches_ref, visw_ref, keep_ref, add_ref, xt0_ref, keyb_ref,
        # stacked (layer*2 + way) encoder weights (matmul weights are bf16)
        qw_ref, qb_ref, kw_ref, kb_ref, vw_ref, vb_ref, ow_ref, ob_ref,
        ln1g_ref, ln1b_ref, ln2g_ref, ln2b_ref,
        f1w_ref, f1b_ref, f2w_ref, f2b_ref,
        fing_ref, finb_ref,
        # outputs (vision rows / text rows, way-major)
        ov_ref, ot_ref,
        *, b_blk, splitp, n_textp, n_heads):
    f32 = jnp.float32
    bf16 = jnp.bfloat16
    d = ov_ref.shape[-1]
    dh = d // n_heads
    scale = dh ** -0.5
    n_layers = qw_ref.shape[0] // 2

    def mm(x, w):                 # bf16 operands, f32 accumulation on the MXU
        return jnp.dot(x.astype(bf16), w, preferred_element_type=f32)

    # --------------------------- embeddings -------------------------------
    # vision: Conv2d(kernel=stride=patch) == one folded patch matmul; cls /
    # mask-token / conv-bias / positions arrive as a precombined additive base.
    xV = mm(patches_ref[...], visw_ref[...]) * keep_ref[...] + add_ref[...]
    # text: fully embedded in the wrapper (gather + pos + pad zeroing)
    xT = xt0_ref[...]
    keyb = keyb_ref[...]          # (b_blk, 1, Tp) f32, NEG_INF on masked keys

    # ------------------------------ encoder --------------------------------
    # TODO(synk): at production depth/dims switch this unrolled loop to a
    # layer-streamed plan (second 'arbitrary' grid axis + lax.fori_loop,
    # bf16 weights, Buffered(2)) and re-budget against v7x's 64 MiB VMEM.
    for l in range(n_layers):
        a, b = 2 * l, 2 * l + 1   # way-A (vision rows) / way-B (text rows)

        # ----------- self-attention block (pre-LN, multiway, alpha=1) -------
        resV, resT = xV, xT
        hV = _layernorm(xV, ln1g_ref[a], ln1b_ref[a])
        hT = _layernorm(xT, ln1g_ref[b], ln1b_ref[b])
        qV = (mm(hV, qw_ref[a]) + qb_ref[a]) * scale
        qT = (mm(hT, qw_ref[b]) + qb_ref[b]) * scale
        kV = mm(hV, kw_ref[a]) + kb_ref[a]
        kT = mm(hT, kw_ref[b]) + kb_ref[b]
        vV = mm(hV, vw_ref[a]) + vb_ref[a]
        vT = mm(hT, vw_ref[b]) + vb_ref[b]

        attV, attT = [], []
        for bi in range(b_blk):   # per-batch attention (Tp x Tp each)
            sv = slice(bi * splitp, (bi + 1) * splitp)
            st = slice(bi * n_textp, (bi + 1) * n_textp)
            q_b = jnp.concatenate([qV[sv], qT[st]], axis=0).astype(bf16)
            k_b = jnp.concatenate([kV[sv], kT[st]], axis=0).astype(bf16)
            v_b = jnp.concatenate([vV[sv], vT[st]], axis=0).astype(bf16)
            bias = keyb[bi]                                   # (1, Tp) f32
            heads = []
            for h in range(n_heads):                          # dh-lane slices
                lo = h * dh
                s = jax.lax.dot_general(
                    q_b[:, lo:lo + dh], k_b[:, lo:lo + dh],
                    (((1,), (1,)), ((), ())),
                    preferred_element_type=f32) + bias
                m = jnp.max(s, axis=-1, keepdims=True)
                e = jnp.exp(s - m)
                # NOTE: approx reciprocal (EUP) deviates slightly from exact
                # softmax; acceptable for inference.
                p = e * pl.reciprocal(jnp.sum(e, axis=-1, keepdims=True),
                                      approx=True)
                heads.append(jnp.dot(p.astype(bf16), v_b[:, lo:lo + dh],
                                     preferred_element_type=f32))
            o_b = jnp.concatenate(heads, axis=-1)             # (Tp, d)
            attV.append(o_b[:splitp])
            attT.append(o_b[splitp:])
        attV = jnp.concatenate(attV, axis=0) if b_blk > 1 else attV[0]
        attT = jnp.concatenate(attT, axis=0) if b_blk > 1 else attT[0]

        xV = resV + mm(attV, ow_ref[a]) + ob_ref[a]
        xT = resT + mm(attT, ow_ref[b]) + ob_ref[b]

        # ---------------- FFN block (pre-LN, multiway, exact GELU) ----------
        resV, resT = xV, xT
        hV = _layernorm(xV, ln2g_ref[a], ln2b_ref[a])
        hT = _layernorm(xT, ln2g_ref[b], ln2b_ref[b])
        gV = _gelu_exact(mm(hV, f1w_ref[a]) + f1b_ref[a])
        gT = _gelu_exact(mm(hT, f1w_ref[b]) + f1b_ref[b])
        xV = resV + mm(gV, f2w_ref[a]) + f2b_ref[a]
        xT = resT + mm(gT, f2w_ref[b]) + f2b_ref[b]

    # final multiway LayerNorm (normalize_output=True)
    ov_ref[...] = _layernorm(xV, fing_ref[0], finb_ref[0])
    ot_ref[...] = _layernorm(xT, fing_ref[1], finb_ref[1])


# ------------------------------ full model -------------------------------
def beit3_forward(packed, textual_tokens, visual_tokens,
                  text_padding_position=None, vision_masked_position=None,
                  block_batch=8):
    f32 = jnp.float32
    B, C, H, W = visual_tokens.shape
    p = PATCH
    n_patch = (H // p) * (W // p)
    split = n_patch + 1                       # multiway_split_position
    splitp = _round_up(split, SUBLANE)        # 8-aligned vision segment
    n_text = textual_tokens.shape[1]
    n_textp = _round_up(n_text, SUBLANE)
    tp = splitp + n_textp
    pdim = C * p * p
    n_layers = packed['q_w'].shape[0] // 2
    d = packed['q_w'].shape[-1]
    ffn = packed['fc1_w'].shape[-1]
    L2 = 2 * n_layers

    # Fold several batch elements into the sublane dim per grid step (biggest
    # lever at these dims).  On v7x, pick block_batch <= B//2 if you want both
    # TensorCores busy (>=2 grid steps).
    b_blk = max(1, min(block_batch, B))
    nblk = -(-B // b_blk)
    Bp = nblk * b_blk

    def pad_batch(x):
        return jnp.pad(x, ((0, Bp - B),) + ((0, 0),) * (x.ndim - 1))

    # --- patchify (pure layout transpose, kept in XLA); pad so row 0 is the
    #     cls slot and dummy rows fill up to the 8-aligned split boundary.
    patches = visual_tokens.reshape(B, C, H // p, p, W // p, p)
    patches = patches.transpose(0, 2, 4, 1, 3, 5).reshape(B, n_patch, pdim)
    patches = jnp.pad(patches, ((0, 0), (1, splitp - split), (0, 0)))
    patches = pad_batch(patches).reshape(Bp * splitp, pdim).astype(jnp.bfloat16)

    if vision_masked_position is None:
        vmask = jnp.zeros((B, n_patch), f32)
    else:
        vmask = vision_masked_position.astype(f32).reshape(B, n_patch)

    # keep-gate for projected patches (0 on cls slot, masked patches, dummies)
    keep = jnp.pad(1.0 - vmask, ((0, 0), (1, splitp - split)))
    keep = pad_batch(keep).reshape(Bp * splitp, 1)

    # additive base precombined here: cls+pos on row0, (conv-bias | mask-token)
    # + pos on patch rows, zeros on dummy rows.
    posV = packed['pos_A'][2:2 + split]                 # fairseq: start at 2
    row0 = jnp.broadcast_to((packed['cls'] + posV[:1])[None], (B, 1, d))
    patch_add = jnp.where(vmask[..., None] > 0,
                          packed['mask_tok'], packed['vis_b']) + posV[None, 1:]
    dummy = jnp.zeros((B, splitp - split, d), f32)
    vis_add = jnp.concatenate([row0, patch_add, dummy], axis=1)
    vis_add = pad_batch(vis_add).reshape(Bp * splitp, d)

    # --- text embedding: gather stays in XLA (kernel never sees the vocab
    #     table); positions start at 2 (right-padding assumption, see notes).
    tok = textual_tokens.astype(jnp.int32)
    emb = jnp.take(packed['text_embed'], tok, axis=0)   # (B, n_text, d)
    posT = packed['pos_B'][2:2 + n_text]
    if text_padding_position is None:
        tpad = jnp.zeros((B, n_text), f32)
    else:
        tpad = text_padding_position.astype(f32)
    xt0 = (emb + posT[None]) * (1.0 - tpad[..., None])  # pad rows zeroed
    xt0 = jnp.pad(xt0, ((0, 0), (0, n_textp - n_text), (0, 0)))
    xt0 = pad_batch(xt0).reshape(Bp * n_textp, d)

    # --- key-padding bias over the padded per-batch ordering [vision | text]
    key_mask = jnp.concatenate(
        [jnp.zeros((B, split), f32), jnp.ones((B, splitp - split), f32),
         tpad, jnp.ones((B, n_textp - n_text), f32)], axis=1)   # 1 = masked
    key_bias = pad_batch(key_mask * NEG_INF).reshape(Bp, 1, tp)

    kern = functools.partial(_beit3_kernel, b_blk=b_blk, splitp=splitp,
                             n_textp=n_textp, n_heads=HEADS)

    rep2 = lambda i: (0, 0)
    rep3 = lambda i: (0, 0, 0)
    row2 = lambda i: (i, 0)

    in_specs = [
        pl.BlockSpec((b_blk * splitp, pdim), row2),          # patches (bf16)
        pl.BlockSpec((pdim, d), rep2),                       # vis proj w (bf16)
        pl.BlockSpec((b_blk * splitp, 1), row2),             # keep gate
        pl.BlockSpec((b_blk * splitp, d), row2),             # additive base
        pl.BlockSpec((b_blk * n_textp, d), row2),            # text embeddings
        pl.BlockSpec((b_blk, 1, tp), lambda i: (i, 0, 0)),   # key-padding bias
        pl.BlockSpec((L2, d, d), rep3),                      # q_w
        pl.BlockSpec((L2, 1, d), rep3),                      # q_b
        pl.BlockSpec((L2, d, d), rep3),                      # k_w
        pl.BlockSpec((L2, 1, d), rep3),                      # k_b
        pl.BlockSpec((L2, d, d), rep3),                      # v_w
        pl.BlockSpec((L2, 1, d), rep3),                      # v_b
        pl.BlockSpec((L2, d, d), rep3),                      # out_w
        pl.BlockSpec((L2, 1, d), rep3),                      # out_b
        pl.BlockSpec((L2, 1, d), rep3),                      # ln_attn gamma
        pl.BlockSpec((L2, 1, d), rep3),                      # ln_attn beta
        pl.BlockSpec((L2, 1, d), rep3),                      # ln_ffn gamma
        pl.BlockSpec((L2, 1, d), rep3),                      # ln_ffn beta
        pl.BlockSpec((L2, d, ffn), rep3),                    # fc1_w
        pl.BlockSpec((L2, 1, ffn), rep3),                    # fc1_b
        pl.BlockSpec((L2, ffn, d), rep3),                    # fc2_w
        pl.BlockSpec((L2, 1, d), rep3),                      # fc2_b
        pl.BlockSpec((2, 1, d), rep3),                       # final LN gamma
        pl.BlockSpec((2, 1, d), rep3),                       # final LN beta
    ]
    out_specs = [
        pl.BlockSpec((b_blk * splitp, d), row2),             # vision rows
        pl.BlockSpec((b_blk * n_textp, d), row2),            # text rows
    ]
    out_shape = [
        jax.ShapeDtypeStruct((Bp * splitp, d), f32),
        jax.ShapeDtypeStruct((Bp * n_textp, d), f32),
    ]

    outV, outT = pl.pallas_call(
        kern,
        grid=(nblk,),
        in_specs=in_specs,
        out_specs=out_specs,
        out_shape=out_shape,
        compiler_params=pltpu.CompilerParams(
            dimension_semantics=("parallel",),
            vmem_limit_bytes=32 * 1024 * 1024),
    )(patches, packed['vis_w'], keep, vis_add, xt0, key_bias,
      packed['q_w'], packed['q_b'], packed['k_w'], packed['k_b'],
      packed['v_w'], packed['v_b'], packed['out_w'], packed['out_b'],
      packed['ln1_g'], packed['ln1_b'], packed['ln2_g'], packed['ln2_b'],
      packed['fc1_w'], packed['fc1_b'], packed['fc2_w'], packed['fc2_b'],
      packed['fin_g'], packed['fin_b'])

    # drop dummy rows / dummy batches, restore [cls | vis | txt] ordering
    outV = outV.reshape(Bp, splitp, d)[:B, :split]
    outT = outT.reshape(Bp, n_textp, d)[:B, :n_text]
    x = jnp.concatenate([outV, outT], axis=1)

    pad_full = jnp.concatenate([jnp.zeros((B, split), f32), tpad], axis=1)
    return {"encoder_out": x,
            "encoder_padding_mask": pad_full.astype(bool),
            "multiway_split_position": split}


# ------------------------------ parameters -------------------------------
def init_params(key):
    keys = iter(jax.random.split(key, 256))

    def nrm(shape, std=0.02):
        return std * jax.random.normal(next(keys), shape, dtype=jnp.float32)

    params = {
        'text_embed': nrm((VOCAB, D), std=D ** -0.5),
        'vis_proj_w': nrm((D, CHANS, PATCH, PATCH)),   # Conv2d weight layout
        'vis_proj_b': jnp.zeros((D,), jnp.float32),
        'cls_token': nrm((1, 1, D)),
        'mask_token': nrm((1, 1, D)),
        'pos_A': nrm((NPATCH + 1 + 2, D), std=D ** -0.5),  # vision positions
        'pos_B': nrm((MAX_SRC_POS, D), std=D ** -0.5),     # text positions
    }
    layers = []
    for _ in range(LAYERS):
        lp = {}
        for way in ('A', 'B'):
            for nm in ('q', 'k', 'v', 'out'):
                lp[f'{nm}_w_{way}'] = nrm((D, D))
                lp[f'{nm}_b_{way}'] = jnp.zeros((D,), jnp.float32)
            lp[f'ln_attn_g_{way}'] = jnp.ones((D,), jnp.float32)
            lp[f'ln_attn_b_{way}'] = jnp.zeros((D,), jnp.float32)
            lp[f'ln_final_g_{way}'] = jnp.ones((D,), jnp.float32)
            lp[f'ln_final_b_{way}'] = jnp.zeros((D,), jnp.float32)
            lp[f'fc1_w_{way}'] = nrm((D, FFN))
            lp[f'fc1_b_{way}'] = jnp.zeros((FFN,), jnp.float32)
            lp[f'fc2_w_{way}'] = nrm((FFN, D))
            lp[f'fc2_b_{way}'] = jnp.zeros((D,), jnp.float32)
        layers.append(lp)
    params['layers'] = layers
    for way in ('A', 'B'):
        params[f'final_ln_g_{way}'] = jnp.ones((D,), jnp.float32)
        params[f'final_ln_b_{way}'] = jnp.zeros((D,), jnp.float32)
    return params


def pack_params(params):
    """Stack per-(layer, way) weights as [2*l + way]; matmul weights in bf16."""
    ways = ('A', 'B')
    L = len(params['layers'])
    bf16 = jnp.bfloat16

    def stack_lw(fn, dtype=jnp.float32):
        return jnp.stack([fn(params['layers'][l], w)
                          for l in range(L) for w in ways]).astype(dtype)

    packed = {
        'vis_w': params['vis_proj_w'].reshape(D, CHANS * PATCH * PATCH).T.astype(bf16),
        'vis_b': params['vis_proj_b'].reshape(1, D),
        'cls': params['cls_token'].reshape(1, D),
        'mask_tok': params['mask_token'].reshape(1, D),
        'text_embed': params['text_embed'],
        'pos_A': params['pos_A'],
        'pos_B': params['pos_B'],
        'fin_g': jnp.stack([params[f'final_ln_g_{w}'].reshape(1, D) for w in ways]),
        'fin_b': jnp.stack([params[f'final_ln_b_{w}'].reshape(1, D) for w in ways]),
    }
    for nm in ('q', 'k', 'v', 'out'):
        packed[f'{nm}_w'] = stack_lw(lambda lp, w, nm=nm: lp[f'{nm}_w_{w}'], bf16)
        packed[f'{nm}_b'] = stack_lw(lambda lp, w, nm=nm: lp[f'{nm}_b_{w}'].reshape(1, D))
    packed['ln1_g'] = stack_lw(lambda lp, w: lp[f'ln_attn_g_{w}'].reshape(1, D))
    packed['ln1_b'] = stack_lw(lambda lp, w: lp[f'ln_attn_b_{w}'].reshape(1, D))
    packed['ln2_g'] = stack_lw(lambda lp, w: lp[f'ln_final_g_{w}'].reshape(1, D))
    packed['ln2_b'] = stack_lw(lambda lp, w: lp[f'ln_final_b_{w}'].reshape(1, D))
    packed['fc1_w'] = stack_lw(lambda lp, w: lp[f'fc1_w_{w}'], bf16)
    packed['fc1_b'] = stack_lw(lambda lp, w: lp[f'fc1_b_{w}'].reshape(1, FFN))
    packed['fc2_w'] = stack_lw(lambda lp, w: lp[f'fc2_w_{w}'], bf16)
    packed['fc2_b'] = stack_lw(lambda lp, w: lp[f'fc2_b_{w}'].reshape(1, D))
    return packed


# --------------------------------- main ----------------------------------
if __name__ == "__main__":
    key = jax.random.PRNGKey(0)
    kp, kt, kv, km = jax.random.split(key, 4)
    params = init_params(kp)
    packed = pack_params(params)

    B, TT = 2, 8
    textual_tokens = jax.random.randint(kt, (B, TT), 1, VOCAB)
    visual_tokens = jax.random.normal(kv, (B, CHANS, IMG, IMG), dtype=jnp.float32)
    text_padding_position = jnp.zeros((B, TT), jnp.int32).at[1, -2:].set(1)
    vision_masked_position = (jax.random.uniform(km, (B, NPATCH)) < 0.3).astype(jnp.int32)

    fwd = jax.jit(beit3_forward)
    out = fwd(packed, textual_tokens, visual_tokens,
              text_padding_position, vision_masked_position)
    jax.block_until_ready(out["encoder_out"])

    assert out["encoder_out"].shape == (B, TV + TT, D)
    assert int(out["multiway_split_position"]) == TV
    assert bool(jnp.all(jnp.isfinite(out["encoder_out"])))
    print("KERNEL_OK")
</pallas_src>

<mosaic_0001>
module attributes {stable_mosaic.version = 11 : i64} {
  func.func @_beit3_kernel(%arg0: i32, %arg1: memref<16x192xbf16, #tpu.memory_space<vmem>>, %arg2: memref<192x32xbf16, #tpu.memory_space<vmem>>, %arg3: memref<16x1xf32, #tpu.memory_space<vmem>>, %arg4: memref<16x32xf32, #tpu.memory_space<vmem>>, %arg5: memref<16x32xf32, #tpu.memory_space<vmem>>, %arg6: memref<2x1x16xf32, #tpu.memory_space<vmem>>, %arg7: memref<4x32x32xbf16, #tpu.memory_space<vmem>>, %arg8: memref<4x1x32xf32, #tpu.memory_space<vmem>>, %arg9: memref<4x32x32xbf16, #tpu.memory_space<vmem>>, %arg10: memref<4x1x32xf32, #tpu.memory_space<vmem>>, %arg11: memref<4x32x32xbf16, #tpu.memory_space<vmem>>, %arg12: memref<4x1x32xf32, #tpu.memory_space<vmem>>, %arg13: memref<4x32x32xbf16, #tpu.memory_space<vmem>>, %arg14: memref<4x1x32xf32, #tpu.memory_space<vmem>>, %arg15: memref<4x1x32xf32, #tpu.memory_space<vmem>>, %arg16: memref<4x1x32xf32, #tpu.memory_space<vmem>>, %arg17: memref<4x1x32xf32, #tpu.memory_space<vmem>>, %arg18: memref<4x1x32xf32, #tpu.memory_space<vmem>>, %arg19: memref<4x32x64xbf16, #tpu.memory_space<vmem>>, %arg20: memref<4x1x64xf32, #tpu.memory_space<vmem>>, %arg21: memref<4x64x32xbf16, #tpu.memory_space<vmem>>, %arg22: memref<4x1x32xf32, #tpu.memory_space<vmem>>, %arg23: memref<2x1x32xf32, #tpu.memory_space<vmem>>, %arg24: memref<2x1x32xf32, #tpu.memory_space<vmem>>, %arg25: memref<16x32xf32, #tpu.memory_space<vmem>>, %arg26: memref<16x32xf32, #tpu.memory_space<vmem>>) attributes {dimension_semantics = [#tpu.dimension_semantics<parallel>], iteration_bounds = array<i64: 1>, scalar_prefetch = 0 : i64, scratch_operands = 0 : i64, tpu.core_type = #tpu.core_type<tc>, window_params = [{transform_indices = @transform_0, window_bounds = array<i64: 16, 192>}, {pipeline_mode = #tpu.pipeline_mode<synchronous>, transform_indices = @transform_1, window_bounds = array<i64: 192, 32>}, {transform_indices = @transform_2, window_bounds = array<i64: 16, 1>}, {transform_indices = @transform_3, window_bounds = array<i64: 16, 32>}, {transform_indices = @transform_4, window_bounds = array<i64: 16, 32>}, {transform_indices = @transform_5, window_bounds = array<i64: 2, 1, 16>}, {pipeline_mode = #tpu.pipeline_mode<synchronous>, transform_indices = @transform_6, window_bounds = array<i64: 4, 32, 32>}, {pipeline_mode = #tpu.pipeline_mode<synchronous>, transform_indices = @transform_7, window_bounds = array<i64: 4, 1, 32>}, {pipeline_mode = #tpu.pipeline_mode<synchronous>, transform_indices = @transform_8, window_bounds = array<i64: 4, 32, 32>}, {pipeline_mode = #tpu.pipeline_mode<synchronous>, transform_indices = @transform_9, window_bounds = array<i64: 4, 1, 32>}, {pipeline_mode = #tpu.pipeline_mode<synchronous>, transform_indices = @transform_10, window_bounds = array<i64: 4, 32, 32>}, {pipeline_mode = #tpu.pipeline_mode<synchronous>, transform_indices = @transform_11, window_bounds = array<i64: 4, 1, 32>}, {pipeline_mode = #tpu.pipeline_mode<synchronous>, transform_indices = @transform_12, window_bounds = array<i64: 4, 32, 32>}, {pipeline_mode = #tpu.pipeline_mode<synchronous>, transform_indices = @transform_13, window_bounds = array<i64: 4, 1, 32>}, {pipeline_mode = #tpu.pipeline_mode<synchronous>, transform_indices = @transform_14, window_bounds = array<i64: 4, 1, 32>}, {pipeline_mode = #tpu.pipeline_mode<synchronous>, transform_indices = @transform_15, window_bounds = array<i64: 4, 1, 32>}, {pipeline_mode = #tpu.pipeline_mode<synchronous>, transform_indices = @transform_16, window_bounds = array<i64: 4, 1, 32>}, {pipeline_mode = #tpu.pipeline_mode<synchronous>, transform_indices = @transform_17, window_bounds = array<i64: 4, 1, 32>}, {pipeline_mode = #tpu.pipeline_mode<synchronous>, transform_indices = @transform_18, window_bounds = array<i64: 4, 32, 64>}, {pipeline_mode = #tpu.pipeline_mode<synchronous>, transform_indices = @transform_19, window_bounds = array<i64: 4, 1, 64>}, {pipeline_mode = #tpu.pipeline_mode<synchronous>, transform_indices = @transform_20, window_bounds = array<i64: 4, 64, 32>}, {pipeline_mode = #tpu.pipeline_mode<synchronous>, transform_indices = @transform_21, window_bounds = array<i64: 4, 1, 32>}, {pipeline_mode = #tpu.pipeline_mode<synchronous>, transform_indices = @transform_22, window_bounds = array<i64: 2, 1, 32>}, {pipeline_mode = #tpu.pipeline_mode<synchronous>, transform_indices = @transform_23, window_bounds = array<i64: 2, 1, 32>}, {transform_indices = @transform_24, window_bounds = array<i64: 16, 32>}, {transform_indices = @transform_25, window_bounds = array<i64: 16, 32>}]} {
    %c0 = arith.constant 0 : index
    %c0_0 = arith.constant 0 : index
    %0 = vector.load %arg1[%c0, %c0_0] : memref<16x192xbf16, #tpu.memory_space<vmem>>, vector<16x192xbf16>
    %c0_1 = arith.constant 0 : index
    %c0_2 = arith.constant 0 : index
    %1 = vector.load %arg2[%c0_1, %c0_2] : memref<192x32xbf16, #tpu.memory_space<vmem>>, vector<192x32xbf16>
    %cst = arith.constant dense<0.000000e+00> : vector<16x32xf32>
    %2 = tpu.matmul %0, %1, %cst {dimension_numbers = #tpu.dot_dimension_numbers<[1], [0], [0], [1], [0, 0, 1, 1], [], []>} : vector<16x192xbf16>, vector<192x32xbf16>, vector<16x32xf32> -> vector<16x32xf32>
    %c0_3 = arith.constant 0 : index
    %c0_4 = arith.constant 0 : index
    %3 = vector.load %arg3[%c0_3, %c0_4] : memref<16x1xf32, #tpu.memory_space<vmem>>, vector<16x1xf32>
    %4 = vector.broadcast %3 : vector<16x1xf32> to vector<16x32xf32>
    %5 = arith.mulf %2, %4 : vector<16x32xf32>
    %c0_5 = arith.constant 0 : index
    %c0_6 = arith.constant 0 : index
    %6 = vector.load %arg4[%c0_5, %c0_6] : memref<16x32xf32, #tpu.memory_space<vmem>>, vector<16x32xf32>
    %7 = arith.addf %5, %6 : vector<16x32xf32>
    %c0_7 = arith.constant 0 : index
    %c0_8 = arith.constant 0 : index
    %8 = vector.load %arg5[%c0_7, %c0_8] : memref<16x32xf32, #tpu.memory_space<vmem>>, vector<16x32xf32>
    %c0_9 = arith.constant 0 : index
    %c0_10 = arith.constant 0 : index
    %c0_11 = arith.constant 0 : index
    %9 = vector.load %arg6[%c0_9, %c0_10, %c0_11] : memref<2x1x16xf32, #tpu.memory_space<vmem>>, vector<2x1x16xf32>
    %c0_12 = arith.constant 0 : index
    %c0_13 = arith.constant 0 : index
    %c0_14 = arith.constant 0 : index
    %10 = vector.load %arg15[%c0_12, %c0_13, %c0_14] : memref<4x1x32xf32, #tpu.memory_space<vmem>>, vector<1x1x32xf32>
    %11 = vector.shape_cast %10 : vector<1x1x32xf32> to vector<1x32xf32>
    %c0_15 = arith.constant 0 : index
    %c0_16 = arith.constant 0 : index
    %c0_17 = arith.constant 0 : index
    %12 = vector.load %arg16[%c0_15, %c0_16, %c0_17] : memref<4x1x32xf32, #tpu.memory_space<vmem>>, vector<1x1x32xf32>
    %13 = vector.shape_cast %12 : vector<1x1x32xf32> to vector<1x32xf32>
    %cst_18 = arith.constant dense<0.000000e+00> : vector<16xf32>
    %14 = vector.multi_reduction <add>, %7, %cst_18 [1] : vector<16x32xf32> to vector<16xf32>
    %15 = vector.shape_cast %14 : vector<16xf32> to vector<16x1xf32>
    %cst_19 = arith.constant 3.200000e+01 : f32
    %16 = vector.broadcast %cst_19 : f32 to vector<16x1xf32>
    %17 = arith.divf %15, %16 : vector<16x1xf32>
    %18 = vector.broadcast %17 : vector<16x1xf32> to vector<16x32xf32>
    %19 = arith.subf %7, %18 : vector<16x32xf32>
    %20 = arith.mulf %19, %19 : vector<16x32xf32>
    %cst_20 = arith.constant dense<0.000000e+00> : vector<16xf32>
    %21 = vector.multi_reduction <add>, %20, %cst_20 [1] : vector<16x32xf32> to vector<16xf32>
    %22 = vector.shape_cast %21 : vector<16xf32> to vector<16x1xf32>
    %cst_21 = arith.constant 3.200000e+01 : f32
    %23 = vector.broadcast %cst_21 : f32 to vector<16x1xf32>
    %24 = arith.divf %22, %23 : vector<16x1xf32>
    %cst_22 = arith.constant 9.99999974E-6 : f32
    %25 = vector.broadcast %cst_22 : f32 to vector<16x1xf32>
    %26 = arith.addf %24, %25 : vector<16x1xf32>
    %27 = math.rsqrt %26 : vector<16x1xf32>
    %28 = vector.broadcast %27 : vector<16x1xf32> to vector<16x32xf32>
    %29 = arith.mulf %19, %28 : vector<16x32xf32>
    %30 = vector.broadcast %11 : vector<1x32xf32> to vector<16x32xf32>
    %31 = arith.mulf %29, %30 : vector<16x32xf32>
    %32 = vector.broadcast %13 : vector<1x32xf32> to vector<16x32xf32>
    %33 = arith.addf %31, %32 : vector<16x32xf32>
    %c1 = arith.constant 1 : index
    %c0_23 = arith.constant 0 : index
    %c0_24 = arith.constant 0 : index
    %34 = vector.load %arg15[%c1, %c0_23, %c0_24] : memref<4x1x32xf32, #tpu.memory_space<vmem>>, vector<1x1x32xf32>
    %35 = vector.shape_cast %34 : vector<1x1x32xf32> to vector<1x32xf32>
    %c1_25 = arith.constant 1 : index
    %c0_26 = arith.constant 0 : index
    %c0_27 = arith.constant 0 : index
    %36 = vector.load %arg16[%c1_25, %c0_26, %c0_27] : memref<4x1x32xf32, #tpu.memory_space<vmem>>, vector<1x1x32xf32>
    %37 = vector.shape_cast %36 : vector<1x1x32xf32> to vector<1x32xf32>
    %cst_28 = arith.constant dense<0.000000e+00> : vector<16xf32>
    %38 = vector.multi_reduction <add>, %8, %cst_28 [1] : vector<16x32xf32> to vector<16xf32>
    %39 = vector.shape_cast %38 : vector<16xf32> to vector<16x1xf32>
    %cst_29 = arith.constant 3.200000e+01 : f32
    %40 = vector.broadcast %cst_29 : f32 to vector<16x1xf32>
    %41 = arith.divf %39, %40 : vector<16x1xf32>
    %42 = vector.broadcast %41 : vector<16x1xf32> to vector<16x32xf32>
    %43 = arith.subf %8, %42 : vector<16x32xf32>
    %44 = arith.mulf %43, %43 : vector<16x32xf32>
    %cst_30 = arith.constant dense<0.000000e+00> : vector<16xf32>
    %45 = vector.multi_reduction <add>, %44, %cst_30 [1] : vector<16x32xf32> to vector<16xf32>
    %46 = vector.shape_cast %45 : vector<16xf32> to vector<16x1xf32>
    %cst_31 = arith.constant 3.200000e+01 : f32
    %47 = vector.broadcast %cst_31 : f32 to vector<16x1xf32>
    %48 = arith.divf %46, %47 : vector<16x1xf32>
    %cst_32 = arith.constant 9.99999974E-6 : f32
    %49 = vector.broadcast %cst_32 : f32 to vector<16x1xf32>
    %50 = arith.addf %48, %49 : vector<16x1xf32>
    %51 = math.rsqrt %50 : vector<16x1xf32>
    %52 = vector.broadcast %51 : vector<16x1xf32> to vector<16x32xf32>
    %53 = arith.mulf %43, %52 : vector<16x32xf32>
    %54 = vector.broadcast %35 : vector<1x32xf32> to vector<16x32xf32>
    %55 = arith.mulf %53, %54 : vector<16x32xf32>
    %56 = vector.broadcast %37 : vector<1x32xf32> to vector<16x32xf32>
    %57 = arith.addf %55, %56 : vector<16x32xf32>
    %c0_33 = arith.constant 0 : index
    %c0_34 = arith.constant 0 : index
    %c0_35 = arith.constant 0 : index
    %58 = vector.load %arg7[%c0_33, %c0_34, %c0_35] : memref<4x32x32xbf16, #tpu.memory_space<vmem>>, vector<1x32x32xbf16>
    %59 = vector.shape_cast %58 : vector<1x32x32xbf16> to vector<32x32xbf16>
    %60 = arith.truncf %33 : vector<16x32xf32> to vector<16x32xbf16>
    %cst_36 = arith.constant dense<0.000000e+00> : vector<16x32xf32>
    %61 = tpu.matmul %60, %59, %cst_36 {dimension_numbers = #tpu.dot_dimension_numbers<[1], [0], [0], [1], [0, 0, 1, 1], [], []>} : vector<16x32xbf16>, vector<32x32xbf16>, vector<16x32xf32> -> vector<16x32xf32>
    %c0_37 = arith.constant 0 : index
    %c0_38 = arith.constant 0 : index
    %c0_39 = arith.constant 0 : index
    %62 = vector.load %arg8[%c0_37, %c0_38, %c0_39] : memref<4x1x32xf32, #tpu.memory_space<vmem>>, vector<1x1x32xf32>
    %63 = vector.shape_cast %62 : vector<1x1x32xf32> to vector<1x32xf32>
    %64 = vector.broadcast %63 : vector<1x32xf32> to vector<16x32xf32>
    %65 = arith.addf %61, %64 : vector<16x32xf32>
    %cst_40 = arith.constant 0.353553385 : f32
    %66 = vector.broadcast %cst_40 : f32 to vector<16x32xf32>
    %67 = arith.mulf %65, %66 : vector<16x32xf32>
    %c1_41 = arith.constant 1 : index
    %c0_42 = arith.constant 0 : index
    %c0_43 = arith.constant 0 : index
    %68 = vector.load %arg7[%c1_41, %c0_42, %c0_43] : memref<4x32x32xbf16, #tpu.memory_space<vmem>>, vector<1x32x32xbf16>
    %69 = vector.shape_cast %68 : vector<1x32x32xbf16> to vector<32x32xbf16>
    %70 = arith.truncf %57 : vector<16x32xf32> to vector<16x32xbf16>
    %cst_44 = arith.constant dense<0.000000e+00> : vector<16x32xf32>
    %71 = tpu.matmul %70, %69, %cst_44 {dimension_numbers = #tpu.dot_dimension_numbers<[1], [0], [0], [1], [0, 0, 1, 1], [], []>} : vector<16x32xbf16>, vector<32x32xbf16>, vector<16x32xf32> -> vector<16x32xf32>
    %c1_45 = arith.constant 1 : index
    %c0_46 = arith.constant 0 : index
    %c0_47 = arith.constant 0 : index
    %72 = vector.load %arg8[%c1_45, %c0_46, %c0_47] : memref<4x1x32xf32, #tpu.memory_space<vmem>>, vector<1x1x32xf32>
    %73 = vector.shape_cast %72 : vector<1x1x32xf32> to vector<1x32xf32>
    %74 = vector.broadcast %73 : vector<1x32xf32> to vector<16x32xf32>
    %75 = arith.addf %71, %74 : vector<16x32xf32>
    %cst_48 = arith.constant 0.353553385 : f32
    %76 = vector.broadcast %cst_48 : f32 to vector<16x32xf32>
    %77 = arith.mulf %75, %76 : vector<16x32xf32>
    %c0_49 = arith.constant 0 : index
    %c0_50 = arith.constant 0 : index
    %c0_51 = arith.constant 0 : index
    %78 = vector.load %arg9[%c0_49, %c0_50, %c0_51] : memref<4x32x32xbf16, #tpu.memory_space<vmem>>, vector<1x32x32xbf16>
    %79 = vector.shape_cast %78 : vector<1x32x32xbf16> to vector<32x32xbf16>
    %80 = arith.truncf %33 : vector<16x32xf32> to vector<16x32xbf16>
    %cst_52 = arith.constant dense<0.000000e+00> : vector<16x32xf32>
    %81 = tpu.matmul %80, %79, %cst_52 {dimension_numbers = #tpu.dot_dimension_numbers<[1], [0], [0], [1], [0, 0, 1, 1], [], []>} : vector<16x32xbf16>, vector<32x32xbf16>, vector<16x32xf32> -> vector<16x32xf32>
    %c0_53 = arith.constant 0 : index
    %c0_54 = arith.constant 0 : index
    %c0_55 = arith.constant 0 : index
    %82 = vector.load %arg10[%c0_53, %c0_54, %c0_55] : memref<4x1x32xf32, #tpu.memory_space<vmem>>, vector<1x1x32xf32>
    %83 = vector.shape_cast %82 : vector<1x1x32xf32> to vector<1x32xf32>
    %84 = vector.broadcast %83 : vector<1x32xf32> to vector<16x32xf32>
    %85 = arith.addf %81, %84 : vector<16x32xf32>
    %c1_56 = arith.constant 1 : index
    %c0_57 = arith.constant 0 : index
    %c0_58 = arith.constant 0 : index
    %86 = vector.load %arg9[%c1_56, %c0_57, %c0_58] : memref<4x32x32xbf16, #tpu.memory_space<vmem>>, vector<1x32x32xbf16>
    %87 = vector.shape_cast %86 : vector<1x32x32xbf16> to vector<32x32xbf16>
    %88 = arith.truncf %57 : vector<16x32xf32> to vector<16x32xbf16>
    %cst_59 = arith.constant dense<0.000000e+00> : vector<16x32xf32>
    %89 = tpu.matmul %88, %87, %cst_59 {dimension_numbers = #tpu.dot_dimension_numbers<[1], [0], [0], [1], [0, 0, 1, 1], [], []>} : vector<16x32xbf16>, vector<32x32xbf16>, vector<16x32xf32> -> vector<16x32xf32>
    %c1_60 = arith.constant 1 : index
    %c0_61 = arith.constant 0 : index
    %c0_62 = arith.constant 0 : index
    %90 = vector.load %arg10[%c1_60, %c0_61, %c0_62] : memref<4x1x32xf32, #tpu.memory_space<vmem>>, vector<1x1x32xf32>
    %91 = vector.shape_cast %90 : vector<1x1x32xf32> to vector<1x32xf32>
    %92 = vector.broadcast %91 : vector<1x32xf32> to vector<16x32xf32>
    %93 = arith.addf %89, %92 : vector<16x32xf32>
    %c0_63 = arith.constant 0 : index
    %c0_64 = arith.constant 0 : index
    %c0_65 = arith.constant 0 : index
    %94 = vector.load %arg11[%c0_63, %c0_64, %c0_65] : memref<4x32x32xbf16, #tpu.memory_space<vmem>>, vector<1x32x32xbf16>
    %95 = vector.shape_cast %94 : vector<1x32x32xbf16> to vector<32x32xbf16>
    %96 = arith.truncf %33 : vector<16x32xf32> to vector<16x32xbf16>
    %cst_66 = arith.constant dense<0.000000e+00> : vector<16x32xf32>
    %97 = tpu.matmul %96, %95, %cst_66 {dimension_numbers = #tpu.dot_dimension_numbers<[1], [0], [0], [1], [0, 0, 1, 1], [], []>} : vector<16x32xbf16>, vector<32x32xbf16>, vector<16x32xf32> -> vector<16x32xf32>
    %c0_67 = arith.constant 0 : index
    %c0_68 = arith.constant 0 : index
    %c0_69 = arith.constant 0 : index
    %98 = vector.load %arg12[%c0_67, %c0_68, %c0_69] : memref<4x1x32xf32, #tpu.memory_space<vmem>>, vector<1x1x32xf32>
    %99 = vector.shape_cast %98 : vector<1x1x32xf32> to vector<1x32xf32>
    %100 = vector.broadcast %99 : vector<1x32xf32> to vector<16x32xf32>
    %101 = arith.addf %97, %100 : vector<16x32xf32>
    %c1_70 = arith.constant 1 : index
    %c0_71 = arith.constant 0 : index
    %c0_72 = arith.constant 0 : index
    %102 = vector.load %arg11[%c1_70, %c0_71, %c0_72] : memref<4x32x32xbf16, #tpu.memory_space<vmem>>, vector<1x32x32xbf16>
    %103 = vector.shape_cast %102 : vector<1x32x32xbf16> to vector<32x32xbf16>
    %104 = arith.truncf %57 : vector<16x32xf32> to vector<16x32xbf16>
    %cst_73 = arith.constant dense<0.000000e+00> : vector<16x32xf32>
    %105 = tpu.matmul %104, %103, %cst_73 {dimension_numbers = #tpu.dot_dimension_numbers<[1], [0], [0], [1], [0, 0, 1, 1], [], []>} : vector<16x32xbf16>, vector<32x32xbf16>, vector<16x32xf32> -> vector<16x32xf32>
    %c1_74 = arith.constant 1 : index
    %c0_75 = arith.constant 0 : index
    %c0_76 = arith.constant 0 : index
    %106 = vector.load %arg12[%c1_74, %c0_75, %c0_76] : memref<4x1x32xf32, #tpu.memory_space<vmem>>, vector<1x1x32xf32>
    %107 = vector.shape_cast %106 : vector<1x1x32xf32> to vector<1x32xf32>
    %108 = vector.broadcast %107 : vector<1x32xf32> to vector<16x32xf32>
    %109 = arith.addf %105, %108 : vector<16x32xf32>
    %110 = vector.extract_strided_slice %67 {offsets = [0, 0], sizes = [8, 32], strides = [1, 1]} : vector<16x32xf32> to vector<8x32xf32>
    %111 = vector.extract_strided_slice %77 {offsets = [0, 0], sizes = [8, 32], strides = [1, 1]} : vector<16x32xf32> to vector<8x32xf32>
    %112 = tpu.concatenate %110, %111 in 0 : vector<8x32xf32>, vector<8x32xf32> -> vector<16x32xf32>
    %113 = arith.truncf %112 : vector<16x32xf32> to vector<16x32xbf16>
    %114 = vector.extract_strided_slice %85 {offsets = [0, 0], sizes = [8, 32], strides = [1, 1]} : vector<16x32xf32> to vector<8x32xf32>
    %115 = vector.extract_strided_slice %93 {offsets = [0, 0], sizes = [8, 32], strides = [1, 1]} : vector<16x32xf32> to vector<8x32xf32>
    %116 = tpu.concatenate %114, %115 in 0 : vector<8x32xf32>, vector<8x32xf32> -> vector<16x32xf32>
    %117 = arith.truncf %116 : vector<16x32xf32> to vector<16x32xbf16>
    %118 = vector.extract_strided_slice %101 {offsets = [0, 0], sizes = [8, 32], strides = [1, 1]} : vector<16x32xf32> to vector<8x32xf32>
    %119 = vector.extract_strided_slice %109 {offsets = [0, 0], sizes = [8, 32], strides = [1, 1]} : vector<16x32xf32> to vector<8x32xf32>
    %120 = tpu.concatenate %118, %119 in 0 : vector<8x32xf32>, vector<8x32xf32> -> vector<16x32xf32>
    %121 = arith.truncf %120 : vector<16x32xf32> to vector<16x32xbf16>
    %122 = vector.extract_strided_slice %9 {offsets = [0, 0, 0], sizes = [1, 1, 16], strides = [1, 1, 1]} : vector<2x1x16xf32> to vector<1x1x16xf32>
    %123 = vector.shape_cast %122 : vector<1x1x16xf32> to vector<1x16xf32>
    %124 = vector.extract_strided_slice %113 {offsets = [0, 0], sizes = [16, 8], strides = [1, 1]} : vector<16x32xbf16> to vector<16x8xbf16>
    %125 = vector.extract_strided_slice %117 {offsets = [0, 0], sizes = [16, 8], strides = [1, 1]} : vector<16x32xbf16> to vector<16x8xbf16>
    %cst_77 = arith.constant dense<0.000000e+00> : vector<16x16xf32>
    %126 = tpu.matmul %124, %125, %cst_77 {dimension_numbers = #tpu.dot_dimension_numbers<[1], [1], [0], [0], [0, 0, 1, 0], [], []>} : vector<16x8xbf16>, vector<16x8xbf16>, vector<16x16xf32> -> vector<16x16xf32>
    %127 = vector.broadcast %123 : vector<1x16xf32> to vector<16x16xf32>
    %128 = arith.addf %126, %127 : vector<16x16xf32>
    %cst_78 = arith.constant dense<0xFF800000> : vector<16xf32>
    %129 = vector.multi_reduction <maximumf>, %128, %cst_78 [1] : vector<16x16xf32> to vector<16xf32>
    %130 = vector.shape_cast %129 : vector<16xf32> to vector<16x1xf32>
    %131 = vector.broadcast %130 : vector<16x1xf32> to vector<16x16xf32>
    %132 = arith.subf %128, %131 : vector<16x16xf32>
    %133 = math.exp %132 : vector<16x16xf32>
    %cst_79 = arith.constant dense<0.000000e+00> : vector<16xf32>
    %134 = vector.multi_reduction <add>, %133, %cst_79 [1] : vector<16x16xf32> to vector<16xf32>
    %135 = vector.shape_cast %134 : vector<16xf32> to vector<16x1xf32>
    %136 = tpu.reciprocal %135 {approx = true} : vector<16x1xf32> -> vector<16x1xf32>
    %137 = vector.broadcast %136 : vector<16x1xf32> to vector<16x16xf32>
    %138 = arith.mulf %133, %137 : vector<16x16xf32>
    %139 = arith.truncf %138 : vector<16x16xf32> to vector<16x16xbf16>
    %140 = vector.extract_strided_slice %121 {offsets = [0, 0], sizes = [16, 8], strides = [1, 1]} : vector<16x32xbf16> to vector<16x8xbf16>
    %cst_80 = arith.constant dense<0.000000e+00> : vector<16x8xf32>
    %141 = tpu.matmul %139, %140, %cst_80 {dimension_numbers = #tpu.dot_dimension_numbers<[1], [0], [0], [1], [0, 0, 1, 1], [], []>} : vector<16x16xbf16>, vector<16x8xbf16>, vector<16x8xf32> -> vector<16x8xf32>
    %142 = vector.extract_strided_slice %113 {offsets = [0, 8], sizes = [16, 8], strides = [1, 1]} : vector<16x32xbf16> to vector<16x8xbf16>
    %143 = vector.extract_strided_slice %117 {offsets = [0, 8], sizes = [16, 8], strides = [1, 1]} : vector<16x32xbf16> to vector<16x8xbf16>
    %cst_81 = arith.constant dense<0.000000e+00> : vector<16x16xf32>
    %144 = tpu.matmul %142, %143, %cst_81 {dimension_numbers = #tpu.dot_dimension_numbers<[1], [1], [0], [0], [0, 0, 1, 0], [], []>} : vector<16x8xbf16>, vector<16x8xbf16>, vector<16x16xf32> -> vector<16x16xf32>
    %145 = vector.broadcast %123 : vector<1x16xf32> to vector<16x16xf32>
    %146 = arith.addf %144, %145 : vector<16x16xf32>
    %cst_82 = arith.constant dense<0xFF800000> : vector<16xf32>
    %147 = vector.multi_reduction <maximumf>, %146, %cst_82 [1] : vector<16x16xf32> to vector<16xf32>
    %148 = vector.shape_cast %147 : vector<16xf32> to vector<16x1xf32>
    %149 = vector.broadcast %148 : vector<16x1xf32> to vector<16x16xf32>
    %150 = arith.subf %146, %149 : vector<16x16xf32>
    %151 = math.exp %150 : vector<16x16xf32>
    %cst_83 = arith.constant dense<0.000000e+00> : vector<16xf32>
    %152 = vector.multi_reduction <add>, %151, %cst_83 [1] : vector<16x16xf32> to vector<16xf32>
    %153 = vector.shape_cast %152 : vector<16xf32> to vector<16x1xf32>
    %154 = tpu.reciprocal %153 {approx = true} : vector<16x1xf32> -> vector<16x1xf32>
    %155 = vector.broadcast %154 : vector<16x1xf32> to vector<16x16xf32>
    %156 = arith.mulf %151, %155 : vector<16x16xf32>
    %157 = arith.truncf %156 : vector<16x16xf32> to vector<16x16xbf16>
    %158 = vector.extract_strided_slice %121 {offsets = [0, 8], sizes = [16, 8], strides = [1, 1]} : vector<16x32xbf16> to vector<16x8xbf16>
    %cst_84 = arith.constant dense<0.000000e+00> : vector<16x8xf32>
    %159 = tpu.matmul %157, %158, %cst_84 {dimension_numbers = #tpu.dot_dimension_numbers<[1], [0], [0], [1], [0, 0, 1, 1], [], []>} : vector<16x16xbf16>, vector<16x8xbf16>, vector<16x8xf32> -> vector<16x8xf32>
    %160 = vector.extract_strided_slice %113 {offsets = [0, 16], sizes = [16, 8], strides = [1, 1]} : vector<16x32xbf16> to vector<16x8xbf16>
    %161 = vector.extract_strided_slice %117 {offsets = [0, 16], sizes = [16, 8], strides = [1, 1]} : vector<16x32xbf16> to vector<16x8xbf16>
    %cst_85 = arith.constant dense<0.000000e+00> : vector<16x16xf32>
    %162 = tpu.matmul %160, %161, %cst_85 {dimension_numbers = #tpu.dot_dimension_numbers<[1], [1], [0], [0], [0, 0, 1, 0], [], []>} : vector<16x8xbf16>, vector<16x8xbf16>, vector<16x16xf32> -> vector<16x16xf32>
    %163 = vector.broadcast %123 : vector<1x16xf32> to vector<16x16xf32>
    %164 = arith.addf %162, %163 : vector<16x16xf32>
    %cst_86 = arith.constant dense<0xFF800000> : vector<16xf32>
    %165 = vector.multi_reduction <maximumf>, %164, %cst_86 [1] : vector<16x16xf32> to vector<16xf32>
    %166 = vector.shape_cast %165 : vector<16xf32> to vector<16x1xf32>
    %167 = vector.broadcast %166 : vector<16x1xf32> to vector<16x16xf32>
    %168 = arith.subf %164, %167 : vector<16x16xf32>
    %169 = math.exp %168 : vector<16x16xf32>
    %cst_87 = arith.constant dense<0.000000e+00> : vector<16xf32>
    %170 = vector.multi_reduction <add>, %169, %cst_87 [1] : vector<16x16xf32> to vector<16xf32>
    %171 = vector.shape_cast %170 : vector<16xf32> to vector<16x1xf32>
    %172 = tpu.reciprocal %171 {approx = true} : vector<16x1xf32> -> vector<16x1xf32>
    %173 = vector.broadcast %172 : vector<16x1xf32> to vector<16x16xf32>
    %174 = arith.mulf %169, %173 : vector<16x16xf32>
    %175 = arith.truncf %174 : vector<16x16xf32> to vector<16x16xbf16>
    %176 = vector.extract_strided_slice %121 {offsets = [0, 16], sizes = [16, 8], strides = [1, 1]} : vector<16x32xbf16> to vector<16x8xbf16>
    %cst_88 = arith.constant dense<0.000000e+00> : vector<16x8xf32>
    %177 = tpu.matmul %175, %176, %cst_88 {dimension_numbers = #tpu.dot_dimension_numbers<[1], [0], [0], [1], [0, 0, 1, 1], [], []>} : vector<16x16xbf16>, vector<16x8xbf16>, vector<16x8xf32> -> vector<16x8xf32>
    %178 = vector.extract_strided_slice %113 {offsets = [0, 24], sizes = [16, 8], strides = [1, 1]} : vector<16x32xbf16> to vector<16x8xbf16>
    %179 = vector.extract_strided_slice %117 {offsets = [0, 24], sizes = [16, 8], strides = [1, 1]} : vector<16x32xbf16> to vector<16x8xbf16>
    %cst_89 = arith.constant dense<0.000000e+00> : vector<16x16xf32>
    %180 = tpu.matmul %178, %179, %cst_89 {dimension_numbers = #tpu.dot_dimension_numbers<[1], [1], [0], [0], [0, 0, 1, 0], [], []>} : vector<16x8xbf16>, vector<16x8xbf16>, vector<16x16xf32> -> vector<16x16xf32>
    %181 = vector.broadcast %123 : vector<1x16xf32> to vector<16x16xf32>
    %182 = arith.addf %180, %181 : vector<16x16xf32>
    %cst_90 = arith.constant dense<0xFF800000> : vector<16xf32>
    %183 = vector.multi_reduction <maximumf>, %182, %cst_90 [1] : vector<16x16xf32> to vector<16xf32>
    %184 = vector.shape_cast %183 : vector<16xf32> to vector<16x1xf32>
    %185 = vector.broadcast %184 : vector<16x1xf32> to vector<16x16xf32>
    %186 = arith.subf %182, %185 : vector<16x16xf32>
    %187 = math.exp %186 : vector<16x16xf32>
    %cst_91 = arith.constant dense<0.000000e+00> : vector<16xf32>
    %188 = vector.multi_reduction <add>, %187, %cst_91 [1] : vector<16x16xf32> to vector<16xf32>
    %189 = vector.shape_cast %188 : vector<16xf32> to vector<16x1xf32>
    %190 = tpu.reciprocal %189 {approx = true} : vector<16x1xf32> -> vector<16x1xf32>
    %191 = vector.broadcast %190 : vector<16x1xf32> to vector<16x16xf32>
    %192 = arith.mulf %187, %191 : vector<16x16xf32>
    %193 = arith.truncf %192 : vector<16x16xf32> to vector<16x16xbf16>
    %194 = vector.extract_strided_slice %121 {offsets = [0, 24], sizes = [16, 8], strides = [1, 1]} : vector<16x32xbf16> to vector<16x8xbf16>
    %cst_92 = arith.constant dense<0.000000e+00> : vector<16x8xf32>
    %195 = tpu.matmul %193, %194, %cst_92 {dimension_numbers = #tpu.dot_dimension_numbers<[1], [0], [0], [1], [0, 0, 1, 1], [], []>} : vector<16x16xbf16>, vector<16x8xbf16>, vector<16x8xf32> -> vector<16x8xf32>
    %196 = tpu.concatenate %141, %159, %177, %195 in 1 : vector<16x8xf32>, vector<16x8xf32>, vector<16x8xf32>, vector<16x8xf32> -> vector<16x32xf32>
    %197 = vector.extract_strided_slice %196 {offsets = [0, 0], sizes = [8, 32], strides = [1, 1]} : vector<16x32xf32> to vector<8x32xf32>
    %198 = vector.extract_strided_slice %196 {offsets = [8, 0], sizes = [8, 32], strides = [1, 1]} : vector<16x32xf32> to vector<8x32xf32>
    %199 = vector.extract_strided_slice %67 {offsets = [8, 0], sizes = [8, 32], strides = [1, 1]} : vector<16x32xf32> to vector<8x32xf32>
    %200 = vector.extract_strided_slice %77 {offsets = [8, 0], sizes = [8, 32], strides = [1, 1]} : vector<16x32xf32> to vector<8x32xf32>
    %201 = tpu.concatenate %199, %200 in 0 : vector<8x32xf32>, vector<8x32xf32> -> vector<16x32xf32>
    %202 = arith.truncf %201 : vector<16x32xf32> to vector<16x32xbf16>
    %203 = vector.extract_strided_slice %85 {offsets = [8, 0], sizes = [8, 32], strides = [1, 1]} : vector<16x32xf32> to vector<8x32xf32>
    %204 = vector.extract_strided_slice %93 {offsets = [8, 0], sizes = [8, 32], strides = [1, 1]} : vector<16x32xf32> to vector<8x32xf32>
    %205 = tpu.concatenate %203, %204 in 0 : vector<8x32xf32>, vector<8x32xf32> -> vector<16x32xf32>
    %206 = arith.truncf %205 : vector<16x32xf32> to vector<16x32xbf16>
    %207 = vector.extract_strided_slice %101 {offsets = [8, 0], sizes = [8, 32], strides = [1, 1]} : vector<16x32xf32> to vector<8x32xf32>
    %208 = vector.extract_strided_slice %109 {offsets = [8, 0], sizes = [8, 32], strides = [1, 1]} : vector<16x32xf32> to vector<8x32xf32>
    %209 = tpu.concatenate %207, %208 in 0 : vector<8x32xf32>, vector<8x32xf32> -> vector<16x32xf32>
    %210 = arith.truncf %209 : vector<16x32xf32> to vector<16x32xbf16>
    %211 = vector.extract_strided_slice %9 {offsets = [1, 0, 0], sizes = [1, 1, 16], strides = [1, 1, 1]} : vector<2x1x16xf32> to vector<1x1x16xf32>
    %212 = vector.shape_cast %211 : vector<1x1x16xf32> to vector<1x16xf32>
    %213 = vector.extract_strided_slice %202 {offsets = [0, 0], sizes = [16, 8], strides = [1, 1]} : vector<16x32xbf16> to vector<16x8xbf16>
    %214 = vector.extract_strided_slice %206 {offsets = [0, 0], sizes = [16, 8], strides = [1, 1]} : vector<16x32xbf16> to vector<16x8xbf16>
    %cst_93 = arith.constant dense<0.000000e+00> : vector<16x16xf32>
    %215 = tpu.matmul %213, %214, %cst_93 {dimension_numbers = #tpu.dot_dimension_numbers<[1], [1], [0], [0], [0, 0, 1, 0], [], []>} : vector<16x8xbf16>, vector<16x8xbf16>, vector<16x16xf32> -> vector<16x16xf32>
    %216 = vector.broadcast %212 : vector<1x16xf32> to vector<16x16xf32>
    %217 = arith.addf %215, %216 : vector<16x16xf32>
    %cst_94 = arith.constant dense<0xFF800000> : vector<16xf32>
    %218 = vector.multi_reduction <maximumf>, %217, %cst_94 [1] : vector<16x16xf32> to vector<16xf32>
    %219 = vector.shape_cast %218 : vector<16xf32> to vector<16x1xf32>
    %220 = vector.broadcast %219 : vector<16x1xf32> to vector<16x16xf32>
    %221 = arith.subf %217, %220 : vector<16x16xf32>
    %222 = math.exp %221 : vector<16x16xf32>
    %cst_95 = arith.constant dense<0.000000e+00> : vector<16xf32>
    %223 = vector.multi_reduction <add>, %222, %cst_95 [1] : vector<16x16xf32> to vector<16xf32>
    %224 = vector.shape_cast %223 : vector<16xf32> to vector<16x1xf32>
    %225 = tpu.reciprocal %224 {approx = true} : vector<16x1xf32> -> vector<16x1xf32>
    %226 = vector.broadcast %225 : vector<16x1xf32> to vector<16x16xf32>
    %227 = arith.mulf %222, %226 : vector<16x16xf32>
    %228 = arith.truncf %227 : vector<16x16xf32> to vector<16x16xbf16>
    %229 = vector.extract_strided_slice %210 {offsets = [0, 0], sizes = [16, 8], strides = [1, 1]} : vector<16x32xbf16> to vector<16x8xbf16>
    %cst_96 = arith.constant dense<0.000000e+00> : vector<16x8xf32>
    %230 = tpu.matmul %228, %229, %cst_96 {dimension_numbers = #tpu.dot_dimension_numbers<[1], [0], [0], [1], [0, 0, 1, 1], [], []>} : vector<16x16xbf16>, vector<16x8xbf16>, vector<16x8xf32> -> vector<16x8xf32>
    %231 = vector.extract_strided_slice %202 {offsets = [0, 8], sizes = [16, 8], strides = [1, 1]} : vector<16x32xbf16> to vector<16x8xbf16>
    %232 = vector.extract_strided_slice %206 {offsets = [0, 8], sizes = [16, 8], strides = [1, 1]} : vector<16x32xbf16> to vector<16x8xbf16>
    %cst_97 = arith.constant dense<0.000000e+00> : vector<16x16xf32>
    %233 = tpu.matmul %231, %232, %cst_97 {dimension_numbers = #tpu.dot_dimension_numbers<[1], [1], [0], [0], [0, 0, 1, 0], [], []>} : vector<16x8xbf16>, vector<16x8xbf16>, vector<16x16xf32> -> vector<16x16xf32>
    %234 = vector.broadcast %212 : vector<1x16xf32> to vector<16x16xf32>
    %235 = arith.addf %233, %234 : vector<16x16xf32>
    %cst_98 = arith.constant dense<0xFF800000> : vector<16xf32>
    %236 = vector.multi_reduction <maximumf>, %235, %cst_98 [1] : vector<16x16xf32> to vector<16xf32>
    %237 = vector.shape_cast %236 : vector<16xf32> to vector<16x1xf32>
    %238 = vector.broadcast %237 : vector<16x1xf32> to vector<16x16xf32>
    %239 = arith.subf %235, %238 : vector<16x16xf32>
    %240 = math.exp %239 : vector<16x16xf32>
    %cst_99 = arith.constant dense<0.000000e+00> : vector<16xf32>
    %241 = vector.multi_reduction <add>, %240, %cst_99 [1] : vector<16x16xf32> to vector<16xf32>
    %242 = vector.shape_cast %241 : vector<16xf32> to vector<16x1xf32>
    %243 = tpu.reciprocal %242 {approx = true} : vector<16x1xf32> -> vector<16x1xf32>
    %244 = vector.broadcast %243 : vector<16x1xf32> to vector<16x16xf32>
    %245 = arith.mulf %240, %244 : vector<16x16xf32>
    %246 = arith.truncf %245 : vector<16x16xf32> to vector<16x16xbf16>
    %247 = vector.extract_strided_slice %210 {offsets = [0, 8], sizes = [16, 8], strides = [1, 1]} : vector<16x32xbf16> to vector<16x8xbf16>
    %cst_100 = arith.constant dense<0.000000e+00> : vector<16x8xf32>
    %248 = tpu.matmul %246, %247, %cst_100 {dimension_numbers = #tpu.dot_dimension_numbers<[1], [0], [0], [1], [0, 0, 1, 1], [], []>} : vector<16x16xbf16>, vector<16x8xbf16>, vector<16x8xf32> -> vector<16x8xf32>
    %249 = vector.extract_strided_slice %202 {offsets = [0, 16], sizes = [16, 8], strides = [1, 1]} : vector<16x32xbf16> to vector<16x8xbf16>
    %250 = vector.extract_strided_slice %206 {offsets = [0, 16], sizes = [16, 8], strides = [1, 1]} : vector<16x32xbf16> to vector<16x8xbf16>
    %cst_101 = arith.constant dense<0.000000e+00> : vector<16x16xf32>
    %251 = tpu.matmul %249, %250, %cst_101 {dimension_numbers = #tpu.dot_dimension_numbers<[1], [1], [0], [0], [0, 0, 1, 0], [], []>} : vector<16x8xbf16>, vector<16x8xbf16>, vector<16x16xf32> -> vector<16x16xf32>
    %252 = vector.broadcast %212 : vector<1x16xf32> to vector<16x16xf32>
    %253 = arith.addf %251, %252 : vector<16x16xf32>
    %cst_102 = arith.constant dense<0xFF800000> : vector<16xf32>
    %254 = vector.multi_reduction <maximumf>, %253, %cst_102 [1] : vector<16x16xf32> to vector<16xf32>
    %255 = vector.shape_cast %254 : vector<16xf32> to vector<16x1xf32>
    %256 = vector.broadcast %255 : vector<16x1xf32> to vector<16x16xf32>
    %257 = arith.subf %253, %256 : vector<16x16xf32>
    %258 = math.exp %257 : vector<16x16xf32>
    %cst_103 = arith.constant dense<0.000000e+00> : vector<16xf32>
    %259 = vector.multi_reduction <add>, %258, %cst_103 [1] : vector<16x16xf32> to vector<16xf32>
    %260 = vector.shape_cast %259 : vector<16xf32> to vector<16x1xf32>
    %261 = tpu.reciprocal %260 {approx = true} : vector<16x1xf32> -> vector<16x1xf32>
    %262 = vector.broadcast %261 : vector<16x1xf32> to vector<16x16xf32>
    %263 = arith.mulf %258, %262 : vector<16x16xf32>
    %264 = arith.truncf %263 : vector<16x16xf32> to vector<16x16xbf16>
    %265 = vector.extract_strided_slice %210 {offsets = [0, 16], sizes = [16, 8], strides = [1, 1]} : vector<16x32xbf16> to vector<16x8xbf16>
    %cst_104 = arith.constant dense<0.000000e+00> : vector<16x8xf32>
    %266 = tpu.matmul %264, %265, %cst_104 {dimension_numbers = #tpu.dot_dimension_numbers<[1], [0], [0], [1], [0, 0, 1, 1], [], []>} : vector<16x16xbf16>, vector<16x8xbf16>, vector<16x8xf32> -> vector<16x8xf32>
    %267 = vector.extract_strided_slice %202 {offsets = [0, 24], sizes = [16, 8], strides = [1, 1]} : vector<16x32xbf16> to vector<16x8xbf16>
    %268 = vector.extract_strided_slice %206 {offsets = [0, 24], sizes = [16, 8], strides = [1, 1]} : vector<16x32xbf16> to vector<16x8xbf16>
    %cst_105 = arith.constant dense<0.000000e+00> : vector<16x16xf32>
    %269 = tpu.matmul %267, %268, %cst_105 {dimension_numbers = #tpu.dot_dimension_numbers<[1], [1], [0], [0], [0, 0, 1, 0], [], []>} : vector<16x8xbf16>, vector<16x8xbf16>, vector<16x16xf32> -> vector<16x16xf32>
    %270 = vector.broadcast %212 : vector<1x16xf32> to vector<16x16xf32>
    %271 = arith.addf %269, %270 : vector<16x16xf32>
    %cst_106 = arith.constant dense<0xFF800000> : vector<16xf32>
    %272 = vector.multi_reduction <maximumf>, %271, %cst_106 [1] : vector<16x16xf32> to vector<16xf32>
    %273 = vector.shape_cast %272 : vector<16xf32> to vector<16x1xf32>
    %274 = vector.broadcast %273 : vector<16x1xf32> to vector<16x16xf32>
    %275 = arith.subf %271, %274 : vector<16x16xf32>
    %276 = math.exp %275 : vector<16x16xf32>
    %cst_107 = arith.constant dense<0.000000e+00> : vector<16xf32>
    %277 = vector.multi_reduction <add>, %276, %cst_107 [1] : vector<16x16xf32> to vector<16xf32>
    %278 = vector.shape_cast %277 : vector<16xf32> to vector<16x1xf32>
    %279 = tpu.reciprocal %278 {approx = true} : vector<16x1xf32> -> vector<16x1xf32>
    %280 = vector.broadcast %279 : vector<16x1xf32> to vector<16x16xf32>
    %281 = arith.mulf %276, %280 : vector<16x16xf32>
    %282 = arith.truncf %281 : vector<16x16xf32> to vector<16x16xbf16>
    %283 = vector.extract_strided_slice %210 {offsets = [0, 24], sizes = [16, 8], strides = [1, 1]} : vector<16x32xbf16> to vector<16x8xbf16>
    %cst_108 = arith.constant dense<0.000000e+00> : vector<16x8xf32>
    %284 = tpu.matmul %282, %283, %cst_108 {dimension_numbers = #tpu.dot_dimension_numbers<[1], [0], [0], [1], [0, 0, 1, 1], [], []>} : vector<16x16xbf16>, vector<16x8xbf16>, vector<16x8xf32> -> vector<16x8xf32>
    %285 = tpu.concatenate %230, %248, %266, %284 in 1 : vector<16x8xf32>, vector<16x8xf32>, vector<16x8xf32>, vector<16x8xf32> -> vector<16x32xf32>
    %286 = vector.extract_strided_slice %285 {offsets = [0, 0], sizes = [8, 32], strides = [1, 1]} : vector<16x32xf32> to vector<8x32xf32>
    %287 = vector.extract_strided_slice %285 {offsets = [8, 0], sizes = [8, 32], strides = [1, 1]} : vector<16x32xf32> to vector<8x32xf32>
    %288 = tpu.concatenate %197, %286 in 0 : vector<8x32xf32>, vector<8x32xf32> -> vector<16x32xf32>
    %289 = tpu.concatenate %198, %287 in 0 : vector<8x32xf32>, vector<8x32xf32> -> vector<16x32xf32>
    %c0_109 = arith.constant 0 : index
    %c0_110 = arith.constant 0 : index
    %c0_111 = arith.constant 0 : index
    %290 = vector.load %arg13[%c0_109, %c0_110, %c0_111] : memref<4x32x32xbf16, #tpu.memory_space<vmem>>, vector<1x32x32xbf16>
    %291 = vector.shape_cast %290 : vector<1x32x32xbf16> to vector<32x32xbf16>
    %292 = arith.truncf %288 : vector<16x32xf32> to vector<16x32xbf16>
    %cst_112 = arith.constant dense<0.000000e+00> : vector<16x32xf32>
    %293 = tpu.matmul %292, %291, %cst_112 {dimension_numbers = #tpu.dot_dimension_numbers<[1], [0], [0], [1], [0, 0, 1, 1], [], []>} : vector<16x32xbf16>, vector<32x32xbf16>, vector<16x32xf32> -> vector<16x32xf32>
    %294 = arith.addf %7, %293 : vector<16x32xf32>
    %c0_113 = arith.constant 0 : index
    %c0_114 = arith.constant 0 : index
    %c0_115 = arith.constant 0 : index
    %295 = vector.load %arg14[%c0_113, %c0_114, %c0_115] : memref<4x1x32xf32, #tpu.memory_space<vmem>>, vector<1x1x32xf32>
    %296 = vector.shape_cast %295 : vector<1x1x32xf32> to vector<1x32xf32>
    %297 = vector.broadcast %296 : vector<1x32xf32> to vector<16x32xf32>
    %298 = arith.addf %294, %297 : vector<16x32xf32>
    %c1_116 = arith.constant 1 : index
    %c0_117 = arith.constant 0 : index
    %c0_118 = arith.constant 0 : index
    %299 = vector.load %arg13[%c1_116, %c0_117, %c0_118] : memref<4x32x32xbf16, #tpu.memory_space<vmem>>, vector<1x32x32xbf16>
    %300 = vector.shape_cast %299 : vector<1x32x32xbf16> to vector<32x32xbf16>
    %301 = arith.truncf %289 : vector<16x32xf32> to vector<16x32xbf16>
    %cst_119 = arith.constant dense<0.000000e+00> : vector<16x32xf32>
    %302 = tpu.matmul %301, %300, %cst_119 {dimension_numbers = #tpu.dot_dimension_numbers<[1], [0], [0], [1], [0, 0, 1, 1], [], []>} : vector<16x32xbf16>, vector<32x32xbf16>, vector<16x32xf32> -> vector<16x32xf32>
    %303 = arith.addf %8, %302 : vector<16x32xf32>
    %c1_120 = arith.constant 1 : index
    %c0_121 = arith.constant 0 : index
    %c0_122 = arith.constant 0 : index
    %304 = vector.load %arg14[%c1_120, %c0_121, %c0_122] : memref<4x1x32xf32, #tpu.memory_space<vmem>>, vector<1x1x32xf32>
    %305 = vector.shape_cast %304 : vector<1x1x32xf32> to vector<1x32xf32>
    %306 = vector.broadcast %305 : vector<1x32xf32> to vector<16x32xf32>
    %307 = arith.addf %303, %306 : vector<16x32xf32>
    %c0_123 = arith.constant 0 : index
    %c0_124 = arith.constant 0 : index
    %c0_125 = arith.constant 0 : index
    %308 = vector.load %arg17[%c0_123, %c0_124, %c0_125] : memref<4x1x32xf32, #tpu.memory_space<vmem>>, vector<1x1x32xf32>
    %309 = vector.shape_cast %308 : vector<1x1x32xf32> to vector<1x32xf32>
    %c0_126 = arith.constant 0 : index
    %c0_127 = arith.constant 0 : index
    %c0_128 = arith.constant 0 : index
    %310 = vector.load %arg18[%c0_126, %c0_127, %c0_128] : memref<4x1x32xf32, #tpu.memory_space<vmem>>, vector<1x1x32xf32>
    %311 = vector.shape_cast %310 : vector<1x1x32xf32> to vector<1x32xf32>
    %cst_129 = arith.constant dense<0.000000e+00> : vector<16xf32>
    %312 = vector.multi_reduction <add>, %298, %cst_129 [1] : vector<16x32xf32> to vector<16xf32>
    %313 = vector.shape_cast %312 : vector<16xf32> to vector<16x1xf32>
    %cst_130 = arith.constant 3.200000e+01 : f32
    %314 = vector.broadcast %cst_130 : f32 to vector<16x1xf32>
    %315 = arith.divf %313, %314 : vector<16x1xf32>
    %316 = vector.broadcast %315 : vector<16x1xf32> to vector<16x32xf32>
    %317 = arith.subf %298, %316 : vector<16x32xf32>
    %318 = arith.mulf %317, %317 : vector<16x32xf32>
    %cst_131 = arith.constant dense<0.000000e+00> : vector<16xf32>
    %319 = vector.multi_reduction <add>, %318, %cst_131 [1] : vector<16x32xf32> to vector<16xf32>
    %320 = vector.shape_cast %319 : vector<16xf32> to vector<16x1xf32>
    %cst_132 = arith.constant 3.200000e+01 : f32
    %321 = vector.broadcast %cst_132 : f32 to vector<16x1xf32>
    %322 = arith.divf %320, %321 : vector<16x1xf32>
    %cst_133 = arith.constant 9.99999974E-6 : f32
    %323 = vector.broadcast %cst_133 : f32 to vector<16x1xf32>
    %324 = arith.addf %322, %323 : vector<16x1xf32>
    %325 = math.rsqrt %324 : vector<16x1xf32>
    %326 = vector.broadcast %325 : vector<16x1xf32> to vector<16x32xf32>
    %327 = arith.mulf %317, %326 : vector<16x32xf32>
    %328 = vector.broadcast %309 : vector<1x32xf32> to vector<16x32xf32>
    %329 = arith.mulf %327, %328 : vector<16x32xf32>
    %330 = vector.broadcast %311 : vector<1x32xf32> to vector<16x32xf32>
    %331 = arith.addf %329, %330 : vector<16x32xf32>
    %c1_134 = arith.constant 1 : index
    %c0_135 = arith.constant 0 : index
    %c0_136 = arith.constant 0 : index
    %332 = vector.load %arg17[%c1_134, %c0_135, %c0_136] : memref<4x1x32xf32, #tpu.memory_space<vmem>>, vector<1x1x32xf32>
    %333 = vector.shape_cast %332 : vector<1x1x32xf32> to vector<1x32xf32>
    %c1_137 = arith.constant 1 : index
    %c0_138 = arith.constant 0 : index
    %c0_139 = arith.constant 0 : index
    %334 = vector.load %arg18[%c1_137, %c0_138, %c0_139] : memref<4x1x32xf32, #tpu.memory_space<vmem>>, vector<1x1x32xf32>
    %335 = vector.shape_cast %334 : vector<1x1x32xf32> to vector<1x32xf32>
    %cst_140 = arith.constant dense<0.000000e+00> : vector<16xf32>
    %336 = vector.multi_reduction <add>, %307, %cst_140 [1] : vector<16x32xf32> to vector<16xf32>
    %337 = vector.shape_cast %336 : vector<16xf32> to vector<16x1xf32>
    %cst_141 = arith.constant 3.200000e+01 : f32
    %338 = vector.broadcast %cst_141 : f32 to vector<16x1xf32>
    %339 = arith.divf %337, %338 : vector<16x1xf32>
    %340 = vector.broadcast %339 : vector<16x1xf32> to vector<16x32xf32>
    %341 = arith.subf %307, %340 : vector<16x32xf32>
    %342 = arith.mulf %341, %341 : vector<16x32xf32>
    %cst_142 = arith.constant dense<0.000000e+00> : vector<16xf32>
    %343 = vector.multi_reduction <add>, %342, %cst_142 [1] : vector<16x32xf32> to vector<16xf32>
    %344 = vector.shape_cast %343 : vector<16xf32> to vector<16x1xf32>
    %cst_143 = arith.constant 3.200000e+01 : f32
    %345 = vector.broadcast %cst_143 : f32 to vector<16x1xf32>
    %346 = arith.divf %344, %345 : vector<16x1xf32>
    %cst_144 = arith.constant 9.99999974E-6 : f32
    %347 = vector.broadcast %cst_144 : f32 to vector<16x1xf32>
    %348 = arith.addf %346, %347 : vector<16x1xf32>
    %349 = math.rsqrt %348 : vector<16x1xf32>
    %350 = vector.broadcast %349 : vector<16x1xf32> to vector<16x32xf32>
    %351 = arith.mulf %341, %350 : vector<16x32xf32>
    %352 = vector.broadcast %333 : vector<1x32xf32> to vector<16x32xf32>
    %353 = arith.mulf %351, %352 : vector<16x32xf32>
    %354 = vector.broadcast %335 : vector<1x32xf32> to vector<16x32xf32>
    %355 = arith.addf %353, %354 : vector<16x32xf32>
    %c0_145 = arith.constant 0 : index
    %c0_146 = arith.constant 0 : index
    %c0_147 = arith.constant 0 : index
    %356 = vector.load %arg19[%c0_145, %c0_146, %c0_147] : memref<4x32x64xbf16, #tpu.memory_space<vmem>>, vector<1x32x64xbf16>
    %357 = vector.shape_cast %356 : vector<1x32x64xbf16> to vector<32x64xbf16>
    %358 = arith.truncf %331 : vector<16x32xf32> to vector<16x32xbf16>
    %cst_148 = arith.constant dense<0.000000e+00> : vector<16x64xf32>
    %359 = tpu.matmul %358, %357, %cst_148 {dimension_numbers = #tpu.dot_dimension_numbers<[1], [0], [0], [1], [0, 0, 1, 1], [], []>} : vector<16x32xbf16>, vector<32x64xbf16>, vector<16x64xf32> -> vector<16x64xf32>
    %c0_149 = arith.constant 0 : index
    %c0_150 = arith.constant 0 : index
    %c0_151 = arith.constant 0 : index
    %360 = vector.load %arg20[%c0_149, %c0_150, %c0_151] : memref<4x1x64xf32, #tpu.memory_space<vmem>>, vector<1x1x64xf32>
    %361 = vector.shape_cast %360 : vector<1x1x64xf32> to vector<1x64xf32>
    %362 = vector.broadcast %361 : vector<1x64xf32> to vector<16x64xf32>
    %363 = arith.addf %359, %362 : vector<16x64xf32>
    %cst_152 = arith.constant 0.707106769 : f32
    %364 = vector.broadcast %cst_152 : f32 to vector<16x64xf32>
    %365 = arith.mulf %363, %364 : vector<16x64xf32>
    %366 = math.absf %365 : vector<16x64xf32>
    %cst_153 = arith.constant 0.327591091 : f32
    %367 = vector.broadcast %cst_153 : f32 to vector<16x64xf32>
    %368 = arith.mulf %367, %366 : vector<16x64xf32>
    %cst_154 = arith.constant 1.000000e+00 : f32
    %369 = vector.broadcast %cst_154 : f32 to vector<16x64xf32>
    %370 = arith.addf %369, %368 : vector<16x64xf32>
    %cst_155 = arith.constant 1.000000e+00 : f32
    %371 = vector.broadcast %cst_155 : f32 to vector<16x64xf32>
    %372 = arith.divf %371, %370 : vector<16x64xf32>
    %cst_156 = arith.constant 1.06140542 : f32
    %373 = vector.broadcast %cst_156 : f32 to vector<16x64xf32>
    %374 = arith.mulf %373, %372 : vector<16x64xf32>
    %cst_157 = arith.constant 1.45315206 : f32
    %375 = vector.broadcast %cst_157 : f32 to vector<16x64xf32>
    %376 = arith.subf %374, %375 : vector<16x64xf32>
    %377 = arith.mulf %376, %372 : vector<16x64xf32>
    %cst_158 = arith.constant 1.42141378 : f32
    %378 = vector.broadcast %cst_158 : f32 to vector<16x64xf32>
    %379 = arith.addf %377, %378 : vector<16x64xf32>
    %380 = arith.mulf %379, %372 : vector<16x64xf32>
    %cst_159 = arith.constant 0.284496725 : f32
    %381 = vector.broadcast %cst_159 : f32 to vector<16x64xf32>
    %382 = arith.subf %380, %381 : vector<16x64xf32>
    %383 = arith.mulf %382, %372 : vector<16x64xf32>
    %cst_160 = arith.constant 0.254829586 : f32
    %384 = vector.broadcast %cst_160 : f32 to vector<16x64xf32>
    %385 = arith.addf %383, %384 : vector<16x64xf32>
    %386 = arith.mulf %385, %372 : vector<16x64xf32>
    %cst_161 = arith.constant 0.000000e+00 : f32
    %387 = vector.broadcast %cst_161 : f32 to vector<16x64xf32>
    %388 = arith.subf %387, %366 : vector<16x64xf32>
    %389 = arith.mulf %388, %366 : vector<16x64xf32>
    %390 = math.exp %389 : vector<16x64xf32>
    %391 = arith.mulf %386, %390 : vector<16x64xf32>
    %cst_162 = arith.constant 1.000000e+00 : f32
    %392 = vector.broadcast %cst_162 : f32 to vector<16x64xf32>
    %393 = arith.subf %392, %391 : vector<16x64xf32>
    %cst_163 = arith.constant 0.000000e+00 : f32
    %394 = vector.broadcast %cst_163 : f32 to vector<16x64xf32>
    %395 = arith.cmpf oge, %365, %394 : vector<16x64xf32>
    %cst_164 = arith.constant 0.000000e+00 : f32
    %396 = vector.broadcast %cst_164 : f32 to vector<16x64xf32>
    %397 = arith.subf %396, %393 : vector<16x64xf32>
    %398 = arith.select %395, %393, %397 : vector<16x64xi1>, vector<16x64xf32>
    %cst_165 = arith.constant 5.000000e-01 : f32
    %399 = vector.broadcast %cst_165 : f32 to vector<16x64xf32>
    %400 = arith.mulf %399, %363 : vector<16x64xf32>
    %cst_166 = arith.constant 1.000000e+00 : f32
    %401 = vector.broadcast %cst_166 : f32 to vector<16x64xf32>
    %402 = arith.addf %401, %398 : vector<16x64xf32>
    %403 = arith.mulf %400, %402 : vector<16x64xf32>
    %c1_167 = arith.constant 1 : index
    %c0_168 = arith.constant 0 : index
    %c0_169 = arith.constant 0 : index
    %404 = vector.load %arg19[%c1_167, %c0_168, %c0_169] : memref<4x32x64xbf16, #tpu.memory_space<vmem>>, vector<1x32x64xbf16>
    %405 = vector.shape_cast %404 : vector<1x32x64xbf16> to vector<32x64xbf16>
    %406 = arith.truncf %355 : vector<16x32xf32> to vector<16x32xbf16>
    %cst_170 = arith.constant dense<0.000000e+00> : vector<16x64xf32>
    %407 = tpu.matmul %406, %405, %cst_170 {dimension_numbers = #tpu.dot_dimension_numbers<[1], [0], [0], [1], [0, 0, 1, 1], [], []>} : vector<16x32xbf16>, vector<32x64xbf16>, vector<16x64xf32> -> vector<16x64xf32>
    %c1_171 = arith.constant 1 : index
    %c0_172 = arith.constant 0 : index
    %c0_173 = arith.constant 0 : index
    %408 = vector.load %arg20[%c1_171, %c0_172, %c0_173] : memref<4x1x64xf32, #tpu.memory_space<vmem>>, vector<1x1x64xf32>
    %409 = vector.shape_cast %408 : vector<1x1x64xf32> to vector<1x64xf32>
    %410 = vector.broadcast %409 : vector<1x64xf32> to vector<16x64xf32>
    %411 = arith.addf %407, %410 : vector<16x64xf32>
    %cst_174 = arith.constant 0.707106769 : f32
    %412 = vector.broadcast %cst_174 : f32 to vector<16x64xf32>
    %413 = arith.mulf %411, %412 : vector<16x64xf32>
    %414 = math.absf %413 : vector<16x64xf32>
    %cst_175 = arith.constant 0.327591091 : f32
    %415 = vector.broadcast %cst_175 : f32 to vector<16x64xf32>
    %416 = arith.mulf %415, %414 : vector<16x64xf32>
    %cst_176 = arith.constant 1.000000e+00 : f32
    %417 = vector.broadcast %cst_176 : f32 to vector<16x64xf32>
    %418 = arith.addf %417, %416 : vector<16x64xf32>
    %cst_177 = arith.constant 1.000000e+00 : f32
    %419 = vector.broadcast %cst_177 : f32 to vector<16x64xf32>
    %420 = arith.divf %419, %418 : vector<16x64xf32>
    %cst_178 = arith.constant 1.06140542 : f32
    %421 = vector.broadcast %cst_178 : f32 to vector<16x64xf32>
    %422 = arith.mulf %421, %420 : vector<16x64xf32>
    %cst_179 = arith.constant 1.45315206 : f32
    %423 = vector.broadcast %cst_179 : f32 to vector<16x64xf32>
    %424 = arith.subf %422, %423 : vector<16x64xf32>
    %425 = arith.mulf %424, %420 : vector<16x64xf32>
    %cst_180 = arith.constant 1.42141378 : f32
    %426 = vector.broadcast %cst_180 : f32 to vector<16x64xf32>
    %427 = arith.addf %425, %426 : vector<16x64xf32>
    %428 = arith.mulf %427, %420 : vector<16x64xf32>
    %cst_181 = arith.constant 0.284496725 : f32
    %429 = vector.broadcast %cst_181 : f32 to vector<16x64xf32>
    %430 = arith.subf %428, %429 : vector<16x64xf32>
    %431 = arith.mulf %430, %420 : vector<16x64xf32>
    %cst_182 = arith.constant 0.254829586 : f32
    %432 = vector.broadcast %cst_182 : f32 to vector<16x64xf32>
    %433 = arith.addf %431, %432 : vector<16x64xf32>
    %434 = arith.mulf %433, %420 : vector<16x64xf32>
    %cst_183 = arith.constant 0.000000e+00 : f32
    %435 = vector.broadcast %cst_183 : f32 to vector<16x64xf32>
    %436 = arith.subf %435, %414 : vector<16x64xf32>
    %437 = arith.mulf %436, %414 : vector<16x64xf32>
    %438 = math.exp %437 : vector<16x64xf32>
    %439 = arith.mulf %434, %438 : vector<16x64xf32>
    %cst_184 = arith.constant 1.000000e+00 : f32
    %440 = vector.broadcast %cst_184 : f32 to vector<16x64xf32>
    %441 = arith.subf %440, %439 : vector<16x64xf32>
    %cst_185 = arith.constant 0.000000e+00 : f32
    %442 = vector.broadcast %cst_185 : f32 to vector<16x64xf32>
    %443 = arith.cmpf oge, %413, %442 : vector<16x64xf32>
    %cst_186 = arith.constant 0.000000e+00 : f32
    %444 = vector.broadcast %cst_186 : f32 to vector<16x64xf32>
    %445 = arith.subf %444, %441 : vector<16x64xf32>
    %446 = arith.select %443, %441, %445 : vector<16x64xi1>, vector<16x64xf32>
    %cst_187 = arith.constant 5.000000e-01 : f32
    %447 = vector.broadcast %cst_187 : f32 to vector<16x64xf32>
    %448 = arith.mulf %447, %411 : vector<16x64xf32>
    %cst_188 = arith.constant 1.000000e+00 : f32
    %449 = vector.broadcast %cst_188 : f32 to vector<16x64xf32>
    %450 = arith.addf %449, %446 : vector<16x64xf32>
    %451 = arith.mulf %448, %450 : vector<16x64xf32>
    %c0_189 = arith.constant 0 : index
    %c0_190 = arith.constant 0 : index
    %c0_191 = arith.constant 0 : index
    %452 = vector.load %arg21[%c0_189, %c0_190, %c0_191] : memref<4x64x32xbf16, #tpu.memory_space<vmem>>, vector<1x64x32xbf16>
    %453 = vector.shape_cast %452 : vector<1x64x32xbf16> to vector<64x32xbf16>
    %454 = arith.truncf %403 : vector<16x64xf32> to vector<16x64xbf16>
    %cst_192 = arith.constant dense<0.000000e+00> : vector<16x32xf32>
    %455 = tpu.matmul %454, %453, %cst_192 {dimension_numbers = #tpu.dot_dimension_numbers<[1], [0], [0], [1], [0, 0, 1, 1], [], []>} : vector<16x64xbf16>, vector<64x32xbf16>, vector<16x32xf32> -> vector<16x32xf32>
    %456 = arith.addf %298, %455 : vector<16x32xf32>
    %c0_193 = arith.constant 0 : index
    %c0_194 = arith.constant 0 : index
    %c0_195 = arith.constant 0 : index
    %457 = vector.load %arg22[%c0_193, %c0_194, %c0_195] : memref<4x1x32xf32, #tpu.memory_space<vmem>>, vector<1x1x32xf32>
    %458 = vector.shape_cast %457 : vector<1x1x32xf32> to vector<1x32xf32>
    %459 = vector.broadcast %458 : vector<1x32xf32> to vector<16x32xf32>
    %460 = arith.addf %456, %459 : vector<16x32xf32>
    %c1_196 = arith.constant 1 : index
    %c0_197 = arith.constant 0 : index
    %c0_198 = arith.constant 0 : index
    %461 = vector.load %arg21[%c1_196, %c0_197, %c0_198] : memref<4x64x32xbf16, #tpu.memory_space<vmem>>, vector<1x64x32xbf16>
    %462 = vector.shape_cast %461 : vector<1x64x32xbf16> to vector<64x32xbf16>
    %463 = arith.truncf %451 : vector<16x64xf32> to vector<16x64xbf16>
    %cst_199 = arith.constant dense<0.000000e+00> : vector<16x32xf32>
    %464 = tpu.matmul %463, %462, %cst_199 {dimension_numbers = #tpu.dot_dimension_numbers<[1], [0], [0], [1], [0, 0, 1, 1], [], []>} : vector<16x64xbf16>, vector<64x32xbf16>, vector<16x32xf32> -> vector<16x32xf32>
    %465 = arith.addf %307, %464 : vector<16x32xf32>
    %c1_200 = arith.constant 1 : index
    %c0_201 = arith.constant 0 : index
    %c0_202 = arith.constant 0 : index
    %466 = vector.load %arg22[%c1_200, %c0_201, %c0_202] : memref<4x1x32xf32, #tpu.memory_space<vmem>>, vector<1x1x32xf32>
    %467 = vector.shape_cast %466 : vector<1x1x32xf32> to vector<1x32xf32>
    %468 = vector.broadcast %467 : vector<1x32xf32> to vector<16x32xf32>
    %469 = arith.addf %465, %468 : vector<16x32xf32>
    %c2 = arith.constant 2 : index
    %c0_203 = arith.constant 0 : index
    %c0_204 = arith.constant 0 : index
    %470 = vector.load %arg15[%c2, %c0_203, %c0_204] : memref<4x1x32xf32, #tpu.memory_space<vmem>>, vector<1x1x32xf32>
    %471 = vector.shape_cast %470 : vector<1x1x32xf32> to vector<1x32xf32>
    %c2_205 = arith.constant 2 : index
    %c0_206 = arith.constant 0 : index
    %c0_207 = arith.constant 0 : index
    %472 = vector.load %arg16[%c2_205, %c0_206, %c0_207] : memref<4x1x32xf32, #tpu.memory_space<vmem>>, vector<1x1x32xf32>
    %473 = vector.shape_cast %472 : vector<1x1x32xf32> to vector<1x32xf32>
    %cst_208 = arith.constant dense<0.000000e+00> : vector<16xf32>
    %474 = vector.multi_reduction <add>, %460, %cst_208 [1] : vector<16x32xf32> to vector<16xf32>
    %475 = vector.shape_cast %474 : vector<16xf32> to vector<16x1xf32>
    %cst_209 = arith.constant 3.200000e+01 : f32
    %476 = vector.broadcast %cst_209 : f32 to vector<16x1xf32>
    %477 = arith.divf %475, %476 : vector<16x1xf32>
    %478 = vector.broadcast %477 : vector<16x1xf32> to vector<16x32xf32>
    %479 = arith.subf %460, %478 : vector<16x32xf32>
    %480 = arith.mulf %479, %479 : vector<16x32xf32>
    %cst_210 = arith.constant dense<0.000000e+00> : vector<16xf32>
    %481 = vector.multi_reduction <add>, %480, %cst_210 [1] : vector<16x32xf32> to vector<16xf32>
    %482 = vector.shape_cast %481 : vector<16xf32> to vector<16x1xf32>
    %cst_211 = arith.constant 3.200000e+01 : f32
    %483 = vector.broadcast %cst_211 : f32 to vector<16x1xf32>
    %484 = arith.divf %482, %483 : vector<16x1xf32>
    %cst_212 = arith.constant 9.99999974E-6 : f32
    %485 = vector.broadcast %cst_212 : f32 to vector<16x1xf32>
    %486 = arith.addf %484, %485 : vector<16x1xf32>
    %487 = math.rsqrt %486 : vector<16x1xf32>
    %488 = vector.broadcast %487 : vector<16x1xf32> to vector<16x32xf32>
    %489 = arith.mulf %479, %488 : vector<16x32xf32>
    %490 = vector.broadcast %471 : vector<1x32xf32> to vector<16x32xf32>
    %491 = arith.mulf %489, %490 : vector<16x32xf32>
    %492 = vector.broadcast %473 : vector<1x32xf32> to vector<16x32xf32>
    %493 = arith.addf %491, %492 : vector<16x32xf32>
    %c3 = arith.constant 3 : index
    %c0_213 = arith.constant 0 : index
    %c0_214 = arith.constant 0 : index
    %494 = vector.load %arg15[%c3, %c0_213, %c0_214] : memref<4x1x32xf32, #tpu.memory_space<vmem>>, vector<1x1x32xf32>
    %495 = vector.shape_cast %494 : vector<1x1x32xf32> to vector<1x32xf32>
    %c3_215 = arith.constant 3 : index
    %c0_216 = arith.constant 0 : index
    %c0_217 = arith.constant 0 : index
    %496 = vector.load %arg16[%c3_215, %c0_216, %c0_217] : memref<4x1x32xf32, #tpu.memory_space<vmem>>, vector<1x1x32xf32>
    %497 = vector.shape_cast %496 : vector<1x1x32xf32> to vector<1x32xf32>
    %cst_218 = arith.constant dense<0.000000e+00> : vector<16xf32>
    %498 = vector.multi_reduction <add>, %469, %cst_218 [1] : vector<16x32xf32> to vector<16xf32>
    %499 = vector.shape_cast %498 : vector<16xf32> to vector<16x1xf32>
    %cst_219 = arith.constant 3.200000e+01 : f32
    %500 = vector.broadcast %cst_219 : f32 to vector<16x1xf32>
    %501 = arith.divf %499, %500 : vector<16x1xf32>
    %502 = vector.broadcast %501 : vector<16x1xf32> to vector<16x32xf32>
    %503 = arith.subf %469, %502 : vector<16x32xf32>
    %504 = arith.mulf %503, %503 : vector<16x32xf32>
    %cst_220 = arith.constant dense<0.000000e+00> : vector<16xf32>
    %505 = vector.multi_reduction <add>, %504, %cst_220 [1] : vector<16x32xf32> to vector<16xf32>
    %506 = vector.shape_cast %505 : vector<16xf32> to vector<16x1xf32>
    %cst_221 = arith.constant 3.200000e+01 : f32
    %507 = vector.broadcast %cst_221 : f32 to vector<16x1xf32>
    %508 = arith.divf %506, %507 : vector<16x1xf32>
    %cst_222 = arith.constant 9.99999974E-6 : f32
    %509 = vector.broadcast %cst_222 : f32 to vector<16x1xf32>
    %510 = arith.addf %508, %509 : vector<16x1xf32>
    %511 = math.rsqrt %510 : vector<16x1xf32>
    %512 = vector.broadcast %511 : vector<16x1xf32> to vector<16x32xf32>
    %513 = arith.mulf %503, %512 : vector<16x32xf32>
    %514 = vector.broadcast %495 : vector<1x32xf32> to vector<16x32xf32>
    %515 = arith.mulf %513, %514 : vector<16x32xf32>
    %516 = vector.broadcast %497 : vector<1x32xf32> to vector<16x32xf32>
    %517 = arith.addf %515, %516 : vector<16x32xf32>
    %c2_223 = arith.constant 2 : index
    %c0_224 = arith.constant 0 : index
    %c0_225 = arith.constant 0 : index
    %518 = vector.load %arg7[%c2_223, %c0_224, %c0_225] : memref<4x32x32xbf16, #tpu.memory_space<vmem>>, vector<1x32x32xbf16>
    %519 = vector.shape_cast %518 : vector<1x32x32xbf16> to vector<32x32xbf16>
    %520 = arith.truncf %493 : vector<16x32xf32> to vector<16x32xbf16>
    %cst_226 = arith.constant dense<0.000000e+00> : vector<16x32xf32>
    %521 = tpu.matmul %520, %519, %cst_226 {dimension_numbers = #tpu.dot_dimension_numbers<[1], [0], [0], [1], [0, 0, 1, 1], [], []>} : vector<16x32xbf16>, vector<32x32xbf16>, vector<16x32xf32> -> vector<16x32xf32>
    %c2_227 = arith.constant 2 : index
    %c0_228 = arith.constant 0 : index
    %c0_229 = arith.constant 0 : index
    %522 = vector.load %arg8[%c2_227, %c0_228, %c0_229] : memref<4x1x32xf32, #tpu.memory_space<vmem>>, vector<1x1x32xf32>
    %523 = vector.shape_cast %522 : vector<1x1x32xf32> to vector<1x32xf32>
    %524 = vector.broadcast %523 : vector<1x32xf32> to vector<16x32xf32>
    %525 = arith.addf %521, %524 : vector<16x32xf32>
    %cst_230 = arith.constant 0.353553385 : f32
    %526 = vector.broadcast %cst_230 : f32 to vector<16x32xf32>
    %527 = arith.mulf %525, %526 : vector<16x32xf32>
    %c3_231 = arith.constant 3 : index
    %c0_232 = arith.constant 0 : index
    %c0_233 = arith.constant 0 : index
    %528 = vector.load %arg7[%c3_231, %c0_232, %c0_233] : memref<4x32x32xbf16, #tpu.memory_space<vmem>>, vector<1x32x32xbf16>
    %529 = vector.shape_cast %528 : vector<1x32x32xbf16> to vector<32x32xbf16>
    %530 = arith.truncf %517 : vector<16x32xf32> to vector<16x32xbf16>
    %cst_234 = arith.constant dense<0.000000e+00> : vector<16x32xf32>
    %531 = tpu.matmul %530, %529, %cst_234 {dimension_numbers = #tpu.dot_dimension_numbers<[1], [0], [0], [1], [0, 0, 1, 1], [], []>} : vector<16x32xbf16>, vector<32x32xbf16>, vector<16x32xf32> -> vector<16x32xf32>
    %c3_235 = arith.constant 3 : index
    %c0_236 = arith.constant 0 : index
    %c0_237 = arith.constant 0 : index
    %532 = vector.load %arg8[%c3_235, %c0_236, %c0_237] : memref<4x1x32xf32, #tpu.memory_space<vmem>>, vector<1x1x32xf32>
    %533 = vector.shape_cast %532 : vector<1x1x32xf32> to vector<1x32xf32>
    %534 = vector.broadcast %533 : vector<1x32xf32> to vector<16x32xf32>
    %535 = arith.addf %531, %534 : vector<16x32xf32>
    %cst_238 = arith.constant 0.353553385 : f32
    %536 = vector.broadcast %cst_238 : f32 to vector<16x32xf32>
    %537 = arith.mulf %535, %536 : vector<16x32xf32>
    %c2_239 = arith.constant 2 : index
    %c0_240 = arith.constant 0 : index
    %c0_241 = arith.constant 0 : index
    %538 = vector.load %arg9[%c2_239, %c0_240, %c0_241] : memref<4x32x32xbf16, #tpu.memory_space<vmem>>, vector<1x32x32xbf16>
    %539 = vector.shape_cast %538 : vector<1x32x32xbf16> to vector<32x32xbf16>
    %540 = arith.truncf %493 : vector<16x32xf32> to vector<16x32xbf16>
    %cst_242 = arith.constant dense<0.000000e+00> : vector<16x32xf32>
    %541 = tpu.matmul %540, %539, %cst_242 {dimension_numbers = #tpu.dot_dimension_numbers<[1], [0], [0], [1], [0, 0, 1, 1], [], []>} : vector<16x32xbf16>, vector<32x32xbf16>, vector<16x32xf32> -> vector<16x32xf32>
    %c2_243 = arith.constant 2 : index
    %c0_244 = arith.constant 0 : index
    %c0_245 = arith.constant 0 : index
    %542 = vector.load %arg10[%c2_243, %c0_244, %c0_245] : memref<4x1x32xf32, #tpu.memory_space<vmem>>, vector<1x1x32xf32>
    %543 = vector.shape_cast %542 : vector<1x1x32xf32> to vector<1x32xf32>
    %544 = vector.broadcast %543 : vector<1x32xf32> to vector<16x32xf32>
    %545 = arith.addf %541, %544 : vector<16x32xf32>
    %c3_246 = arith.constant 3 : index
    %c0_247 = arith.constant 0 : index
    %c0_248 = arith.constant 0 : index
    %546 = vector.load %arg9[%c3_246, %c0_247, %c0_248] : memref<4x32x32xbf16, #tpu.memory_space<vmem>>, vector<1x32x32xbf16>
    %547 = vector.shape_cast %546 : vector<1x32x32xbf16> to vector<32x32xbf16>
    %548 = arith.truncf %517 : vector<16x32xf32> to vector<16x32xbf16>
    %cst_249 = arith.constant dense<0.000000e+00> : vector<16x32xf32>
    %549 = tpu.matmul %548, %547, %cst_249 {dimension_numbers = #tpu.dot_dimension_numbers<[1], [0], [0], [1], [0, 0, 1, 1], [], []>} : vector<16x32xbf16>, vector<32x32xbf16>, vector<16x32xf32> -> vector<16x32xf32>
    %c3_250 = arith.constant 3 : index
    %c0_251 = arith.constant 0 : index
    %c0_252 = arith.constant 0 : index
    %550 = vector.load %arg10[%c3_250, %c0_251, %c0_252] : memref<4x1x32xf32, #tpu.memory_space<vmem>>, vector<1x1x32xf32>
    %551 = vector.shape_cast %550 : vector<1x1x32xf32> to vector<1x32xf32>
    %552 = vector.broadcast %551 : vector<1x32xf32> to vector<16x32xf32>
    %553 = arith.addf %549, %552 : vector<16x32xf32>
    %c2_253 = arith.constant 2 : index
    %c0_254 = arith.constant 0 : index
    %c0_255 = arith.constant 0 : index
    %554 = vector.load %arg11[%c2_253, %c0_254, %c0_255] : memref<4x32x32xbf16, #tpu.memory_space<vmem>>, vector<1x32x32xbf16>
    %555 = vector.shape_cast %554 : vector<1x32x32xbf16> to vector<32x32xbf16>
    %556 = arith.truncf %493 : vector<16x32xf32> to vector<16x32xbf16>
    %cst_256 = arith.constant dense<0.000000e+00> : vector<16x32xf32>
    %557 = tpu.matmul %556, %555, %cst_256 {dimension_numbers = #tpu.dot_dimension_numbers<[1], [0], [0], [1], [0, 0, 1, 1], [], []>} : vector<16x32xbf16>, vector<32x32xbf16>, vector<16x32xf32> -> vector<16x32xf32>
    %c2_257 = arith.constant 2 : index
    %c0_258 = arith.constant 0 : index
    %c0_259 = arith.constant 0 : index
    %558 = vector.load %arg12[%c2_257, %c0_258, %c0_259] : memref<4x1x32xf32, #tpu.memory_space<vmem>>, vector<1x1x32xf32>
    %559 = vector.shape_cast %558 : vector<1x1x32xf32> to vector<1x32xf32>
    %560 = vector.broadcast %559 : vector<1x32xf32> to vector<16x32xf32>
    %561 = arith.addf %557, %560 : vector<16x32xf32>
    %c3_260 = arith.constant 3 : index
    %c0_261 = arith.constant 0 : index
    %c0_262 = arith.constant 0 : index
    %562 = vector.load %arg11[%c3_260, %c0_261, %c0_262] : memref<4x32x32xbf16, #tpu.memory_space<vmem>>, vector<1x32x32xbf16>
    %563 = vector.shape_cast %562 : vector<1x32x32xbf16> to vector<32x32xbf16>
    %564 = arith.truncf %517 : vector<16x32xf32> to vector<16x32xbf16>
    %cst_263 = arith.constant dense<0.000000e+00> : vector<16x32xf32>
    %565 = tpu.matmul %564, %563, %cst_263 {dimension_numbers = #tpu.dot_dimension_numbers<[1], [0], [0], [1], [0, 0, 1, 1], [], []>} : vector<16x32xbf16>, vector<32x32xbf16>, vector<16x32xf32> -> vector<16x32xf32>
    %c3_264 = arith.constant 3 : index
    %c0_265 = arith.constant 0 : index
    %c0_266 = arith.constant 0 : index
    %566 = vector.load %arg12[%c3_264, %c0_265, %c0_266] : memref<4x1x32xf32, #tpu.memory_space<vmem>>, vector<1x1x32xf32>
    %567 = vector.shape_cast %566 : vector<1x1x32xf32> to vector<1x32xf32>
    %568 = vector.broadcast %567 : vector<1x32xf32> to vector<16x32xf32>
    %569 = arith.addf %565, %568 : vector<16x32xf32>
    %570 = vector.extract_strided_slice %527 {offsets = [0, 0], sizes = [8, 32], strides = [1, 1]} : vector<16x32xf32> to vector<8x32xf32>
    %571 = vector.extract_strided_slice %537 {offsets = [0, 0], sizes = [8, 32], strides = [1, 1]} : vector<16x32xf32> to vector<8x32xf32>
    %572 = tpu.concatenate %570, %571 in 0 : vector<8x32xf32>, vector<8x32xf32> -> vector<16x32xf32>
    %573 = arith.truncf %572 : vector<16x32xf32> to vector<16x32xbf16>
    %574 = vector.extract_strided_slice %545 {offsets = [0, 0], sizes = [8, 32], strides = [1, 1]} : vector<16x32xf32> to vector<8x32xf32>
    %575 = vector.extract_strided_slice %553 {offsets = [0, 0], sizes = [8, 32], strides = [1, 1]} : vector<16x32xf32> to vector<8x32xf32>
    %576 = tpu.concatenate %574, %575 in 0 : vector<8x32xf32>, vector<8x32xf32> -> vector<16x32xf32>
    %577 = arith.truncf %576 : vector<16x32xf32> to vector<16x32xbf16>
    %578 = vector.extract_strided_slice %561 {offsets = [0, 0], sizes = [8, 32], strides = [1, 1]} : vector<16x32xf32> to vector<8x32xf32>
    %579 = vector.extract_strided_slice %569 {offsets = [0, 0], sizes = [8, 32], strides = [1, 1]} : vector<16x32xf32> to vector<8x32xf32>
    %580 = tpu.concatenate %578, %579 in 0 : vector<8x32xf32>, vector<8x32xf32> -> vector<16x32xf32>
    %581 = arith.truncf %580 : vector<16x32xf32> to vector<16x32xbf16>
    %582 = vector.extract_strided_slice %9 {offsets = [0, 0, 0], sizes = [1, 1, 16], strides = [1, 1, 1]} : vector<2x1x16xf32> to vector<1x1x16xf32>
    %583 = vector.shape_cast %582 : vector<1x1x16xf32> to vector<1x16xf32>
    %584 = vector.extract_strided_slice %573 {offsets = [0, 0], sizes = [16, 8], strides = [1, 1]} : vector<16x32xbf16> to vector<16x8xbf16>
    %585 = vector.extract_strided_slice %577 {offsets = [0, 0], sizes = [16, 8], strides = [1, 1]} : vector<16x32xbf16> to vector<16x8xbf16>
    %cst_267 = arith.constant dense<0.000000e+00> : vector<16x16xf32>
    %586 = tpu.matmul %584, %585, %cst_267 {dimension_numbers = #tpu.dot_dimension_numbers<[1], [1], [0], [0], [0, 0, 1, 0], [], []>} : vector<16x8xbf16>, vector<16x8xbf16>, vector<16x16xf32> -> vector<16x16xf32>
    %587 = vector.broadcast %583 : vector<1x16xf32> to vector<16x16xf32>
    %588 = arith.addf %586, %587 : vector<16x16xf32>
    %cst_268 = arith.constant dense<0xFF800000> : vector<16xf32>
    %589 = vector.multi_reduction <maximumf>, %588, %cst_268 [1] : vector<16x16xf32> to vector<16xf32>
    %590 = vector.shape_cast %589 : vector<16xf32> to vector<16x1xf32>
    %591 = vector.broadcast %590 : vector<16x1xf32> to vector<16x16xf32>
    %592 = arith.subf %588, %591 : vector<16x16xf32>
    %593 = math.exp %592 : vector<16x16xf32>
    %cst_269 = arith.constant dense<0.000000e+00> : vector<16xf32>
    %594 = vector.multi_reduction <add>, %593, %cst_269 [1] : vector<16x16xf32> to vector<16xf32>
    %595 = vector.shape_cast %594 : vector<16xf32> to vector<16x1xf32>
    %596 = tpu.reciprocal %595 {approx = true} : vector<16x1xf32> -> vector<16x1xf32>
    %597 = vector.broadcast %596 : vector<16x1xf32> to vector<16x16xf32>
    %598 = arith.mulf %593, %597 : vector<16x16xf32>
    %599 = arith.truncf %598 : vector<16x16xf32> to vector<16x16xbf16>
    %600 = vector.extract_strided_slice %581 {offsets = [0, 0], sizes = [16, 8], strides = [1, 1]} : vector<16x32xbf16> to vector<16x8xbf16>
    %cst_270 = arith.constant dense<0.000000e+00> : vector<16x8xf32>
    %601 = tpu.matmul %599, %600, %cst_270 {dimension_numbers = #tpu.dot_dimension_numbers<[1], [0], [0], [1], [0, 0, 1, 1], [], []>} : vector<16x16xbf16>, vector<16x8xbf16>, vector<16x8xf32> -> vector<16x8xf32>
    %602 = vector.extract_strided_slice %573 {offsets = [0, 8], sizes = [16, 8], strides = [1, 1]} : vector<16x32xbf16> to vector<16x8xbf16>
    %603 = vector.extract_strided_slice %577 {offsets = [0, 8], sizes = [16, 8], strides = [1, 1]} : vector<16x32xbf16> to vector<16x8xbf16>
    %cst_271 = arith.constant dense<0.000000e+00> : vector<16x16xf32>
    %604 = tpu.matmul %602, %603, %cst_271 {dimension_numbers = #tpu.dot_dimension_numbers<[1], [1], [0], [0], [0, 0, 1, 0], [], []>} : vector<16x8xbf16>, vector<16x8xbf16>, vector<16x16xf32> -> vector<16x16xf32>
    %605 = vector.broadcast %583 : vector<1x16xf32> to vector<16x16xf32>
    %606 = arith.addf %604, %605 : vector<16x16xf32>
    %cst_272 = arith.constant dense<0xFF800000> : vector<16xf32>
    %607 = vector.multi_reduction <maximumf>, %606, %cst_272 [1] : vector<16x16xf32> to vector<16xf32>
    %608 = vector.shape_cast %607 : vector<16xf32> to vector<16x1xf32>
    %609 = vector.broadcast %608 : vector<16x1xf32> to vector<16x16xf32>
    %610 = arith.subf %606, %609 : vector<16x16xf32>
    %611 = math.exp %610 : vector<16x16xf32>
    %cst_273 = arith.constant dense<0.000000e+00> : vector<16xf32>
    %612 = vector.multi_reduction <add>, %611, %cst_273 [1] : vector<16x16xf32> to vector<16xf32>
    %613 = vector.shape_cast %612 : vector<16xf32> to vector<16x1xf32>
    %614 = tpu.reciprocal %613 {approx = true} : vector<16x1xf32> -> vector<16x1xf32>
    %615 = vector.broadcast %614 : vector<16x1xf32> to vector<16x16xf32>
    %616 = arith.mulf %611, %615 : vector<16x16xf32>
    %617 = arith.truncf %616 : vector<16x16xf32> to vector<16x16xbf16>
    %618 = vector.extract_strided_slice %581 {offsets = [0, 8], sizes = [16, 8], strides = [1, 1]} : vector<16x32xbf16> to vector<16x8xbf16>
    %cst_274 = arith.constant dense<0.000000e+00> : vector<16x8xf32>
    %619 = tpu.matmul %617, %618, %cst_274 {dimension_numbers = #tpu.dot_dimension_numbers<[1], [0], [0], [1], [0, 0, 1, 1], [], []>} : vector<16x16xbf16>, vector<16x8xbf16>, vector<16x8xf32> -> vector<16x8xf32>
    %620 = vector.extract_strided_slice %573 {offsets = [0, 16], sizes = [16, 8], strides = [1, 1]} : vector<16x32xbf16> to vector<16x8xbf16>
    %621 = vector.extract_strided_slice %577 {offsets = [0, 16], sizes = [16, 8], strides = [1, 1]} : vector<16x32xbf16> to vector<16x8xbf16>
    %cst_275 = arith.constant dense<0.000000e+00> : vector<16x16xf32>
    %622 = tpu.matmul %620, %621, %cst_275 {dimension_numbers = #tpu.dot_dimension_numbers<[1], [1], [0], [0], [0, 0, 1, 0], [], []>} : vector<16x8xbf16>, vector<16x8xbf16>, vector<16x16xf32> -> vector<16x16xf32>
    %623 = vector.broadcast %583 : vector<1x16xf32> to vector<16x16xf32>
    %624 = arith.addf %622, %623 : vector<16x16xf32>
    %cst_276 = arith.constant dense<0xFF800000> : vector<16xf32>
    %625 = vector.multi_reduction <maximumf>, %624, %cst_276 [1] : vector<16x16xf32> to vector<16xf32>
    %626 = vector.shape_cast %625 : vector<16xf32> to vector<16x1xf32>
    %627 = vector.broadcast %626 : vector<16x1xf32> to vector<16x16xf32>
    %628 = arith.subf %624, %627 : vector<16x16xf32>
    %629 = math.exp %628 : vector<16x16xf32>
    %cst_277 = arith.constant dense<0.000000e+00> : vector<16xf32>
    %630 = vector.multi_reduction <add>, %629, %cst_277 [1] : vector<16x16xf32> to vector<16xf32>
    %631 = vector.shape_cast %630 : vector<16xf32> to vector<16x1xf32>
    %632 = tpu.reciprocal %631 {approx = true} : vector<16x1xf32> -> vector<16x1xf32>
    %633 = vector.broadcast %632 : vector<16x1xf32> to vector<16x16xf32>
    %634 = arith.mulf %629, %633 : vector<16x16xf32>
    %635 = arith.truncf %634 : vector<16x16xf32> to vector<16x16xbf16>
    %636 = vector.extract_strided_slice %581 {offsets = [0, 16], sizes = [16, 8], strides = [1, 1]} : vector<16x32xbf16> to vector<16x8xbf16>
    %cst_278 = arith.constant dense<0.000000e+00> : vector<16x8xf32>
    %637 = tpu.matmul %635, %636, %cst_278 {dimension_numbers = #tpu.dot_dimension_numbers<[1], [0], [0], [1], [0, 0, 1, 1], [], []>} : vector<16x16xbf16>, vector<16x8xbf16>, vector<16x8xf32> -> vector<16x8xf32>
    %638 = vector.extract_strided_slice %573 {offsets = [0, 24], sizes = [16, 8], strides = [1, 1]} : vector<16x32xbf16> to vector<16x8xbf16>
    %639 = vector.extract_strided_slice %577 {offsets = [0, 24], sizes = [16, 8], strides = [1, 1]} : vector<16x32xbf16> to vector<16x8xbf16>
    %cst_279 = arith.constant dense<0.000000e+00> : vector<16x16xf32>
    %640 = tpu.matmul %638, %639, %cst_279 {dimension_numbers = #tpu.dot_dimension_numbers<[1], [1], [0], [0], [0, 0, 1, 0], [], []>} : vector<16x8xbf16>, vector<16x8xbf16>, vector<16x16xf32> -> vector<16x16xf32>
    %641 = vector.broadcast %583 : vector<1x16xf32> to vector<16x16xf32>
    %642 = arith.addf %640, %641 : vector<16x16xf32>
    %cst_280 = arith.constant dense<0xFF800000> : vector<16xf32>
    %643 = vector.multi_reduction <maximumf>, %642, %cst_280 [1] : vector<16x16xf32> to vector<16xf32>
    %644 = vector.shape_cast %643 : vector<16xf32> to vector<16x1xf32>
    %645 = vector.broadcast %644 : vector<16x1xf32> to vector<16x16xf32>
    %646 = arith.subf %642, %645 : vector<16x16xf32>
    %647 = math.exp %646 : vector<16x16xf32>
    %cst_281 = arith.constant dense<0.000000e+00> : vector<16xf32>
    %648 = vector.multi_reduction <add>, %647, %cst_281 [1] : vector<16x16xf32> to vector<16xf32>
    %649 = vector.shape_cast %648 : vector<16xf32> to vector<16x1xf32>
    %650 = tpu.reciprocal %649 {approx = true} : vector<16x1xf32> -> vector<16x1xf32>
    %651 = vector.broadcast %650 : vector<16x1xf32> to vector<16x16xf32>
    %652 = arith.mulf %647, %651 : vector<16x16xf32>
    %653 = arith.truncf %652 : vector<16x16xf32> to vector<16x16xbf16>
    %654 = vector.extract_strided_slice %581 {offsets = [0, 24], sizes = [16, 8], strides = [1, 1]} : vector<16x32xbf16> to vector<16x8xbf16>
    %cst_282 = arith.constant dense<0.000000e+00> : vector<16x8xf32>
    %655 = tpu.matmul %653, %654, %cst_282 {dimension_numbers = #tpu.dot_dimension_numbers<[1], [0], [0], [1], [0, 0, 1, 1], [], []>} : vector<16x16xbf16>, vector<16x8xbf16>, vector<16x8xf32> -> vector<16x8xf32>
    %656 = tpu.concatenate %601, %619, %637, %655 in 1 : vector<16x8xf32>, vector<16x8xf32>, vector<16x8xf32>, vector<16x8xf32> -> vector<16x32xf32>
    %657 = vector.extract_strided_slice %656 {offsets = [0, 0], sizes = [8, 32], strides = [1, 1]} : vector<16x32xf32> to vector<8x32xf32>
    %658 = vector.extract_strided_slice %656 {offsets = [8, 0], sizes = [8, 32], strides = [1, 1]} : vector<16x32xf32> to vector<8x32xf32>
    %659 = vector.extract_strided_slice %527 {offsets = [8, 0], sizes = [8, 32], strides = [1, 1]} : vector<16x32xf32> to vector<8x32xf32>
    %660 = vector.extract_strided_slice %537 {offsets = [8, 0], sizes = [8, 32], strides = [1, 1]} : vector<16x32xf32> to vector<8x32xf32>
    %661 = tpu.concatenate %659, %660 in 0 : vector<8x32xf32>, vector<8x32xf32> -> vector<16x32xf32>
    %662 = arith.truncf %661 : vector<16x32xf32> to vector<16x32xbf16>
    %663 = vector.extract_strided_slice %545 {offsets = [8, 0], sizes = [8, 32], strides = [1, 1]} : vector<16x32xf32> to vector<8x32xf32>
    %664 = vector.extract_strided_slice %553 {offsets = [8, 0], sizes = [8, 32], strides = [1, 1]} : vector<16x32xf32> to vector<8x32xf32>
    %665 = tpu.concatenate %663, %664 in 0 : vector<8x32xf32>, vector<8x32xf32> -> vector<16x32xf32>
    %666 = arith.truncf %665 : vector<16x32xf32> to vector<16x32xbf16>
    %667 = vector.extract_strided_slice %561 {offsets = [8, 0], sizes = [8, 32], strides = [1, 1]} : vector<16x32xf32> to vector<8x32xf32>
    %668 = vector.extract_strided_slice %569 {offsets = [8, 0], sizes = [8, 32], strides = [1, 1]} : vector<16x32xf32> to vector<8x32xf32>
    %669 = tpu.concatenate %667, %668 in 0 : vector<8x32xf32>, vector<8x32xf32> -> vector<16x32xf32>
    %670 = arith.truncf %669 : vector<16x32xf32> to vector<16x32xbf16>
    %671 = vector.extract_strided_slice %9 {offsets = [1, 0, 0], sizes = [1, 1, 16], strides = [1, 1, 1]} : vector<2x1x16xf32> to vector<1x1x16xf32>
    %672 = vector.shape_cast %671 : vector<1x1x16xf32> to vector<1x16xf32>
    %673 = vector.extract_strided_slice %662 {offsets = [0, 0], sizes = [16, 8], strides = [1, 1]} : vector<16x32xbf16> to vector<16x8xbf16>
    %674 = vector.extract_strided_slice %666 {offsets = [0, 0], sizes = [16, 8], strides = [1, 1]} : vector<16x32xbf16> to vector<16x8xbf16>
    %cst_283 = arith.constant dense<0.000000e+00> : vector<16x16xf32>
    %675 = tpu.matmul %673, %674, %cst_283 {dimension_numbers = #tpu.dot_dimension_numbers<[1], [1], [0], [0], [0, 0, 1, 0], [], []>} : vector<16x8xbf16>, vector<16x8xbf16>, vector<16x16xf32> -> vector<16x16xf32>
    %676 = vector.broadcast %672 : vector<1x16xf32> to vector<16x16xf32>
    %677 = arith.addf %675, %676 : vector<16x16xf32>
    %cst_284 = arith.constant dense<0xFF800000> : vector<16xf32>
    %678 = vector.multi_reduction <maximumf>, %677, %cst_284 [1] : vector<16x16xf32> to vector<16xf32>
    %679 = vector.shape_cast %678 : vector<16xf32> to vector<16x1xf32>
    %680 = vector.broadcast %679 : vector<16x1xf32> to vector<16x16xf32>
    %681 = arith.subf %677, %680 : vector<16x16xf32>
    %682 = math.exp %681 : vector<16x16xf32>
    %cst_285 = arith.constant dense<0.000000e+00> : vector<16xf32>
    %683 = vector.multi_reduction <add>, %682, %cst_285 [1] : vector<16x16xf32> to vector<16xf32>
    %684 = vector.shape_cast %683 : vector<16xf32> to vector<16x1xf32>
    %685 = tpu.reciprocal %684 {approx = true} : vector<16x1xf32> -> vector<16x1xf32>
    %686 = vector.broadcast %685 : vector<16x1xf32> to vector<16x16xf32>
    %687 = arith.mulf %682, %686 : vector<16x16xf32>
    %688 = arith.truncf %687 : vector<16x16xf32> to vector<16x16xbf16>
    %689 = vector.extract_strided_slice %670 {offsets = [0, 0], sizes = [16, 8], strides = [1, 1]} : vector<16x32xbf16> to vector<16x8xbf16>
    %cst_286 = arith.constant dense<0.000000e+00> : vector<16x8xf32>
    %690 = tpu.matmul %688, %689, %cst_286 {dimension_numbers = #tpu.dot_dimension_numbers<[1], [0], [0], [1], [0, 0, 1, 1], [], []>} : vector<16x16xbf16>, vector<16x8xbf16>, vector<16x8xf32> -> vector<16x8xf32>
    %691 = vector.extract_strided_slice %662 {offsets = [0, 8], sizes = [16, 8], strides = [1, 1]} : vector<16x32xbf16> to vector<16x8xbf16>
    %692 = vector.extract_strided_slice %666 {offsets = [0, 8], sizes = [16, 8], strides = [1, 1]} : vector<16x32xbf16> to vector<16x8xbf16>
    %cst_287 = arith.constant dense<0.000000e+00> : vector<16x16xf32>
    %693 = tpu.matmul %691, %692, %cst_287 {dimension_numbers = #tpu.dot_dimension_numbers<[1], [1], [0], [0], [0, 0, 1, 0], [], []>} : vector<16x8xbf16>, vector<16x8xbf16>, vector<16x16xf32> -> vector<16x16xf32>
    %694 = vector.broadcast %672 : vector<1x16xf32> to vector<16x16xf32>
    %695 = arith.addf %693, %694 : vector<16x16xf32>
    %cst_288 = arith.constant dense<0xFF800000> : vector<16xf32>
    %696 = vector.multi_reduction <maximumf>, %695, %cst_288 [1] : vector<16x16xf32> to vector<16xf32>
    %697 = vector.shape_cast %696 : vector<16xf32> to vector<16x1xf32>
    %698 = vector.broadcast %697 : vector<16x1xf32> to vector<16x16xf32>
    %699 = arith.subf %695, %698 : vector<16x16xf32>
    %700 = math.exp %699 : vector<16x16xf32>
    %cst_289 = arith.constant dense<0.000000e+00> : vector<16xf32>
    %701 = vector.multi_reduction <add>, %700, %cst_289 [1] : vector<16x16xf32> to vector<16xf32>
    %702 = vector.shape_cast %701 : vector<16xf32> to vector<16x1xf32>
    %703 = tpu.reciprocal %702 {approx = true} : vector<16x1xf32> -> vector<16x1xf32>
    %704 = vector.broadcast %703 : vector<16x1xf32> to vector<16x16xf32>
    %705 = arith.mulf %700, %704 : vector<16x16xf32>
    %706 = arith.truncf %705 : vector<16x16xf32> to vector<16x16xbf16>
    %707 = vector.extract_strided_slice %670 {offsets = [0, 8], sizes = [16, 8], strides = [1, 1]} : vector<16x32xbf16> to vector<16x8xbf16>
    %cst_290 = arith.constant dense<0.000000e+00> : vector<16x8xf32>
    %708 = tpu.matmul %706, %707, %cst_290 {dimension_numbers = #tpu.dot_dimension_numbers<[1], [0], [0], [1], [0, 0, 1, 1], [], []>} : vector<16x16xbf16>, vector<16x8xbf16>, vector<16x8xf32> -> vector<16x8xf32>
    %709 = vector.extract_strided_slice %662 {offsets = [0, 16], sizes = [16, 8], strides = [1, 1]} : vector<16x32xbf16> to vector<16x8xbf16>
    %710 = vector.extract_strided_slice %666 {offsets = [0, 16], sizes = [16, 8], strides = [1, 1]} : vector<16x32xbf16> to vector<16x8xbf16>
    %cst_291 = arith.constant dense<0.000000e+00> : vector<16x16xf32>
    %711 = tpu.matmul %709, %710, %cst_291 {dimension_numbers = #tpu.dot_dimension_numbers<[1], [1], [0], [0], [0, 0, 1, 0], [], []>} : vector<16x8xbf16>, vector<16x8xbf16>, vector<16x16xf32> -> vector<16x16xf32>
    %712 = vector.broadcast %672 : vector<1x16xf32> to vector<16x16xf32>
    %713 = arith.addf %711, %712 : vector<16x16xf32>
    %cst_292 = arith.constant dense<0xFF800000> : vector<16xf32>
    %714 = vector.multi_reduction <maximumf>, %713, %cst_292 [1] : vector<16x16xf32> to vector<16xf32>
    %715 = vector.shape_cast %714 : vector<16xf32> to vector<16x1xf32>
    %716 = vector.broadcast %715 : vector<16x1xf32> to vector<16x16xf32>
    %717 = arith.subf %713, %716 : vector<16x16xf32>
    %718 = math.exp %717 : vector<16x16xf32>
    %cst_293 = arith.constant dense<0.000000e+00> : vector<16xf32>
    %719 = vector.multi_reduction <add>, %718, %cst_293 [1] : vector<16x16xf32> to vector<16xf32>
    %720 = vector.shape_cast %719 : vector<16xf32> to vector<16x1xf32>
    %721 = tpu.reciprocal %720 {approx = true} : vector<16x1xf32> -> vector<16x1xf32>
    %722 = vector.broadcast %721 : vector<16x1xf32> to vector<16x16xf32>
    %723 = arith.mulf %718, %722 : vector<16x16xf32>
    %724 = arith.truncf %723 : vector<16x16xf32> to vector<16x16xbf16>
    %725 = vector.extract_strided_slice %670 {offsets = [0, 16], sizes = [16, 8], strides = [1, 1]} : vector<16x32xbf16> to vector<16x8xbf16>
    %cst_294 = arith.constant dense<0.000000e+00> : vector<16x8xf32>
    %726 = tpu.matmul %724, %725, %cst_294 {dimension_numbers = #tpu.dot_dimension_numbers<[1], [0], [0], [1], [0, 0, 1, 1], [], []>} : vector<16x16xbf16>, vector<16x8xbf16>, vector<16x8xf32> -> vector<16x8xf32>
    %727 = vector.extract_strided_slice %662 {offsets = [0, 24], sizes = [16, 8], strides = [1, 1]} : vector<16x32xbf16> to vector<16x8xbf16>
    %728 = vector.extract_strided_slice %666 {offsets = [0, 24], sizes = [16, 8], strides = [1, 1]} : vector<16x32xbf16> to vector<16x8xbf16>
    %cst_295 = arith.constant dense<0.000000e+00> : vector<16x16xf32>
    %729 = tpu.matmul %727, %728, %cst_295 {dimension_numbers = #tpu.dot_dimension_numbers<[1], [1], [0], [0], [0, 0, 1, 0], [], []>} : vector<16x8xbf16>, vector<16x8xbf16>, vector<16x16xf32> -> vector<16x16xf32>
    %730 = vector.broadcast %672 : vector<1x16xf32> to vector<16x16xf32>
    %731 = arith.addf %729, %730 : vector<16x16xf32>
    %cst_296 = arith.constant dense<0xFF800000> : vector<16xf32>
    %732 = vector.multi_reduction <maximumf>, %731, %cst_296 [1] : vector<16x16xf32> to vector<16xf32>
    %733 = vector.shape_cast %732 : vector<16xf32> to vector<16x1xf32>
    %734 = vector.broadcast %733 : vector<16x1xf32> to vector<16x16xf32>
    %735 = arith.subf %731, %734 : vector<16x16xf32>
    %736 = math.exp %735 : vector<16x16xf32>
    %cst_297 = arith.constant dense<0.000000e+00> : vector<16xf32>
    %737 = vector.multi_reduction <add>, %736, %cst_297 [1] : vector<16x16xf32> to vector<16xf32>
    %738 = vector.shape_cast %737 : vector<16xf32> to vector<16x1xf32>
    %739 = tpu.reciprocal %738 {approx = true} : vector<16x1xf32> -> vector<16x1xf32>
    %740 = vector.broadcast %739 : vector<16x1xf32> to vector<16x16xf32>
    %741 = arith.mulf %736, %740 : vector<16x16xf32>
    %742 = arith.truncf %741 : vector<16x16xf32> to vector<16x16xbf16>
    %743 = vector.extract_strided_slice %670 {offsets = [0, 24], sizes = [16, 8], strides = [1, 1]} : vector<16x32xbf16> to vector<16x8xbf16>
    %cst_298 = arith.constant dense<0.000000e+00> : vector<16x8xf32>
    %744 = tpu.matmul %742, %743, %cst_298 {dimension_numbers = #tpu.dot_dimension_numbers<[1], [0], [0], [1], [0, 0, 1, 1], [], []>} : vector<16x16xbf16>, vector<16x8xbf16>, vector<16x8xf32> -> vector<16x8xf32>
    %745 = tpu.concatenate %690, %708, %726, %744 in 1 : vector<16x8xf32>, vector<16x8xf32>, vector<16x8xf32>, vector<16x8xf32> -> vector<16x32xf32>
    %746 = vector.extract_strided_slice %745 {offsets = [0, 0], sizes = [8, 32], strides = [1, 1]} : vector<16x32xf32> to vector<8x32xf32>
    %747 = vector.extract_strided_slice %745 {offsets = [8, 0], sizes = [8, 32], strides = [1, 1]} : vector<16x32xf32> to vector<8x32xf32>
    %748 = tpu.concatenate %657, %746 in 0 : vector<8x32xf32>, vector<8x32xf32> -> vector<16x32xf32>
    %749 = tpu.concatenate %658, %747 in 0 : vector<8x32xf32>, vector<8x32xf32> -> vector<16x32xf32>
    %c2_299 = arith.constant 2 : index
    %c0_300 = arith.constant 0 : index
    %c0_301 = arith.constant 0 : index
    %750 = vector.load %arg13[%c2_299, %c0_300, %c0_301] : memref<4x32x32xbf16, #tpu.memory_space<vmem>>, vector<1x32x32xbf16>
    %751 = vector.shape_cast %750 : vector<1x32x32xbf16> to vector<32x32xbf16>
    %752 = arith.truncf %748 : vector<16x32xf32> to vector<16x32xbf16>
    %cst_302 = arith.constant dense<0.000000e+00> : vector<16x32xf32>
    %753 = tpu.matmul %752, %751, %cst_302 {dimension_numbers = #tpu.dot_dimension_numbers<[1], [0], [0], [1], [0, 0, 1, 1], [], []>} : vector<16x32xbf16>, vector<32x32xbf16>, vector<16x32xf32> -> vector<16x32xf32>
    %754 = arith.addf %460, %753 : vector<16x32xf32>
    %c2_303 = arith.constant 2 : index
    %c0_304 = arith.constant 0 : index
    %c0_305 = arith.constant 0 : index
    %755 = vector.load %arg14[%c2_303, %c0_304, %c0_305] : memref<4x1x32xf32, #tpu.memory_space<vmem>>, vector<1x1x32xf32>
    %756 = vector.shape_cast %755 : vector<1x1x32xf32> to vector<1x32xf32>
    %757 = vector.broadcast %756 : vector<1x32xf32> to vector<16x32xf32>
    %758 = arith.addf %754, %757 : vector<16x32xf32>
    %c3_306 = arith.constant 3 : index
    %c0_307 = arith.constant 0 : index
    %c0_308 = arith.constant 0 : index
    %759 = vector.load %arg13[%c3_306, %c0_307, %c0_308] : memref<4x32x32xbf16, #tpu.memory_space<vmem>>, vector<1x32x32xbf16>
    %760 = vector.shape_cast %759 : vector<1x32x32xbf16> to vector<32x32xbf16>
    %761 = arith.truncf %749 : vector<16x32xf32> to vector<16x32xbf16>
    %cst_309 = arith.constant dense<0.000000e+00> : vector<16x32xf32>
    %762 = tpu.matmul %761, %760, %cst_309 {dimension_numbers = #tpu.dot_dimension_numbers<[1], [0], [0], [1], [0, 0, 1, 1], [], []>} : vector<16x32xbf16>, vector<32x32xbf16>, vector<16x32xf32> -> vector<16x32xf32>
    %763 = arith.addf %469, %762 : vector<16x32xf32>
    %c3_310 = arith.constant 3 : index
    %c0_311 = arith.constant 0 : index
    %c0_312 = arith.constant 0 : index
    %764 = vector.load %arg14[%c3_310, %c0_311, %c0_312] : memref<4x1x32xf32, #tpu.memory_space<vmem>>, vector<1x1x32xf32>
    %765 = vector.shape_cast %764 : vector<1x1x32xf32> to vector<1x32xf32>
    %766 = vector.broadcast %765 : vector<1x32xf32> to vector<16x32xf32>
    %767 = arith.addf %763, %766 : vector<16x32xf32>
    %c2_313 = arith.constant 2 : index
    %c0_314 = arith.constant 0 : index
    %c0_315 = arith.constant 0 : index
    %768 = vector.load %arg17[%c2_313, %c0_314, %c0_315] : memref<4x1x32xf32, #tpu.memory_space<vmem>>, vector<1x1x32xf32>
    %769 = vector.shape_cast %768 : vector<1x1x32xf32> to vector<1x32xf32>
    %c2_316 = arith.constant 2 : index
    %c0_317 = arith.constant 0 : index
    %c0_318 = arith.constant 0 : index
    %770 = vector.load %arg18[%c2_316, %c0_317, %c0_318] : memref<4x1x32xf32, #tpu.memory_space<vmem>>, vector<1x1x32xf32>
    %771 = vector.shape_cast %770 : vector<1x1x32xf32> to vector<1x32xf32>
    %cst_319 = arith.constant dense<0.000000e+00> : vector<16xf32>
    %772 = vector.multi_reduction <add>, %758, %cst_319 [1] : vector<16x32xf32> to vector<16xf32>
    %773 = vector.shape_cast %772 : vector<16xf32> to vector<16x1xf32>
    %cst_320 = arith.constant 3.200000e+01 : f32
    %774 = vector.broadcast %cst_320 : f32 to vector<16x1xf32>
    %775 = arith.divf %773, %774 : vector<16x1xf32>
    %776 = vector.broadcast %775 : vector<16x1xf32> to vector<16x32xf32>
    %777 = arith.subf %758, %776 : vector<16x32xf32>
    %778 = arith.mulf %777, %777 : vector<16x32xf32>
    %cst_321 = arith.constant dense<0.000000e+00> : vector<16xf32>
    %779 = vector.multi_reduction <add>, %778, %cst_321 [1] : vector<16x32xf32> to vector<16xf32>
    %780 = vector.shape_cast %779 : vector<16xf32> to vector<16x1xf32>
    %cst_322 = arith.constant 3.200000e+01 : f32
    %781 = vector.broadcast %cst_322 : f32 to vector<16x1xf32>
    %782 = arith.divf %780, %781 : vector<16x1xf32>
    %cst_323 = arith.constant 9.99999974E-6 : f32
    %783 = vector.broadcast %cst_323 : f32 to vector<16x1xf32>
    %784 = arith.addf %782, %783 : vector<16x1xf32>
    %785 = math.rsqrt %784 : vector<16x1xf32>
    %786 = vector.broadcast %785 : vector<16x1xf32> to vector<16x32xf32>
    %787 = arith.mulf %777, %786 : vector<16x32xf32>
    %788 = vector.broadcast %769 : vector<1x32xf32> to vector<16x32xf32>
    %789 = arith.mulf %787, %788 : vector<16x32xf32>
    %790 = vector.broadcast %771 : vector<1x32xf32> to vector<16x32xf32>
    %791 = arith.addf %789, %790 : vector<16x32xf32>
    %c3_324 = arith.constant 3 : index
    %c0_325 = arith.constant 0 : index
    %c0_326 = arith.constant 0 : index
    %792 = vector.load %arg17[%c3_324, %c0_325, %c0_326] : memref<4x1x32xf32, #tpu.memory_space<vmem>>, vector<1x1x32xf32>
    %793 = vector.shape_cast %792 : vector<1x1x32xf32> to vector<1x32xf32>
    %c3_327 = arith.constant 3 : index
    %c0_328 = arith.constant 0 : index
    %c0_329 = arith.constant 0 : index
    %794 = vector.load %arg18[%c3_327, %c0_328, %c0_329] : memref<4x1x32xf32, #tpu.memory_space<vmem>>, vector<1x1x32xf32>
    %795 = vector.shape_cast %794 : vector<1x1x32xf32> to vector<1x32xf32>
    %cst_330 = arith.constant dense<0.000000e+00> : vector<16xf32>
    %796 = vector.multi_reduction <add>, %767, %cst_330 [1] : vector<16x32xf32> to vector<16xf32>
    %797 = vector.shape_cast %796 : vector<16xf32> to vector<16x1xf32>
    %cst_331 = arith.constant 3.200000e+01 : f32
    %798 = vector.broadcast %cst_331 : f32 to vector<16x1xf32>
    %799 = arith.divf %797, %798 : vector<16x1xf32>
    %800 = vector.broadcast %799 : vector<16x1xf32> to vector<16x32xf32>
    %801 = arith.subf %767, %800 : vector<16x32xf32>
    %802 = arith.mulf %801, %801 : vector<16x32xf32>
    %cst_332 = arith.constant dense<0.000000e+00> : vector<16xf32>
    %803 = vector.multi_reduction <add>, %802, %cst_332 [1] : vector<16x32xf32> to vector<16xf32>
    %804 = vector.shape_cast %803 : vector<16xf32> to vector<16x1xf32>
    %cst_333 = arith.constant 3.200000e+01 : f32
    %805 = vector.broadcast %cst_333 : f32 to vector<16x1xf32>
    %806 = arith.divf %804, %805 : vector<16x1xf32>
    %cst_334 = arith.constant 9.99999974E-6 : f32
    %807 = vector.broadcast %cst_334 : f32 to vector<16x1xf32>
    %808 = arith.addf %806, %807 : vector<16x1xf32>
    %809 = math.rsqrt %808 : vector<16x1xf32>
    %810 = vector.broadcast %809 : vector<16x1xf32> to vector<16x32xf32>
    %811 = arith.mulf %801, %810 : vector<16x32xf32>
    %812 = vector.broadcast %793 : vector<1x32xf32> to vector<16x32xf32>
    %813 = arith.mulf %811, %812 : vector<16x32xf32>
    %814 = vector.broadcast %795 : vector<1x32xf32> to vector<16x32xf32>
    %815 = arith.addf %813, %814 : vector<16x32xf32>
    %c2_335 = arith.constant 2 : index
    %c0_336 = arith.constant 0 : index
    %c0_337 = arith.constant 0 : index
    %816 = vector.load %arg19[%c2_335, %c0_336, %c0_337] : memref<4x32x64xbf16, #tpu.memory_space<vmem>>, vector<1x32x64xbf16>
    %817 = vector.shape_cast %816 : vector<1x32x64xbf16> to vector<32x64xbf16>
    %818 = arith.truncf %791 : vector<16x32xf32> to vector<16x32xbf16>
    %cst_338 = arith.constant dense<0.000000e+00> : vector<16x64xf32>
    %819 = tpu.matmul %818, %817, %cst_338 {dimension_numbers = #tpu.dot_dimension_numbers<[1], [0], [0], [1], [0, 0, 1, 1], [], []>} : vector<16x32xbf16>, vector<32x64xbf16>, vector<16x64xf32> -> vector<16x64xf32>
    %c2_339 = arith.constant 2 : index
    %c0_340 = arith.constant 0 : index
    %c0_341 = arith.constant 0 : index
    %820 = vector.load %arg20[%c2_339, %c0_340, %c0_341] : memref<4x1x64xf32, #tpu.memory_space<vmem>>, vector<1x1x64xf32>
    %821 = vector.shape_cast %820 : vector<1x1x64xf32> to vector<1x64xf32>
    %822 = vector.broadcast %821 : vector<1x64xf32> to vector<16x64xf32>
    %823 = arith.addf %819, %822 : vector<16x64xf32>
    %cst_342 = arith.constant 0.707106769 : f32
    %824 = vector.broadcast %cst_342 : f32 to vector<16x64xf32>
    %825 = arith.mulf %823, %824 : vector<16x64xf32>
    %826 = math.absf %825 : vector<16x64xf32>
    %cst_343 = arith.constant 0.327591091 : f32
    %827 = vector.broadcast %cst_343 : f32 to vector<16x64xf32>
    %828 = arith.mulf %827, %826 : vector<16x64xf32>
    %cst_344 = arith.constant 1.000000e+00 : f32
    %829 = vector.broadcast %cst_344 : f32 to vector<16x64xf32>
    %830 = arith.addf %829, %828 : vector<16x64xf32>
    %cst_345 = arith.constant 1.000000e+00 : f32
    %831 = vector.broadcast %cst_345 : f32 to vector<16x64xf32>
    %832 = arith.divf %831, %830 : vector<16x64xf32>
    %cst_346 = arith.constant 1.06140542 : f32
    %833 = vector.broadcast %cst_346 : f32 to vector<16x64xf32>
    %834 = arith.mulf %833, %832 : vector<16x64xf32>
    %cst_347 = arith.constant 1.45315206 : f32
    %835 = vector.broadcast %cst_347 : f32 to vector<16x64xf32>
    %836 = arith.subf %834, %835 : vector<16x64xf32>
    %837 = arith.mulf %836, %832 : vector<16x64xf32>
    %cst_348 = arith.constant 1.42141378 : f32
    %838 = vector.broadcast %cst_348 : f32 to vector<16x64xf32>
    %839 = arith.addf %837, %838 : vector<16x64xf32>
    %840 = arith.mulf %839, %832 : vector<16x64xf32>
    %cst_349 = arith.constant 0.284496725 : f32
    %841 = vector.broadcast %cst_349 : f32 to vector<16x64xf32>
    %842 = arith.subf %840, %841 : vector<16x64xf32>
    %843 = arith.mulf %842, %832 : vector<16x64xf32>
    %cst_350 = arith.constant 0.254829586 : f32
    %844 = vector.broadcast %cst_350 : f32 to vector<16x64xf32>
    %845 = arith.addf %843, %844 : vector<16x64xf32>
    %846 = arith.mulf %845, %832 : vector<16x64xf32>
    %cst_351 = arith.constant 0.000000e+00 : f32
    %847 = vector.broadcast %cst_351 : f32 to vector<16x64xf32>
    %848 = arith.subf %847, %826 : vector<16x64xf32>
    %849 = arith.mulf %848, %826 : vector<16x64xf32>
    %850 = math.exp %849 : vector<16x64xf32>
    %851 = arith.mulf %846, %850 : vector<16x64xf32>
    %cst_352 = arith.constant 1.000000e+00 : f32
    %852 = vector.broadcast %cst_352 : f32 to vector<16x64xf32>
    %853 = arith.subf %852, %851 : vector<16x64xf32>
    %cst_353 = arith.constant 0.000000e+00 : f32
    %854 = vector.broadcast %cst_353 : f32 to vector<16x64xf32>
    %855 = arith.cmpf oge, %825, %854 : vector<16x64xf32>
    %cst_354 = arith.constant 0.000000e+00 : f32
    %856 = vector.broadcast %cst_354 : f32 to vector<16x64xf32>
    %857 = arith.subf %856, %853 : vector<16x64xf32>
    %858 = arith.select %855, %853, %857 : vector<16x64xi1>, vector<16x64xf32>
    %cst_355 = arith.constant 5.000000e-01 : f32
    %859 = vector.broadcast %cst_355 : f32 to vector<16x64xf32>
    %860 = arith.mulf %859, %823 : vector<16x64xf32>
    %cst_356 = arith.constant 1.000000e+00 : f32
    %861 = vector.broadcast %cst_356 : f32 to vector<16x64xf32>
    %862 = arith.addf %861, %858 : vector<16x64xf32>
    %863 = arith.mulf %860, %862 : vector<16x64xf32>
    %c3_357 = arith.constant 3 : index
    %c0_358 = arith.constant 0 : index
    %c0_359 = arith.constant 0 : index
    %864 = vector.load %arg19[%c3_357, %c0_358, %c0_359] : memref<4x32x64xbf16, #tpu.memory_space<vmem>>, vector<1x32x64xbf16>
    %865 = vector.shape_cast %864 : vector<1x32x64xbf16> to vector<32x64xbf16>
    %866 = arith.truncf %815 : vector<16x32xf32> to vector<16x32xbf16>
    %cst_360 = arith.constant dense<0.000000e+00> : vector<16x64xf32>
    %867 = tpu.matmul %866, %865, %cst_360 {dimension_numbers = #tpu.dot_dimension_numbers<[1], [0], [0], [1], [0, 0, 1, 1], [], []>} : vector<16x32xbf16>, vector<32x64xbf16>, vector<16x64xf32> -> vector<16x64xf32>
    %c3_361 = arith.constant 3 : index
    %c0_362 = arith.constant 0 : index
    %c0_363 = arith.constant 0 : index
    %868 = vector.load %arg20[%c3_361, %c0_362, %c0_363] : memref<4x1x64xf32, #tpu.memory_space<vmem>>, vector<1x1x64xf32>
    %869 = vector.shape_cast %868 : vector<1x1x64xf32> to vector<1x64xf32>
    %870 = vector.broadcast %869 : vector<1x64xf32> to vector<16x64xf32>
    %871 = arith.addf %867, %870 : vector<16x64xf32>
    %cst_364 = arith.constant 0.707106769 : f32
    %872 = vector.broadcast %cst_364 : f32 to vector<16x64xf32>
    %873 = arith.mulf %871, %872 : vector<16x64xf32>
    %874 = math.absf %873 : vector<16x64xf32>
    %cst_365 = arith.constant 0.327591091 : f32
    %875 = vector.broadcast %cst_365 : f32 to vector<16x64xf32>
    %876 = arith.mulf %875, %874 : vector<16x64xf32>
    %cst_366 = arith.constant 1.000000e+00 : f32
    %877 = vector.broadcast %cst_366 : f32 to vector<16x64xf32>
    %878 = arith.addf %877, %876 : vector<16x64xf32>
    %cst_367 = arith.constant 1.000000e+00 : f32
    %879 = vector.broadcast %cst_367 : f32 to vector<16x64xf32>
    %880 = arith.divf %879, %878 : vector<16x64xf32>
    %cst_368 = arith.constant 1.06140542 : f32
    %881 = vector.broadcast %cst_368 : f32 to vector<16x64xf32>
    %882 = arith.mulf %881, %880 : vector<16x64xf32>
    %cst_369 = arith.constant 1.45315206 : f32
    %883 = vector.broadcast %cst_369 : f32 to vector<16x64xf32>
    %884 = arith.subf %882, %883 : vector<16x64xf32>
    %885 = arith.mulf %884, %880 : vector<16x64xf32>
    %cst_370 = arith.constant 1.42141378 : f32
    %886 = vector.broadcast %cst_370 : f32 to vector<16x64xf32>
    %887 = arith.addf %885, %886 : vector<16x64xf32>
    %888 = arith.mulf %887, %880 : vector<16x64xf32>
    %cst_371 = arith.constant 0.284496725 : f32
    %889 = vector.broadcast %cst_371 : f32 to vector<16x64xf32>
    %890 = arith.subf %888, %889 : vector<16x64xf32>
    %891 = arith.mulf %890, %880 : vector<16x64xf32>
    %cst_372 = arith.constant 0.254829586 : f32
    %892 = vector.broadcast %cst_372 : f32 to vector<16x64xf32>
    %893 = arith.addf %891, %892 : vector<16x64xf32>
    %894 = arith.mulf %893, %880 : vector<16x64xf32>
    %cst_373 = arith.constant 0.000000e+00 : f32
    %895 = vector.broadcast %cst_373 : f32 to vector<16x64xf32>
    %896 = arith.subf %895, %874 : vector<16x64xf32>
    %897 = arith.mulf %896, %874 : vector<16x64xf32>
    %898 = math.exp %897 : vector<16x64xf32>
    %899 = arith.mulf %894, %898 : vector<16x64xf32>
    %cst_374 = arith.constant 1.000000e+00 : f32
    %900 = vector.broadcast %cst_374 : f32 to vector<16x64xf32>
    %901 = arith.subf %900, %899 : vector<16x64xf32>
    %cst_375 = arith.constant 0.000000e+00 : f32
    %902 = vector.broadcast %cst_375 : f32 to vector<16x64xf32>
    %903 = arith.cmpf oge, %873, %902 : vector<16x64xf32>
    %cst_376 = arith.constant 0.000000e+00 : f32
    %904 = vector.broadcast %cst_376 : f32 to vector<16x64xf32>
    %905 = arith.subf %904, %901 : vector<16x64xf32>
    %906 = arith.select %903, %901, %905 : vector<16x64xi1>, vector<16x64xf32>
    %cst_377 = arith.constant 5.000000e-01 : f32
    %907 = vector.broadcast %cst_377 : f32 to vector<16x64xf32>
    %908 = arith.mulf %907, %871 : vector<16x64xf32>
    %cst_378 = arith.constant 1.000000e+00 : f32
    %909 = vector.broadcast %cst_378 : f32 to vector<16x64xf32>
    %910 = arith.addf %909, %906 : vector<16x64xf32>
    %911 = arith.mulf %908, %910 : vector<16x64xf32>
    %c2_379 = arith.constant 2 : index
    %c0_380 = arith.constant 0 : index
    %c0_381 = arith.constant 0 : index
    %912 = vector.load %arg21[%c2_379, %c0_380, %c0_381] : memref<4x64x32xbf16, #tpu.memory_space<vmem>>, vector<1x64x32xbf16>
    %913 = vector.shape_cast %912 : vector<1x64x32xbf16> to vector<64x32xbf16>
    %914 = arith.truncf %863 : vector<16x64xf32> to vector<16x64xbf16>
    %cst_382 = arith.constant dense<0.000000e+00> : vector<16x32xf32>
    %915 = tpu.matmul %914, %913, %cst_382 {dimension_numbers = #tpu.dot_dimension_numbers<[1], [0], [0], [1], [0, 0, 1, 1], [], []>} : vector<16x64xbf16>, vector<64x32xbf16>, vector<16x32xf32> -> vector<16x32xf32>
    %916 = arith.addf %758, %915 : vector<16x32xf32>
    %c2_383 = arith.constant 2 : index
    %c0_384 = arith.constant 0 : index
    %c0_385 = arith.constant 0 : index
    %917 = vector.load %arg22[%c2_383, %c0_384, %c0_385] : memref<4x1x32xf32, #tpu.memory_space<vmem>>, vector<1x1x32xf32>
    %918 = vector.shape_cast %917 : vector<1x1x32xf32> to vector<1x32xf32>
    %919 = vector.broadcast %918 : vector<1x32xf32> to vector<16x32xf32>
    %920 = arith.addf %916, %919 : vector<16x32xf32>
    %c3_386 = arith.constant 3 : index
    %c0_387 = arith.constant 0 : index
    %c0_388 = arith.constant 0 : index
    %921 = vector.load %arg21[%c3_386, %c0_387, %c0_388] : memref<4x64x32xbf16, #tpu.memory_space<vmem>>, vector<1x64x32xbf16>
    %922 = vector.shape_cast %921 : vector<1x64x32xbf16> to vector<64x32xbf16>
    %923 = arith.truncf %911 : vector<16x64xf32> to vector<16x64xbf16>
    %cst_389 = arith.constant dense<0.000000e+00> : vector<16x32xf32>
    %924 = tpu.matmul %923, %922, %cst_389 {dimension_numbers = #tpu.dot_dimension_numbers<[1], [0], [0], [1], [0, 0, 1, 1], [], []>} : vector<16x64xbf16>, vector<64x32xbf16>, vector<16x32xf32> -> vector<16x32xf32>
    %925 = arith.addf %767, %924 : vector<16x32xf32>
    %c3_390 = arith.constant 3 : index
    %c0_391 = arith.constant 0 : index
    %c0_392 = arith.constant 0 : index
    %926 = vector.load %arg22[%c3_390, %c0_391, %c0_392] : memref<4x1x32xf32, #tpu.memory_space<vmem>>, vector<1x1x32xf32>
    %927 = vector.shape_cast %926 : vector<1x1x32xf32> to vector<1x32xf32>
    %928 = vector.broadcast %927 : vector<1x32xf32> to vector<16x32xf32>
    %929 = arith.addf %925, %928 : vector<16x32xf32>
    %c0_393 = arith.constant 0 : index
    %c0_394 = arith.constant 0 : index
    %c0_395 = arith.constant 0 : index
    %930 = vector.load %arg23[%c0_393, %c0_394, %c0_395] : memref<2x1x32xf32, #tpu.memory_space<vmem>>, vector<1x1x32xf32>
    %931 = vector.shape_cast %930 : vector<1x1x32xf32> to vector<1x32xf32>
    %c0_396 = arith.constant 0 : index
    %c0_397 = arith.constant 0 : index
    %c0_398 = arith.constant 0 : index
    %932 = vector.load %arg24[%c0_396, %c0_397, %c0_398] : memref<2x1x32xf32, #tpu.memory_space<vmem>>, vector<1x1x32xf32>
    %933 = vector.shape_cast %932 : vector<1x1x32xf32> to vector<1x32xf32>
    %cst_399 = arith.constant dense<0.000000e+00> : vector<16xf32>
    %934 = vector.multi_reduction <add>, %920, %cst_399 [1] : vector<16x32xf32> to vector<16xf32>
    %935 = vector.shape_cast %934 : vector<16xf32> to vector<16x1xf32>
    %cst_400 = arith.constant 3.200000e+01 : f32
    %936 = vector.broadcast %cst_400 : f32 to vector<16x1xf32>
    %937 = arith.divf %935, %936 : vector<16x1xf32>
    %938 = vector.broadcast %937 : vector<16x1xf32> to vector<16x32xf32>
    %939 = arith.subf %920, %938 : vector<16x32xf32>
    %940 = arith.mulf %939, %939 : vector<16x32xf32>
    %cst_401 = arith.constant dense<0.000000e+00> : vector<16xf32>
    %941 = vector.multi_reduction <add>, %940, %cst_401 [1] : vector<16x32xf32> to vector<16xf32>
    %942 = vector.shape_cast %941 : vector<16xf32> to vector<16x1xf32>
    %cst_402 = arith.constant 3.200000e+01 : f32
    %943 = vector.broadcast %cst_402 : f32 to vector<16x1xf32>
    %944 = arith.divf %942, %943 : vector<16x1xf32>
    %cst_403 = arith.constant 9.99999974E-6 : f32
    %945 = vector.broadcast %cst_403 : f32 to vector<16x1xf32>
    %946 = arith.addf %944, %945 : vector<16x1xf32>
    %947 = math.rsqrt %946 : vector<16x1xf32>
    %948 = vector.broadcast %947 : vector<16x1xf32> to vector<16x32xf32>
    %949 = arith.mulf %939, %948 : vector<16x32xf32>
    %950 = vector.broadcast %931 : vector<1x32xf32> to vector<16x32xf32>
    %951 = arith.mulf %949, %950 : vector<16x32xf32>
    %952 = vector.broadcast %933 : vector<1x32xf32> to vector<16x32xf32>
    %953 = arith.addf %951, %952 : vector<16x32xf32>
    %c0_404 = arith.constant 0 : index
    %c0_405 = arith.constant 0 : index
    %954 = vector.load %arg25[%c0_404, %c0_405] : memref<16x32xf32, #tpu.memory_space<vmem>>, vector<16x32xf32>
    tpu.vector_store %arg25[%c0_404, %c0_405], %953 {strides = array<i32>} : memref<16x32xf32, #tpu.memory_space<vmem>>, vector<16x32xf32>,
    %c1_406 = arith.constant 1 : index
    %c0_407 = arith.constant 0 : index
    %c0_408 = arith.constant 0 : index
    %955 = vector.load %arg23[%c1_406, %c0_407, %c0_408] : memref<2x1x32xf32, #tpu.memory_space<vmem>>, vector<1x1x32xf32>
    %956 = vector.shape_cast %955 : vector<1x1x32xf32> to vector<1x32xf32>
    %c1_409 = arith.constant 1 : index
    %c0_410 = arith.constant 0 : index
    %c0_411 = arith.constant 0 : index
    %957 = vector.load %arg24[%c1_409, %c0_410, %c0_411] : memref<2x1x32xf32, #tpu.memory_space<vmem>>, vector<1x1x32xf32>
    %958 = vector.shape_cast %957 : vector<1x1x32xf32> to vector<1x32xf32>
    %cst_412 = arith.constant dense<0.000000e+00> : vector<16xf32>
    %959 = vector.multi_reduction <add>, %929, %cst_412 [1] : vector<16x32xf32> to vector<16xf32>
    %960 = vector.shape_cast %959 : vector<16xf32> to vector<16x1xf32>
    %cst_413 = arith.constant 3.200000e+01 : f32
    %961 = vector.broadcast %cst_413 : f32 to vector<16x1xf32>
    %962 = arith.divf %960, %961 : vector<16x1xf32>
    %963 = vector.broadcast %962 : vector<16x1xf32> to vector<16x32xf32>
    %964 = arith.subf %929, %963 : vector<16x32xf32>
    %965 = arith.mulf %964, %964 : vector<16x32xf32>
    %cst_414 = arith.constant dense<0.000000e+00> : vector<16xf32>
    %966 = vector.multi_reduction <add>, %965, %cst_414 [1] : vector<16x32xf32> to vector<16xf32>
    %967 = vector.shape_cast %966 : vector<16xf32> to vector<16x1xf32>
    %cst_415 = arith.constant 3.200000e+01 : f32
    %968 = vector.broadcast %cst_415 : f32 to vector<16x1xf32>
    %969 = arith.divf %967, %968 : vector<16x1xf32>
    %cst_416 = arith.constant 9.99999974E-6 : f32
    %970 = vector.broadcast %cst_416 : f32 to vector<16x1xf32>
    %971 = arith.addf %969, %970 : vector<16x1xf32>
    %972 = math.rsqrt %971 : vector<16x1xf32>
    %973 = vector.broadcast %972 : vector<16x1xf32> to vector<16x32xf32>
    %974 = arith.mulf %964, %973 : vector<16x32xf32>
    %975 = vector.broadcast %956 : vector<1x32xf32> to vector<16x32xf32>
    %976 = arith.mulf %974, %975 : vector<16x32xf32>
    %977 = vector.broadcast %958 : vector<1x32xf32> to vector<16x32xf32>
    %978 = arith.addf %976, %977 : vector<16x32xf32>
    %c0_417 = arith.constant 0 : index
    %c0_418 = arith.constant 0 : index
    %979 = vector.load %arg26[%c0_417, %c0_418] : memref<16x32xf32, #tpu.memory_space<vmem>>, vector<16x32xf32>
    tpu.vector_store %arg26[%c0_417, %c0_418], %978 {strides = array<i32>} : memref<16x32xf32, #tpu.memory_space<vmem>>, vector<16x32xf32>,
    return
  }
  func.func @transform_0(%arg0: i32) -> (i32, i32) {
    %c0_i32 = arith.constant 0 : i32
    %c0_i32_0 = arith.constant 0 : i32
    return %arg0, %c0_i32 : i32, i32
  }
  func.func @transform_1(%arg0: i32) -> (i32, i32) {
    %c0_i32 = arith.constant 0 : i32
    %c0_i32_0 = arith.constant 0 : i32
    %c0_i32_1 = arith.constant 0 : i32
    return %c0_i32, %c0_i32_0 : i32, i32
  }
  func.func @transform_2(%arg0: i32) -> (i32, i32) {
    %c0_i32 = arith.constant 0 : i32
    %c0_i32_0 = arith.constant 0 : i32
    return %arg0, %c0_i32 : i32, i32
  }
  func.func @transform_3(%arg0: i32) -> (i32, i32) {
    %c0_i32 = arith.constant 0 : i32
    %c0_i32_0 = arith.constant 0 : i32
    return %arg0, %c0_i32 : i32, i32
  }
  func.func @transform_4(%arg0: i32) -> (i32, i32) {
    %c0_i32 = arith.constant 0 : i32
    %c0_i32_0 = arith.constant 0 : i32
    return %arg0, %c0_i32 : i32, i32
  }
  func.func @transform_5(%arg0: i32) -> (i32, i32, i32) {
    %c0_i32 = arith.constant 0 : i32
    %c0_i32_0 = arith.constant 0 : i32
    %c0_i32_1 = arith.constant 0 : i32
    return %arg0, %c0_i32, %c0_i32_0 : i32, i32, i32
  }
  func.func @transform_6(%arg0: i32) -> (i32, i32, i32) {
    %c0_i32 = arith.constant 0 : i32
    %c0_i32_0 = arith.constant 0 : i32
    %c0_i32_1 = arith.constant 0 : i32
    %c0_i32_2 = arith.constant 0 : i32
    return %c0_i32, %c0_i32_0, %c0_i32_1 : i32, i32, i32
  }
  func.func @transform_7(%arg0: i32) -> (i32, i32, i32) {
    %c0_i32 = arith.constant 0 : i32
    %c0_i32_0 = arith.constant 0 : i32
    %c0_i32_1 = arith.constant 0 : i32
    %c0_i32_2 = arith.constant 0 : i32
    return %c0_i32, %c0_i32_0, %c0_i32_1 : i32, i32, i32
  }
  func.func @transform_8(%arg0: i32) -> (i32, i32, i32) {
    %c0_i32 = arith.constant 0 : i32
    %c0_i32_0 = arith.constant 0 : i32
    %c0_i32_1 = arith.constant 0 : i32
    %c0_i32_2 = arith.constant 0 : i32
    return %c0_i32, %c0_i32_0, %c0_i32_1 : i32, i32, i32
  }
  func.func @transform_9(%arg0: i32) -> (i32, i32, i32) {
    %c0_i32 = arith.constant 0 : i32
    %c0_i32_0 = arith.constant 0 : i32
    %c0_i32_1 = arith.constant 0 : i32
    %c0_i32_2 = arith.constant 0 : i32
    return %c0_i32, %c0_i32_0, %c0_i32_1 : i32, i32, i32
  }
  func.func @transform_10(%arg0: i32) -> (i32, i32, i32) {
    %c0_i32 = arith.constant 0 : i32
    %c0_i32_0 = arith.constant 0 : i32
    %c0_i32_1 = arith.constant 0 : i32
    %c0_i32_2 = arith.constant 0 : i32
    return %c0_i32, %c0_i32_0, %c0_i32_1 : i32, i32, i32
  }
  func.func @transform_11(%arg0: i32) -> (i32, i32, i32) {
    %c0_i32 = arith.constant 0 : i32
    %c0_i32_0 = arith.constant 0 : i32
    %c0_i32_1 = arith.constant 0 : i32
    %c0_i32_2 = arith.constant 0 : i32
    return %c0_i32, %c0_i32_0, %c0_i32_1 : i32, i32, i32
  }
  func.func @transform_12(%arg0: i32) -> (i32, i32, i32) {
    %c0_i32 = arith.constant 0 : i32
    %c0_i32_0 = arith.constant 0 : i32
    %c0_i32_1 = arith.constant 0 : i32
    %c0_i32_2 = arith.constant 0 : i32
    return %c0_i32, %c0_i32_0, %c0_i32_1 : i32, i32, i32
  }
  func.func @transform_13(%arg0: i32) -> (i32, i32, i32) {
    %c0_i32 = arith.constant 0 : i32
    %c0_i32_0 = arith.constant 0 : i32
    %c0_i32_1 = arith.constant 0 : i32
    %c0_i32_2 = arith.constant 0 : i32
    return %c0_i32, %c0_i32_0, %c0_i32_1 : i32, i32, i32
  }
  func.func @transform_14(%arg0: i32) -> (i32, i32, i32) {
    %c0_i32 = arith.constant 0 : i32
    %c0_i32_0 = arith.constant 0 : i32
    %c0_i32_1 = arith.constant 0 : i32
    %c0_i32_2 = arith.constant 0 : i32
    return %c0_i32, %c0_i32_0, %c0_i32_1 : i32, i32, i32
  }
  func.func @transform_15(%arg0: i32) -> (i32, i32, i32) {
    %c0_i32 = arith.constant 0 : i32
    %c0_i32_0 = arith.constant 0 : i32
    %c0_i32_1 = arith.constant 0 : i32
    %c0_i32_2 = arith.constant 0 : i32
    return %c0_i32, %c0_i32_0, %c0_i32_1 : i32, i32, i32
  }
  func.func @transform_16(%arg0: i32) -> (i32, i32, i32) {
    %c0_i32 = arith.constant 0 : i32
    %c0_i32_0 = arith.constant 0 : i32
    %c0_i32_1 = arith.constant 0 : i32
    %c0_i32_2 = arith.constant 0 : i32
    return %c0_i32, %c0_i32_0, %c0_i32_1 : i32, i32, i32
  }
  func.func @transform_17(%arg0: i32) -> (i32, i32, i32) {
    %c0_i32 = arith.constant 0 : i32
    %c0_i32_0 = arith.constant 0 : i32
    %c0_i32_1 = arith.constant 0 : i32
    %c0_i32_2 = arith.constant 0 : i32
    return %c0_i32, %c0_i32_0, %c0_i32_1 : i32, i32, i32
  }
  func.func @transform_18(%arg0: i32) -> (i32, i32, i32) {
    %c0_i32 = arith.constant 0 : i32
    %c0_i32_0 = arith.constant 0 : i32
    %c0_i32_1 = arith.constant 0 : i32
    %c0_i32_2 = arith.constant 0 : i32
    return %c0_i32, %c0_i32_0, %c0_i32_1 : i32, i32, i32
  }
  func.func @transform_19(%arg0: i32) -> (i32, i32, i32) {
    %c0_i32 = arith.constant 0 : i32
    %c0_i32_0 = arith.constant 0 : i32
    %c0_i32_1 = arith.constant 0 : i32
    %c0_i32_2 = arith.constant 0 : i32
    return %c0_i32, %c0_i32_0, %c0_i32_1 : i32, i32, i32
  }
  func.func @transform_20(%arg0: i32) -> (i32, i32, i32) {
    %c0_i32 = arith.constant 0 : i32
    %c0_i32_0 = arith.constant 0 : i32
    %c0_i32_1 = arith.constant 0 : i32
    %c0_i32_2 = arith.constant 0 : i32
    return %c0_i32, %c0_i32_0, %c0_i32_1 : i32, i32, i32
  }
  func.func @transform_21(%arg0: i32) -> (i32, i32, i32) {
    %c0_i32 = arith.constant 0 : i32
    %c0_i32_0 = arith.constant 0 : i32
    %c0_i32_1 = arith.constant 0 : i32
    %c0_i32_2 = arith.constant 0 : i32
    return %c0_i32, %c0_i32_0, %c0_i32_1 : i32, i32, i32
  }
  func.func @transform_22(%arg0: i32) -> (i32, i32, i32) {
    %c0_i32 = arith.constant 0 : i32
    %c0_i32_0 = arith.constant 0 : i32
    %c0_i32_1 = arith.constant 0 : i32
    %c0_i32_2 = arith.constant 0 : i32
    return %c0_i32, %c0_i32_0, %c0_i32_1 : i32, i32, i32
  }
  func.func @transform_23(%arg0: i32) -> (i32, i32, i32) {
    %c0_i32 = arith.constant 0 : i32
    %c0_i32_0 = arith.constant 0 : i32
    %c0_i32_1 = arith.constant 0 : i32
    %c0_i32_2 = arith.constant 0 : i32
    return %c0_i32, %c0_i32_0, %c0_i32_1 : i32, i32, i32
  }
  func.func @transform_24(%arg0: i32) -> (i32, i32) {
    %c0_i32 = arith.constant 0 : i32
    %c0_i32_0 = arith.constant 0 : i32
    return %arg0, %c0_i32 : i32, i32
  }
  func.func @transform_25(%arg0: i32) -> (i32, i32) {
    %c0_i32 = arith.constant 0 : i32
    %c0_i32_0 = arith.constant 0 : i32
    return %arg0, %c0_i32 : i32, i32
  }
}

</mosaic_0001>

<bundles_post_ra>
// kernel: beit3_forward.1
= control target key start
LH: loop header
LB: loop body
LE: loop exit
PB: predicated region body
PF: predicated region fallthrough
CT: control target
= control target key end

     0   :  { %v5939_v0 = vmov 0   ;;  %vm187_vm0 = vcmask 523264   ;;  %vm256_vm1 = vcmask 261120   ;;  %v5940_v56 = vmov 0.0   ;;  %s7393_s26 = smov 112   ;;  %s5946_s29 = smov 16   ;;  %s7357_s1 = inlined_call_operand.vmem [shape: bf16[192,32], index: 1, kind: input, shape index: {}]   ;;  %s7358_s0 = inlined_call_operand.vmem [shape: bf16[16,192], index: 0, kind: input, shape index: {}]   ;;  %s7359_s2 = inlined_call_operand.vmem [shape: f32[16,1], index: 2, kind: input, shape index: {}]   ;;  %s7360_s4 = inlined_call_operand.vmem [shape: f32[16,32], index: 4, kind: input, shape index: {}]   ;;  %s7361_s3 = inlined_call_operand.vmem [shape: f32[16,32], index: 3, kind: input, shape index: {}]   ;;  %s7362_s6 = inlined_call_operand.vmem [shape: bf16[4,32,32], index: 6, kind: input, shape index: {}]   ;;  %s7363_s8 = inlined_call_operand.vmem [shape: bf16[4,32,32], index: 8, kind: input, shape index: {}]   ;;  %s7364_s10 = inlined_call_operand.vmem [shape: bf16[4,32,32], index: 10, kind: input, shape index: {}]   ;;  %s7365_s14 = inlined_call_operand.vmem [shape: f32[4,1,32], index: 14, kind: input, shape index: {}]   ;;  %s7366_s15 = inlined_call_operand.vmem [shape: f32[4,1,32], index: 15, kind: input, shape index: {}]   ;;  %s7367_s7 = inlined_call_operand.vmem [shape: f32[4,1,32], index: 7, kind: input, shape index: {}]   ;;  %s7368_s9 = inlined_call_operand.vmem [shape: f32[4,1,32], index: 9, kind: input, shape index: {}]   ;;  %s7369_s11 = inlined_call_operand.vmem [shape: f32[4,1,32], index: 11, kind: input, shape index: {}]   ;;  %s7370_s5 = inlined_call_operand.vmem [shape: f32[2,1,16], index: 5, kind: input, shape index: {}]   ;;  %s7371_s12 = inlined_call_operand.vmem [shape: bf16[4,32,32], index: 12, kind: input, shape index: {}]   ;;  %s7372_s13 = inlined_call_operand.vmem [shape: f32[4,1,32], index: 13, kind: input, shape index: {}]   ;;  %s7373_s18 = inlined_call_operand.vmem [shape: bf16[4,32,64], index: 18, kind: input, shape index: {}]   ;;  %s7374_s16 = inlined_call_operand.vmem [shape: f32[4,1,32], index: 16, kind: input, shape index: {}]   ;;  %s7375_s17 = inlined_call_operand.vmem [shape: f32[4,1,32], index: 17, kind: input, shape index: {}]   ;;  %s7376_s20 = inlined_call_operand.vmem [shape: bf16[4,64,32], index: 20, kind: input, shape index: {}]   ;;  %s7377_s19 = inlined_call_operand.vmem [shape: f32[4,1,64], index: 19, kind: input, shape index: {}]   ;;  %s7378_s21 = inlined_call_operand.vmem [shape: f32[4,1,32], index: 21, kind: input, shape index: {}]   ;;  %s7379_s22 = inlined_call_operand.vmem [shape: f32[2,1,32], index: 22, kind: input, shape index: {}]   ;;  %s7380_s23 = inlined_call_operand.vmem [shape: f32[2,1,32], index: 23, kind: input, shape index: {}]   ;;  %s7381_s24 = inlined_call_operand.vmem [shape: f32[16,32], index: 24, kind: output, shape index: {0}]   ;;  %s7382_s25 = inlined_call_operand.vmem [shape: f32[16,32], index: 25, kind: output, shape index: {1}]  }
   0x1   :  { %7401 = sst [smem:[#allocation2_spill]] %s7357_s1  ;;  %191 = vmatprep.subr.bf16.mxu0 %v5939_v0  ;;  %5603 = vset.pattern.permute.xlu0 %v5939_v0  ;;  %vm5941_vm2 = vmmov 0   ;;  %vm757_vm3 = vcmask 64512   ;;  %vm805_vm4 = vcmask 130048   ;;  %s5947_s30 = smov 24   ;;  %vm1267_vm5 = vcmask 195584  }
   0x2   :  { %7402 = sst [smem:[#allocation3_spill]] %s7358_s0  ;;  %5194 = vmatprep.subr.bf16.mxu1 %v5940_v56  ;;  %5198 = vmatprep.mubr.msk.bf16.mxu1 %vm5941_vm2, %v5940_v56 }
   0x3   :  { %7403 = sst [smem:[#allocation4_spill]] %s7359_s2  ;;  %s7412_s28 = sld [smem:[#allocation3_spill]] }
   0x4   :  { %7404 = sst [smem:[#allocation5_spill]] %s7360_s4  ;;  %s7413_s1 = sld [smem:[#allocation4_spill]] }
   0x5   :  { %7405 = sst [smem:[#allocation6_spill]] %s7361_s3  ;;  %s7414_s3 = sld [smem:[#allocation5_spill]] }
   0x6   :  { %7406 = sst [smem:[#allocation7_spill]] %s7362_s6  ;;  %s7395_s2 = smov 104  }
   0x7   :  { %7407 = sst [smem:[#allocation8_spill]] %s7363_s8  ;;  %s7411_s8 = sld [smem:[#allocation2_spill]] }
   0x8   :  { %7408 = sst [smem:[#allocation9_spill]] %s7364_s10  ;;  %s7416_s4 = sld [smem:[#allocation7_spill]] }
   0x9   :  { %7409 = sst [smem:[#allocation10_spill]] %s7365_s14  ;;  %v5678_v5 = vld [vmem:[%s7412_s28 + $0x4] ss:$8 sps:$4 sm:$0xff]   ;;  %v5676_v16 = vld [vmem:[%s7412_s28] ss:$8 sps:$4 sm:$0xff]   ;;  %s7420_s27 = sld [smem:[#allocation9_spill]] }
   0xa   :  { %7410 = sst [smem:[#allocation11_spill]] %s7366_s15  ;;  %v232_v6 = vld [vmem:[%s7413_s1] sm:$0xff]  ;;  %4759 = vmatprep.mubr.msk.bf16.mxu0 %vm187_vm0, %v5678_v5  ;;  %v233_v8 = vld [vmem:[%s7413_s1 + $0x8] sm:$0xff]  ;;  %s7417_s15 = sld [smem:[#allocation10_spill]] }
   0xb   :  { %236 = vperm.xlu0 %5603, %v232_v6   ;;  %v250_v17 = vld [vmem:[%s7414_s3] sm:$0xff]  ;;  %v251_v32 = vld [vmem:[%s7414_s3 + $0x8] sm:$0xff]  ;;  %s7418_s28 = sld [smem:[#allocation11_spill]]  ;;  %s7397_s1 = smov 120  }
   0xc   :  { %v304_v18 = vsel %vm256_vm1, %v250_v17, 0.0  ;;  %v307_v34 = vsel %vm256_vm1, %v251_v32, 0.0  ;;  %s7399_s6 = smov 8   ;;  %s7421_s10 = smov 120  }
   0xd   :  { %v5664_v1 = vld [vmem:[%s7411_s8] sm:$0xff]   ;;  %v5665_v2 = vld [vmem:[%s7411_s8 + $0x8] sm:$0xff]   ;;  %v5666_v3 = vld [vmem:[%s7411_s8 + $0x10] sm:$0xff]  }
   0xe   :  { %192 = vmatpush1.bf16.msra.mxu0 %v5664_v1  ;;  %v5667_v4 = vld [vmem:[%s7411_s8 + $0x18] sm:$0xff]   ;;  %v5668_v7 = vld [vmem:[%s7411_s8 + $0x20] sm:$0xff]   ;;  %v5669_v9 = vld [vmem:[%s7411_s8 + $0x28] sm:$0xff]  }
   0xf   :  { %193 = vmatprep.subr.bf16.mxu0 %v5939_v0  ;;  %241 = vperm.xlu0 %5603, %v233_v8   ;;  %v5670_v10 = vld [vmem:[%s7411_s8 + $0x30] sm:$0xff]   ;;  %v5671_v11 = vld [vmem:[%s7411_s8 + $0x38] sm:$0xff]   ;;  %v5672_v12 = vld [vmem:[%s7411_s8 + $0x40] sm:$0xff]  }
  0x10   :  { %v5673_v13 = vld [vmem:[%s7411_s8 + $0x48] sm:$0xff]   ;;  %v5674_v14 = vld [vmem:[%s7411_s8 + $0x50] sm:$0xff]   ;;  %v5675_v15 = vld [vmem:[%s7411_s8 + $0x58] sm:$0xff]   ;;  %s7415_s8 = sld [smem:[#allocation6_spill]] }
  0x11   :  { %v5679_v55 = vld [vmem:[%s7416_s4] sm:$0xff]   ;;  %v5680_v57 = vld [vmem:[%s7416_s4 + $0x8] sm:$0xff]  }
  0x12   :  { %194 = vmatpush1.bf16.msra.mxu0 %v5665_v2  ;;  %5195 = vmatpush3.bf16.msra.mxu1 %v5679_v55  ;;  %v4760_v8 = vld [vmem:[%s7417_s15] ss:$0 sm:$0xff] }
  0x13   :  { %195 = vmatprep.subr.bf16.mxu0 %v5939_v0  ;;  %5196 = vmatprep.subr.bf16.mxu1 %v5940_v56 }
  0x16   :  { %196 = vmatpush1.bf16.msra.mxu0 %v5666_v3  ;;  %v246_v21 = vld [vmem:[%s7415_s8] sm:$0xff]  ;;  %v247_v26 = vld [vmem:[%s7415_s8 + $0x8] sm:$0xff]  ;;  %5197 = vmatpush3.bf16.msra.mxu1 %v5680_v57  ;;  %s7419_s8 = sld [smem:[#allocation8_spill]] }
  0x17   :  { %197 = vmatprep.subr.bf16.mxu0 %v5939_v0  ;;  %5202 = vmatprep.subr.bf16.mxu1 %v5940_v56 }
  0x1a   :  { %198 = vmatpush1.bf16.msra.mxu0 %v5667_v4 }
  0x1b   :  { %199 = vmatprep.subr.bf16.mxu0 %v5939_v0 }
  0x1e   :  { %200 = vmatpush1.bf16.msra.mxu0 %v5668_v7 }
  0x1f   :  { %201 = vmatprep.subr.bf16.mxu0 %v5939_v0 }
  0x22   :  { %202 = vmatpush1.bf16.msra.mxu0 %v5669_v9 }
  0x23   :  { %203 = vmatprep.subr.bf16.mxu0 %v5939_v0 }
  0x26   :  { %204 = vmatpush1.bf16.msra.mxu0 %v5670_v10 }
  0x27   :  { %205 = vmatprep.subr.bf16.mxu0 %v5939_v0 }
  0x2a   :  { %206 = vmatpush1.bf16.msra.mxu0 %v5671_v11 }
  0x2b   :  { %207 = vmatprep.subr.bf16.mxu0 %v5939_v0 }
  0x2e   :  { %208 = vmatpush1.bf16.msra.mxu0 %v5672_v12  ;;  %305 = vadd.xlane.f32.xlu0 %v304_v18  ;;  %v4761_v12 = vld [vmem:[%s7418_s28] ss:$0 sm:$0xff]  ;;  %v4764_v18 = vld [vmem:[%s7417_s15 + $0x1] ss:$0 sm:$0xff] }
  0x2f   :  { %209 = vmatprep.subr.bf16.mxu0 %v5939_v0 }
  0x32   :  { %210 = vmatpush1.bf16.msra.mxu0 %v5673_v13 }
  0x33   :  { %211 = vmatprep.subr.bf16.mxu0 %v5939_v0 }
  0x36   :  { %212 = vmatpush1.bf16.msra.mxu0 %v5674_v14 }
  0x37   :  { %213 = vmatprep.subr.bf16.mxu0 %v5939_v0 }
  0x3a   :  { %214 = vmatpush1.bf16.msra.mxu0 %v5675_v15 }
  0x3b   :  { %5242 = vmatprep.subr.bf16.mxu0 %v5940_v56 }
  0x3d   :  { %224 = vmatmul.mubr.bf16.vlgmr.msra.gmra.mrb[0].mxu0 %v5676_v16 }
  0x3e   :  { %5244 = vmatprep.mubr.msk.bf16.mxu0 %vm5941_vm2, %v5940_v56 }
  0x8a   :  { %v237_v19 = vpop.permute.xlu0 %236 }
  0x8e   :  { %v242_v24 = vpop.permute.xlu0 %241 }
  0xbb   :  { %v306_v35 = vpop.xlane.xlu0 %305 }
  0xbc   :  { %v310_v38 = vmul.f32 0.03125, %v306_v35  ;;  %v5686_v35 = vld [vmem:[%s7419_s8 + $0x18] sm:$0xff]  }
  0xbe   :  { %v312_v42 = vsub.f32 %v250_v17, %v310_v38  ;;  %v5689_v38 = vld [vmem:[%s7420_s27 + $0x10] sm:$0xff]  }
  0xc0   :  { %v314_v49 = vmul.f32 %v312_v42, %v312_v42 }
  0xc2   :  { %v316_v52 = vsel %vm256_vm1, %v314_v49, 0.0 }
 0x110   :  { %v225_v20 = vpop.f32.mrb[0].mxu0 }
 0x111   :  { %v244_v22 = vmul.f32 %v237_v19, %v225_v20  ;;  %v227_v23 = vpop.f32.mrb[1].mxu0  ;;  %v5681_v19 = vld [vmem:[%s7416_s4 + $0x10] sm:$0xff]  }
 0x112   :  { %v228_v25 = vpop.f32.mrb[2].mxu0 }
 0x113   :  { %v6137_v27 = vadd.f32 %v246_v21, %v244_v22  ;;  %v245_v28 = vmul.f32 %v242_v24, %v228_v25  ;;  %v230_v29 = vpop.f32.mrb[3].mxu0  ;;  %v5682_v24 = vld [vmem:[%s7416_s4 + $0x18] sm:$0xff]   ;;  %v4765_v25 = vld [vmem:[%s7418_s28 + $0x1] ss:$0 sm:$0xff] }
 0x115   :  { %v6139_v30 = vadd.f32 %v247_v26, %v245_v28  ;;  %v257_v31 = vsel %vm256_vm1, %v6137_v27, 0.0 }
 0x116   :  { %258 = vadd.xlane.f32.xlu1 %v257_v31  ;;  %v5683_v31 = vld [vmem:[%s7419_s8] sm:$0xff]  }
 0x117   :  { %v260_v33 = vsel %vm256_vm1, %v6139_v30, 0.0 }
 0x11a   :  { %261 = vadd.xlane.f32.xlu1 %v260_v33  ;;  %v5684_v33 = vld [vmem:[%s7419_s8 + $0x8] sm:$0xff]  }
 0x11e   :  { %308 = vadd.xlane.f32.xlu1 %v307_v34  ;;  %v5685_v34 = vld [vmem:[%s7419_s8 + $0x10] sm:$0xff]  }
 0x1a3   :  { %v259_v36 = vpop.xlane.xlu1 %258 }
 0x1a4   :  { %v264_v37 = vmul.f32 0.03125, %v259_v36  ;;  %v5687_v36 = vld [vmem:[%s7420_s27] sm:$0xff]  }
 0x1a6   :  { %v266_v39 = vsub.f32 %v6137_v27, %v264_v37  ;;  %v5688_v37 = vld [vmem:[%s7420_s27 + $0x8] sm:$0xff]  }
 0x1a7   :  { %v262_v40 = vpop.xlane.xlu1 %261 }
 0x1a8   :  { %v265_v41 = vmul.f32 0.03125, %v262_v40  ;;  %v268_v43 = vmul.f32 %v266_v39, %v266_v39 }
 0x1aa   :  { %v267_v44 = vsub.f32 %v6139_v30, %v265_v41  ;;  %v270_v45 = vsel %vm256_vm1, %v268_v43, 0.0 }
 0x1ab   :  { %271 = vadd.xlane.f32.xlu1 %v270_v45  ;;  %v309_v46 = vpop.xlane.xlu1 %308  ;;  %v4775_v45 = vld [vmem:[%s7367_s7 + $0x1] ss:$0 sm:$0xff] }
 0x1ac   :  { %v269_v47 = vmul.f32 %v267_v44, %v267_v44  ;;  %v311_v48 = vmul.f32 0.03125, %v309_v46 }
 0x1ae   :  { %v273_v50 = vsel %vm256_vm1, %v269_v47, 0.0  ;;  %v313_v51 = vsub.f32 %v251_v32, %v311_v48 }
 0x1af   :  { %274 = vadd.xlane.f32.xlu1 %v273_v50 }
 0x1b0   :  { %v315_v53 = vmul.f32 %v313_v51, %v313_v51 }
 0x1b2   :  { %v319_v54 = vsel %vm256_vm1, %v315_v53, 0.0 }
 0x1b3   :  { %317 = vadd.xlane.f32.xlu1 %v316_v52 }
 0x1b7   :  { %320 = vadd.xlane.f32.xlu1 %v319_v54 }
 0x238   :  { %v272_v58 = vpop.xlane.xlu1 %271 }
 0x239   :  { %v276_v59 = vmul.f32 0.03125, %v272_v58 }
 0x23b   :  { %v278_v60 = vadd.f32 1e-05, %v276_v59 }
 0x23c   :  { %v275_v61 = vpop.xlane.xlu1 %274 }
 0x23d   :  { %5735 = vrsqrt.f32 %v278_v60  ;;  %v277_v62 = vmul.f32 0.03125, %v275_v61 }
 0x23f   :  { %v279_v63 = vadd.f32 1e-05, %v277_v62 }
 0x240   :  { %v318_v0 = vpop.xlane.xlu1 %317 }
 0x241   :  { %5737 = vrsqrt.f32 %v279_v63  ;;  %v322_v1 = vmul.f32 0.03125, %v318_v0 }
 0x243   :  { %v324_v2 = vadd.f32 1e-05, %v322_v1  ;;  %v4779_v1 = vld [vmem:[%s7368_s9] ss:$0 sm:$0xff] }
 0x244   :  { %v321_v3 = vpop.xlane.xlu1 %320 }
 0x245   :  { %5739 = vrsqrt.f32 %v324_v2  ;;  %v323_v4 = vmul.f32 0.03125, %v321_v3  ;;  %v4788_v2 = vld [vmem:[%s7368_s9 + $0x1] ss:$0 sm:$0xff] }
 0x247   :  { %v5736_v5 = vpop.eup %5735  ;;  %v325_v6 = vadd.f32 1e-05, %v323_v4 }
 0x248   :  { %v282_v7 = vmul.f32 %v5736_v5, %v266_v39  ;;  %v5690_v39 = vld [vmem:[%s7420_s27 + $0x18] sm:$0xff]  }
 0x249   :  { %5741 = vrsqrt.f32 %v325_v6 }
 0x24a   :  { %v290_v11 = vmul.f32 %v4760_v8, %v282_v7 }
 0x24b   :  { %v5738_v9 = vpop.eup %5737 }
 0x24c   :  { %v283_v10 = vmul.f32 %v5738_v9, %v267_v44  ;;  %v298_v16 = vadd.f32 %v4761_v12, %v290_v11  ;;  %v4766_v44 = vld [vmem:[%s7367_s7] ss:$0 sm:$0xff] }
 0x24e   :  { %v291_v13 = vmul.f32 %v4760_v8, %v283_v10 }
 0x24f   :  { %v5740_v14 = vpop.eup %5739 }
 0x250   :  { %v328_v15 = vmul.f32 %v5740_v14, %v312_v42  ;;  %v299_v17 = vadd.f32 %v4761_v12, %v291_v13 }
 0x252   :  { %v350_v20 = vpack.c.bf16 %v299_v17, %v298_v16  ;;  %v336_v22 = vmul.f32 %v4764_v18, %v328_v15  ;;  %v4792_v16 = vld [vmem:[%s7369_s11] ss:$0 sm:$0xff] }
 0x253   :  { %v5742_v21 = vpop.eup %5741 }
 0x254   :  { %v329_v23 = vmul.f32 %v5742_v21, %v313_v51  ;;  %5199 = vmatmul.mubr.msk.bf16.vlgmr.msra.gmra.mrb[0].mxu1 %vm256_vm1, %v350_v20  ;;  %v344_v28 = vadd.f32 %v4765_v25, %v336_v22 }
 0x255   :  { %5203 = vmatpush3.bf16.msra.mxu1 %v5681_v19  ;;  %5206 = vmatprep.mubr.msk.bf16.mxu1 %vm5941_vm2, %v5940_v56 }
 0x256   :  { %v337_v26 = vmul.f32 %v4764_v18, %v329_v23  ;;  %5204 = vmatprep.subr.bf16.mxu1 %v5940_v56 }
 0x258   :  { %v345_v29 = vadd.f32 %v4765_v25, %v337_v26 }
 0x259   :  { %5205 = vmatpush3.bf16.msra.mxu1 %v5682_v24 }
 0x25a   :  { %v421_v32 = vpack.c.bf16 %v345_v29, %v344_v28  ;;  %5210 = vmatprep.subr.bf16.mxu1 %v5940_v56 }
 0x25c   :  { %5207 = vmatmul.mubr.msk.bf16.vlgmr.msra.gmra.mrb[4].mxu1 %vm256_vm1, %v421_v32 }
 0x25d   :  { %5211 = vmatpush3.bf16.msra.mxu1 %v5683_v31  ;;  %5214 = vmatprep.mubr.msk.bf16.mxu1 %vm5941_vm2, %v5940_v56 }
 0x25e   :  { %5212 = vmatprep.subr.bf16.mxu1 %v5940_v56 }
 0x261   :  { %5213 = vmatpush3.bf16.msra.mxu1 %v5684_v33 }
 0x262   :  { %5218 = vmatprep.subr.bf16.mxu1 %v5940_v56 }
 0x264   :  { %5215 = vmatmul.mubr.msk.bf16.vlgmr.msra.gmra.mrb[8].mxu1 %vm256_vm1, %v350_v20 }
 0x265   :  { %5219 = vmatpush3.bf16.msra.mxu1 %v5685_v34  ;;  %5222 = vmatprep.mubr.msk.bf16.mxu1 %vm5941_vm2, %v5940_v56 }
 0x266   :  { %5220 = vmatprep.subr.bf16.mxu1 %v5940_v56 }
 0x269   :  { %5221 = vmatpush3.bf16.msra.mxu1 %v5686_v35 }
 0x26a   :  { %5226 = vmatprep.subr.bf16.mxu1 %v5940_v56 }
 0x26c   :  { %5223 = vmatmul.mubr.msk.bf16.vlgmr.msra.gmra.mrb[12].mxu1 %vm256_vm1, %v421_v32 }
 0x26d   :  { %5227 = vmatpush3.bf16.msra.mxu1 %v5687_v36  ;;  %5230 = vmatprep.mubr.msk.bf16.mxu1 %vm5941_vm2, %v5940_v56 }
 0x26e   :  { %5228 = vmatprep.subr.bf16.mxu1 %v5940_v56 }
 0x271   :  { %5229 = vmatpush3.bf16.msra.mxu1 %v5688_v37 }
 0x272   :  { %5234 = vmatprep.subr.bf16.mxu1 %v5940_v56 }
 0x274   :  { %5231 = vmatmul.mubr.msk.bf16.vlgmr.msra.gmra.mrb[16].mxu1 %vm256_vm1, %v350_v20  ;;  %v4801_v20 = vld [vmem:[%s7369_s11 + $0x1] ss:$0 sm:$0xff] }
 0x275   :  { %5235 = vmatpush3.bf16.msra.mxu1 %v5689_v38  ;;  %5238 = vmatprep.mubr.msk.bf16.mxu1 %vm5941_vm2, %v5940_v56 }
 0x276   :  { %5236 = vmatprep.subr.bf16.mxu1 %v5940_v56 }
 0x279   :  { %5237 = vmatpush3.bf16.msra.mxu1 %v5690_v39 }
 0x27a   :  { %5248 = vmatprep.subr.bf16.mxu1 %v5940_v56 }
 0x27c   :  { %5239 = vmatmul.mubr.msk.bf16.vlgmr.msra.gmra.mrb[20].mxu1 %vm256_vm1, %v421_v32 }
 0x27d   :  { %5250 = vmatprep.mubr.msk.bf16.mxu1 %vm5941_vm2, %v5940_v56 }
 0x327   :  { %v407_v40 = vpop.f32.mrb[0].mxu1 }
 0x328   :  { %v5200_v41 = vpop.f32.mrb[1].mxu1  ;;  %v408_v46 = vadd.f32 %v4766_v44, %v407_v40 }
 0x329   :  { %v410_v42 = vpop.f32.mrb[2].mxu1 }
 0x32a   :  { %v5201_v43 = vpop.f32.mrb[3].mxu1  ;;  %v411_v48 = vadd.f32 %v4766_v44, %v410_v42  ;;  %v414_v52 = vmul.f32 0.35355338, %v408_v46 }
 0x32c   :  { %v415_v57 = vmul.f32 0.35355338, %v411_v48 }
 0x32f   :  { %v479_v47 = vpop.f32.mrb[4].mxu1 }
 0x330   :  { %v480_v49 = vadd.f32 %v4775_v45, %v479_v47  ;;  %v5208_v50 = vpop.f32.mrb[5].mxu1 }
 0x331   :  { %v482_v51 = vpop.f32.mrb[6].mxu1 }
 0x332   :  { %v486_v53 = vmul.f32 0.35355338, %v480_v49  ;;  %v483_v54 = vadd.f32 %v4775_v45, %v482_v51  ;;  %v5209_v55 = vpop.f32.mrb[7].mxu1  ;;  %v4805_v51 = vld [vmem:[%s7370_s5] ss:$0 sm:$0xff] }
 0x334   :  { %v748_v58 = vpack.c.bf16 %v486_v53, %v414_v52  ;;  %v487_v59 = vmul.f32 0.35355338, %v483_v54 }
 0x336   :  { %v6245_v60 = vpack.c.bf16 %v487_v59, %v415_v57  ;;  %874 = vrot.lane.b32.xlu0 %v748_v58, %s7397_s1 }
 0x337   :  { %v545_v61 = vpop.f32.mrb[8].mxu1 }
 0x338   :  { %v5216_v62 = vpop.f32.mrb[9].mxu1  ;;  %v546_v4 = vadd.f32 %v4779_v1, %v545_v61 }
 0x339   :  { %v548_v63 = vpop.f32.mrb[10].mxu1 }
 0x33a   :  { %v5217_v0 = vpop.f32.mrb[11].mxu1  ;;  %v549_v8 = vadd.f32 %v4779_v1, %v548_v63 }
 0x33f   :  { %v611_v3 = vpop.f32.mrb[12].mxu1 }
 0x340   :  { %v612_v5 = vadd.f32 %v4788_v2, %v611_v3  ;;  %v5224_v6 = vpop.f32.mrb[13].mxu1 }
 0x341   :  { %v614_v7 = vpop.f32.mrb[14].mxu1 }
 0x342   :  { %v749_v9 = vpack.c.bf16 %v612_v5, %v546_v4  ;;  %v615_v10 = vadd.f32 %v4788_v2, %v614_v7  ;;  %v5225_v11 = vpop.f32.mrb[15].mxu1 }
 0x344   :  { %v1271_v12 = vpack.c.bf16 %v615_v10, %v549_v8  ;;  %877 = vrot.lane.b32.xlu1 %v749_v9, %s7397_s1  ;;  %v762_v13 = vsel %vm757_vm3, %v749_v9, 0 }
 0x345   :  { %5243 = vmatpush3.bf16.xpose.msra.mxu0 %v762_v13 }
 0x346   :  { %1397 = vrot.lane.b32.xlu0 %v1271_v12, %s7397_s1  ;;  %5254 = vmatprep.subr.bf16.mxu0 %v5940_v56  ;;  %v1283_v41 = vsel %vm757_vm3, %v1271_v12, 0 }
 0x347   :  { %v675_v14 = vpop.f32.mrb[16].mxu1 }
 0x348   :  { %999 = vrot.lane.b32.xlu1 %v749_v9, %s7393_s26  ;;  %v5232_v15 = vpop.f32.mrb[17].mxu1  ;;  %v676_v22 = vadd.f32 %v4792_v16, %v675_v14 }
 0x349   :  { %v678_v17 = vpop.f32.mrb[18].mxu1 }
 0x34a   :  { %v679_v18 = vadd.f32 %v4792_v16, %v678_v17  ;;  %1519 = vrot.lane.b32.xlu0 %v1271_v12, %s7393_s26  ;;  %v5233_v19 = vpop.f32.mrb[19].mxu1 }
 0x34c   :  { %997 = vrot.lane.b32.xlu1 %v748_v58, %s7393_s26  ;;  %5245 = vmatmul.mubr.msk.bf16.vlgmr.msra.gmra.mrb[4].mxu0 %vm757_vm3, %v748_v58 }
 0x34d   :  { %5256 = vmatprep.mubr.msk.bf16.mxu0 %vm5941_vm2, %v5940_v56 }
 0x34e   :  { %1640 = vrot.lane.b32.xlu0 %v1271_v12, %s7395_s2 }
 0x34f   :  { %v741_v21 = vpop.f32.mrb[20].mxu1 }
 0x350   :  { %v742_v23 = vadd.f32 %v4801_v20, %v741_v21  ;;  %1120 = vrot.lane.b32.xlu1 %v749_v9, %s7395_s2  ;;  %v5240_v24 = vpop.f32.mrb[21].mxu1 }
 0x351   :  { %v744_v25 = vpop.f32.mrb[22].mxu1 }
 0x352   :  { %v6272_v26 = vpack.c.bf16 %v742_v23, %v676_v22  ;;  %v745_v28 = vadd.f32 %v4801_v20, %v744_v25  ;;  %v5241_v29 = vpop.f32.mrb[23].mxu1  ;;  %v4814_v23 = vld [vmem:[%s7370_s5 + $0x1] ss:$0 sm:$0xff] }
 0x354   :  { %v6274_v31 = vpack.c.bf16 %v745_v28, %v679_v18  ;;  %1118 = vrot.lane.b32.xlu1 %v748_v58, %s7395_s2  ;;  %5249 = vmatpush3.bf16.msra.mxu1 %v6272_v26 }
 0x355   :  { %5260 = vmatprep.subr.bf16.mxu1 %v5940_v56 }
 0x358   :  { %1394 = vrot.lane.b32.xlu1 %v6245_v60, %s7397_s1 }
 0x35c   :  { %1517 = vrot.lane.b32.xlu1 %v6245_v60, %s7393_s26 }
 0x360   :  { %1638 = vrot.lane.b32.xlu1 %v6245_v60, %s7395_s2 }
 0x3a8   :  { %v875_v35 = vpop.permute.xlu0 %874 }
 0x3b6   :  { %v878_v32 = vpop.permute.xlu1 %877 }
 0x3b7   :  { %v883_v33 = vsel %vm757_vm3, %v878_v32, 0 }
 0x3b8   :  { %5255 = vmatpush3.bf16.xpose.msra.mxu0 %v883_v33  ;;  %v1398_v42 = vpop.permute.xlu0 %1397 }
 0x3b9   :  { %5266 = vmatprep.subr.bf16.mxu0 %v5940_v56  ;;  %v1403_v43 = vsel %vm757_vm3, %v1398_v42, 0 }
 0x3ba   :  { %v1000_v34 = vpop.permute.xlu1 %999 }
 0x3bb   :  { %v1005_v37 = vsel %vm757_vm3, %v1000_v34, 0 }
 0x3bc   :  { %v1520_v44 = vpop.permute.xlu0 %1519 }
 0x3bd   :  { %v1525_v46 = vsel %vm757_vm3, %v1520_v44, 0 }
 0x3be   :  { %v998_v36 = vpop.permute.xlu1 %997 }
 0x3bf   :  { %5257 = vmatmul.mubr.msk.bf16.vlgmr.msra.gmra.mrb[8].mxu0 %vm757_vm3, %v875_v35 }
 0x3c0   :  { %5267 = vmatpush3.bf16.xpose.msra.mxu0 %v1005_v37  ;;  %5268 = vmatprep.mubr.msk.bf16.mxu0 %vm5941_vm2, %v5940_v56  ;;  %v1641_v47 = vpop.permute.xlu0 %1640 }
 0x3c1   :  { %5278 = vmatprep.subr.bf16.mxu0 %v5940_v56  ;;  %v1646_v49 = vsel %vm757_vm3, %v1641_v47, 0 }
 0x3c2   :  { %v1121_v38 = vpop.permute.xlu1 %1120 }
 0x3c3   :  { %v1126_v39 = vsel %vm757_vm3, %v1121_v38, 0 }
 0x3c6   :  { %v1119_v40 = vpop.permute.xlu1 %1118 }
 0x3c7   :  { %5269 = vmatmul.mubr.msk.bf16.vlgmr.msra.gmra.mrb[12].mxu0 %vm757_vm3, %v998_v36 }
 0x3c8   :  { %5279 = vmatpush3.bf16.xpose.msra.mxu0 %v1126_v39  ;;  %5280 = vmatprep.mubr.msk.bf16.mxu0 %vm5941_vm2, %v5940_v56 }
 0x3c9   :  { %5290 = vmatprep.subr.bf16.mxu0 %v5940_v56 }
 0x3ca   :  { %v1395_v45 = vpop.permute.xlu1 %1394 }
 0x3ce   :  { %v1518_v48 = vpop.permute.xlu1 %1517 }
 0x3cf   :  { %5281 = vmatmul.mubr.msk.bf16.vlgmr.msra.gmra.mrb[16].mxu0 %vm757_vm3, %v1119_v40 }
 0x3d0   :  { %5291 = vmatpush3.bf16.xpose.msra.mxu0 %v1283_v41  ;;  %5292 = vmatprep.mubr.msk.bf16.mxu0 %vm5941_vm2, %v5940_v56 }
 0x3d1   :  { %5302 = vmatprep.subr.bf16.mxu0 %v5940_v56 }
 0x3d2   :  { %v1639_v50 = vpop.permute.xlu1 %1638 }
 0x3d7   :  { %5293 = vmatmul.mubr.msk.bf16.vlgmr.msra.gmra.mrb[20].mxu0 %vm757_vm3, %v6245_v60 }
 0x3d8   :  { %5303 = vmatpush3.bf16.xpose.msra.mxu0 %v1403_v43  ;;  %5304 = vmatprep.mubr.msk.bf16.mxu0 %vm5941_vm2, %v5940_v56 }
 0x3d9   :  { %5314 = vmatprep.subr.bf16.mxu0 %v5940_v56 }
 0x3df   :  { %5305 = vmatmul.mubr.msk.bf16.vlgmr.msra.gmra.mrb[24].mxu0 %vm757_vm3, %v1395_v45 }
 0x3e0   :  { %5315 = vmatpush3.bf16.xpose.msra.mxu0 %v1525_v46  ;;  %5316 = vmatprep.mubr.msk.bf16.mxu0 %vm5941_vm2, %v5940_v56 }
 0x3e1   :  { %5326 = vmatprep.subr.bf16.mxu0 %v5940_v56 }
 0x3e7   :  { %5317 = vmatmul.mubr.msk.bf16.vlgmr.msra.gmra.mrb[28].mxu0 %vm757_vm3, %v1518_v48 }
 0x3e8   :  { %5327 = vmatpush3.bf16.xpose.msra.mxu0 %v1646_v49  ;;  %5328 = vmatprep.mubr.msk.bf16.mxu0 %vm5941_vm2, %v5940_v56 }
 0x3e9   :  { %5338 = vmatprep.subr.bf16.mxu0 %v5940_v56 }
 0x3ef   :  { %5329 = vmatmul.mubr.msk.bf16.vlgmr.msra.gmra.mrb[32].mxu0 %vm757_vm3, %v1639_v50 }
 0x3f0   :  { %5342 = vmatprep.mubr.msk.bf16.mxu0 %vm5941_vm2, %v5940_v56 }
 0x41f   :  { %v798_v52 = vpop.f32.mrb[4].mxu0 }
 0x420   :  { %v6324_v53 = vadd.f32 %v4805_v51, %v798_v52  ;;  %v5246_v54 = vpop.f32.mrb[5].mxu0 }
 0x421   :  { %v801_v55 = vpop.f32.mrb[6].mxu0 }
 0x422   :  { %v802_v57 = vadd.f32 %v4805_v51, %v801_v55  ;;  %v5247_v58 = vpop.f32.mrb[7].mxu0  ;;  %v806_v59 = vsel %vm805_vm4, %v6324_v53, -inf }
 0x423   :  { %807 = vmax.xlane.f32.xlu0 %v806_v59 }
 0x424   :  { %v809_v60 = vsel %vm805_vm4, %v802_v57, -inf }
 0x425   :  { %810 = vmax.xlane.f32.xlu1 %v809_v60 }
 0x492   :  { %v919_v61 = vpop.f32.mrb[8].mxu0 }
 0x493   :  { %v6329_v62 = vadd.f32 %v4805_v51, %v919_v61  ;;  %v5258_v63 = vpop.f32.mrb[9].mxu0 }
 0x494   :  { %v922_v0 = vpop.f32.mrb[10].mxu0 }
 0x495   :  { %v6331_v1 = vadd.f32 %v4805_v51, %v922_v0  ;;  %v5259_v2 = vpop.f32.mrb[11].mxu0  ;;  %v926_v3 = vsel %vm805_vm4, %v6329_v62, -inf }
 0x496   :  { %927 = vmax.xlane.f32.xlu0 %v926_v3 }
 0x497   :  { %v929_v4 = vsel %vm805_vm4, %v6331_v1, -inf }
 0x49a   :  { %930 = vmax.xlane.f32.xlu0 %v929_v4  ;;  %v1041_v5 = vpop.f32.mrb[12].mxu0 }
 0x49b   :  { %v6337_v6 = vadd.f32 %v4805_v51, %v1041_v5  ;;  %v5270_v7 = vpop.f32.mrb[13].mxu0 }
 0x49c   :  { %v1044_v8 = vpop.f32.mrb[14].mxu0 }
 0x49d   :  { %v6339_v9 = vadd.f32 %v4805_v51, %v1044_v8  ;;  %v5271_v10 = vpop.f32.mrb[15].mxu0  ;;  %v1048_v11 = vsel %vm805_vm4, %v6337_v6, -inf }
 0x49e   :  { %1049 = vmax.xlane.f32.xlu1 %v1048_v11 }
 0x49f   :  { %v1051_v12 = vsel %vm805_vm4, %v6339_v9, -inf }
 0x4a0   :  { %1052 = vmax.xlane.f32.xlu0 %v1051_v12 }
 0x4a2   :  { %v1162_v13 = vpop.f32.mrb[16].mxu0 }
 0x4a3   :  { %v6345_v14 = vadd.f32 %v4805_v51, %v1162_v13  ;;  %v5282_v15 = vpop.f32.mrb[17].mxu0 }
 0x4a4   :  { %v1165_v16 = vpop.f32.mrb[18].mxu0 }
 0x4a5   :  { %v6347_v17 = vadd.f32 %v4805_v51, %v1165_v16  ;;  %v5283_v18 = vpop.f32.mrb[19].mxu0  ;;  %v1169_v19 = vsel %vm805_vm4, %v6345_v14, -inf }
 0x4a6   :  { %1170 = vmax.xlane.f32.xlu1 %v1169_v19 }
 0x4a7   :  { %v1172_v20 = vsel %vm805_vm4, %v6347_v17, -inf }
 0x4a8   :  { %1173 = vmax.xlane.f32.xlu0 %v1172_v20 }
 0x4aa   :  { %v1319_v21 = vpop.f32.mrb[20].mxu0 }
 0x4ab   :  { %v5294_v22 = vpop.f32.mrb[21].mxu0  ;;  %v6379_v60 = vadd.f32 %v4814_v23, %v1319_v21 }
 0x4ac   :  { %v1322_v24 = vpop.f32.mrb[22].mxu0 }
 0x4ad   :  { %v6356_v25 = vadd.f32 %v4814_v23, %v1322_v24  ;;  %v5295_v28 = vpop.f32.mrb[23].mxu0  ;;  %v1326_v63 = vsel %vm805_vm4, %v6379_v60, -inf }
 0x4af   :  { %v1329_v29 = vsel %vm805_vm4, %v6356_v25, -inf }
 0x4b0   :  { %1330 = vmax.xlane.f32.xlu0 %v1329_v29 }
 0x4b2   :  { %v811_v32 = vpop.xlane.xlu1 %810  ;;  %v1439_v33 = vpop.f32.mrb[24].mxu0 }
 0x4b3   :  { %v813_v34 = vsub.f32 %v802_v57, %v811_v32  ;;  %v5306_v35 = vpop.f32.mrb[25].mxu0  ;;  %v808_v57 = vpop.xlane.xlu0 %807  ;;  %v6381_v61 = vadd.f32 %v4814_v23, %v1439_v33 }
 0x4b4   :  { %v1442_v36 = vpop.f32.mrb[26].mxu0  ;;  %v812_v58 = vsub.f32 %v6324_v53, %v808_v57 }
 0x4b5   :  { %v816_v37 = vmul.f32 1.442695, %v813_v34  ;;  %v6360_v38 = vadd.f32 %v4814_v23, %v1442_v36  ;;  %v5307_v39 = vpop.f32.mrb[27].mxu0  ;;  %v1446_v2 = vsel %vm805_vm4, %v6381_v61, -inf }
 0x4b6   :  { %v814_v59 = vmul.f32 1.442695, %v812_v58 }
 0x4b7   :  { %5743 = vpow2.f32 %v816_v37  ;;  %950 = vrot.lane.b32.xlu1 %v6272_v26, %s7397_s1  ;;  %v1449_v40 = vsel %vm805_vm4, %v6360_v38, -inf }
 0x4b8   :  { %1450 = vmax.xlane.f32.xlu0 %v1449_v40  ;;  %5745 = vpow2.f32 %v814_v59 }
 0x4ba   :  { %v1561_v41 = vpop.f32.mrb[28].mxu0 }
 0x4bb   :  { %v5318_v42 = vpop.f32.mrb[29].mxu0  ;;  %v6385_v0 = vadd.f32 %v4814_v23, %v1561_v41 }
 0x4bc   :  { %v1564_v43 = vpop.f32.mrb[30].mxu0 }
 0x4bd   :  { %v6366_v44 = vadd.f32 %v4814_v23, %v1564_v43  ;;  %v5319_v45 = vpop.f32.mrb[31].mxu0  ;;  %v1568_v3 = vsel %vm805_vm4, %v6385_v0, -inf }
 0x4bf   :  { %v1571_v46 = vsel %vm805_vm4, %v6366_v44, -inf }
 0x4c0   :  { %1572 = vmax.xlane.f32.xlu0 %v1571_v46 }
 0x4c1   :  { %v6370_v47 = vpop.eup %5743 }
 0x4c2   :  { %v1682_v48 = vpop.f32.mrb[32].mxu0  ;;  %v821_v49 = vsel %vm805_vm4, %v6370_v47, 0.0  ;;  %v6391_v53 = vpop.eup %5745 }
 0x4c3   :  { %v5330_v50 = vpop.f32.mrb[33].mxu0  ;;  %v6393_v4 = vadd.f32 %v4814_v23, %v1682_v48  ;;  %v818_v5 = vsel %vm805_vm4, %v6391_v53, 0.0 }
 0x4c4   :  { %822 = vadd.xlane.f32.xlu0 %v821_v49  ;;  %v1685_v51 = vpop.f32.mrb[34].mxu0 }
 0x4c5   :  { %v6374_v52 = vadd.f32 %v4814_v23, %v1685_v51  ;;  %v5331_v54 = vpop.f32.mrb[35].mxu0  ;;  %v1689_v7 = vsel %vm805_vm4, %v6393_v4, -inf }
 0x4c7   :  { %v1692_v55 = vsel %vm805_vm4, %v6374_v52, -inf }
 0x4c8   :  { %1693 = vmax.xlane.f32.xlu0 %v1692_v55 }
 0x4db   :  { %1327 = vmax.xlane.f32.xlu1 %v1326_v63 }
 0x4df   :  { %1447 = vmax.xlane.f32.xlu1 %v1446_v2 }
 0x4e3   :  { %1569 = vmax.xlane.f32.xlu1 %v1568_v3 }
 0x4e7   :  { %819 = vadd.xlane.f32.xlu1 %v818_v5 }
 0x4eb   :  { %1690 = vmax.xlane.f32.xlu1 %v1689_v7 }
 0x523   :  { %v928_v8 = vpop.xlane.xlu0 %927 }
 0x524   :  { %v932_v10 = vsub.f32 %v6329_v62, %v928_v8 }
 0x526   :  { %v934_v11 = vmul.f32 1.442695, %v932_v10 }
 0x527   :  { %v931_v12 = vpop.xlane.xlu0 %930 }
 0x528   :  { %5747 = vpow2.f32 %v934_v11  ;;  %v933_v13 = vsub.f32 %v6331_v1, %v931_v12 }
 0x52a   :  { %v936_v15 = vmul.f32 1.442695, %v933_v13 }
 0x52b   :  { %v1050_v62 = vpop.xlane.xlu1 %1049 }
 0x52c   :  { %5749 = vpow2.f32 %v936_v15  ;;  %v1054_v1 = vsub.f32 %v6337_v6, %v1050_v62 }
 0x52d   :  { %v1053_v21 = vpop.xlane.xlu0 %1052 }
 0x52e   :  { %v1055_v23 = vsub.f32 %v6339_v9, %v1053_v21  ;;  %v1056_v24 = vmul.f32 1.442695, %v1054_v1 }
 0x530   :  { %v1058_v32 = vmul.f32 1.442695, %v1055_v23  ;;  %5751 = vpow2.f32 %v1056_v24 }
 0x532   :  { %v6401_v16 = vpop.eup %5747  ;;  %5753 = vpow2.f32 %v1058_v32 }
 0x533   :  { %v938_v18 = vsel %vm805_vm4, %v6401_v16, 0.0  ;;  %v1171_v22 = vpop.xlane.xlu1 %1170 }
 0x534   :  { %939 = vadd.xlane.f32.xlu1 %v938_v18  ;;  %v1175_v28 = vsub.f32 %v6345_v14, %v1171_v22 }
 0x535   :  { %v1174_v29 = vpop.xlane.xlu0 %1173 }
 0x536   :  { %v6405_v19 = vpop.eup %5749  ;;  %v1177_v33 = vmul.f32 1.442695, %v1175_v28  ;;  %v1176_v34 = vsub.f32 %v6347_v17, %v1174_v29 }
 0x537   :  { %v941_v20 = vsel %vm805_vm4, %v6405_v19, 0.0  ;;  %v6418_v37 = vpop.permute.xlu1 %950 }
 0x538   :  { %942 = vadd.xlane.f32.xlu0 %v941_v20  ;;  %5755 = vpow2.f32 %v1177_v33 }
 0x53a   :  { %v6420_v39 = vpop.eup %5751 }
 0x53b   :  { %v1060_v17 = vsel %vm805_vm4, %v6420_v39, 0.0 }
 0x53c   :  { %v6422_v14 = vpop.eup %5753 }
 0x53d   :  { %v1331_v35 = vpop.xlane.xlu0 %1330  ;;  %v1063_v49 = vsel %vm805_vm4, %v6422_v14, 0.0 }
 0x53e   :  { %v1333_v36 = vsub.f32 %v6356_v25, %v1331_v35 }
 0x540   :  { %v1336_v6 = vmul.f32 1.442695, %v1333_v36 }
 0x542   :  { %v6426_v42 = vpop.eup %5755 }
 0x543   :  { %v1181_v48 = vsel %vm805_vm4, %v6426_v42, 0.0 }
 0x545   :  { %1192 = vrot.lane.b32.xlu1 %v6272_v26, %s7395_s2  ;;  %v1451_v9 = vpop.xlane.xlu0 %1450 }
 0x546   :  { %v1453_v25 = vsub.f32 %v6360_v38, %v1451_v9 }
 0x548   :  { %v1456_v55 = vmul.f32 1.442695, %v1453_v25 }
 0x54d   :  { %v1573_v40 = vpop.xlane.xlu0 %1572 }
 0x54e   :  { %1071 = vrot.lane.b32.xlu0 %v6272_v26, %s7393_s26  ;;  %v1179_v26 = vmul.f32 1.442695, %v1176_v34  ;;  %v1575_v57 = vsub.f32 %v6366_v44, %v1573_v40 }
 0x550   :  { %5757 = vpow2.f32 %v1179_v26  ;;  %v1578_v63 = vmul.f32 1.442695, %v1575_v57 }
 0x551   :  { %5759 = vpow2.f32 %v1336_v6  ;;  %v823_v54 = vpop.xlane.xlu0 %822 }
 0x555   :  { %v1694_v2 = vpop.xlane.xlu0 %1693 }
 0x556   :  { %v1696_v5 = vsub.f32 %v6374_v52, %v1694_v2 }
 0x558   :  { %v1699_v12 = vmul.f32 1.442695, %v1696_v5 }
 0x55a   :  { %v6434_v50 = vpop.eup %5757 }
 0x55b   :  { %v1184_v59 = vsel %vm805_vm4, %v6434_v50, 0.0 }
 0x568   :  { %v1328_v41 = vpop.xlane.xlu1 %1327 }
 0x569   :  { %v1332_v43 = vsub.f32 %v6379_v60, %v1328_v41  ;;  %1061 = vadd.xlane.f32.xlu1 %v1060_v17  ;;  %v6440_v60 = vpop.eup %5759 }
 0x56a   :  { %v1341_v3 = vsel %vm805_vm4, %v6440_v60, 0.0 }
 0x56b   :  { %v1334_v45 = vmul.f32 1.442695, %v1332_v43 }
 0x56c   :  { %v1448_v46 = vpop.xlane.xlu1 %1447 }
 0x56d   :  { %5761 = vpow2.f32 %v1334_v45  ;;  %v1452_v51 = vsub.f32 %v6381_v61, %v1448_v46  ;;  %1182 = vadd.xlane.f32.xlu1 %v1181_v48  ;;  %1064 = vadd.xlane.f32.xlu0 %v1063_v49 }
 0x56f   :  { %v1454_v38 = vmul.f32 1.442695, %v1452_v51 }
 0x570   :  { %v1570_v58 = vpop.xlane.xlu1 %1569 }
 0x571   :  { %5763 = vpow2.f32 %v1454_v38  ;;  %1185 = vadd.xlane.f32.xlu0 %v1184_v59  ;;  %v1574_v29 = vsub.f32 %v6385_v0, %v1570_v58 }
 0x572   :  { %5765 = vpow2.f32 %v1456_v55 }
 0x573   :  { %5767 = vrcp.f32 %v823_v54  ;;  %v1576_v32 = vmul.f32 1.442695, %v1574_v29 }
 0x574   :  { %v820_v61 = vpop.xlane.xlu1 %819 }
 0x575   :  { %1342 = vadd.xlane.f32.xlu0 %v1341_v3  ;;  %5769 = vrcp.f32 %v820_v61 }
 0x576   :  { %5771 = vpow2.f32 %v1578_v63 }
 0x577   :  { %v6444_v44 = vpop.eup %5761 }
 0x578   :  { %v1691_v7 = vpop.xlane.xlu1 %1690  ;;  %v1338_v8 = vsel %vm805_vm4, %v6444_v44, 0.0 }
 0x579   :  { %v1695_v10 = vsub.f32 %v6393_v4, %v1691_v7  ;;  %1339 = vadd.xlane.f32.xlu1 %v1338_v8 }
 0x57b   :  { %v6450_v11 = vpop.eup %5763  ;;  %v1697_v13 = vmul.f32 1.442695, %v1695_v10 }
 0x57c   :  { %v1458_v15 = vsel %vm805_vm4, %v6450_v11, 0.0  ;;  %v6454_v18 = vpop.eup %5765 }
 0x57d   :  { %5773 = vpow2.f32 %v1697_v13  ;;  %1459 = vadd.xlane.f32.xlu0 %v1458_v15  ;;  %v5768_v20 = vpop.eup %5767  ;;  %v1461_v62 = vsel %vm805_vm4, %v6454_v18, 0.0 }
 0x57e   :  { %5775 = vpow2.f32 %v1699_v12  ;;  %v827_v4 = vmul.f32 %v5768_v20, %v6370_v47 }
 0x57f   :  { %v5770_v52 = vpop.eup %5769  ;;  %5777 = vpow2.f32 %v1576_v32 }
 0x580   :  { %v6458_v1 = vpop.eup %5771  ;;  %v826_v21 = vmul.f32 %v5770_v52, %v6391_v53 }
 0x581   :  { %1462 = vadd.xlane.f32.xlu0 %v1461_v62  ;;  %v1583_v23 = vsel %vm805_vm4, %v6458_v1, 0.0 }
 0x582   :  { %v828_v22 = vpack.c.bf16 %v827_v4, %v826_v21 }
 0x584   :  { %5251 = vmatmul.mubr.msk.bf16.vlgmr.msra.gmra.mrb[24].mxu1 %vm805_vm4, %v828_v22 }
 0x585   :  { %1584 = vadd.xlane.f32.xlu0 %v1583_v23  ;;  %5261 = vmatpush3.bf16.msra.mxu1 %v6418_v37 }
 0x586   :  { %5262 = vmatprep.mubr.msk.bf16.mxu1 %vm5941_vm2, %v5940_v56  ;;  %5272 = vmatprep.subr.bf16.mxu1 %v5940_v56 }
 0x587   :  { %v6468_v24 = vpop.eup %5773 }
 0x588   :  { %v1701_v47 = vsel %vm805_vm4, %v6468_v24, 0.0  ;;  %v6473_v53 = vpop.eup %5775 }
 0x589   :  { %1702 = vadd.xlane.f32.xlu0 %v1701_v47  ;;  %v1704_v28 = vsel %vm805_vm4, %v6473_v53, 0.0  ;;  %v6482_v33 = vpop.eup %5777 }
 0x58a   :  { %1470 = vrot.lane.b32.xlu1 %v6274_v31, %s7397_s1  ;;  %v1580_v34 = vsel %vm805_vm4, %v6482_v33, 0.0 }
 0x58d   :  { %1705 = vadd.xlane.f32.xlu0 %v1704_v28 }
 0x5a3   :  { %1591 = vrot.lane.b32.xlu0 %v6274_v31, %s7393_s26 }
 0x5ae   :  { %1581 = vadd.xlane.f32.xlu1 %v1580_v34 }
 0x5bf   :  { %1712 = vrot.lane.b32.xlu1 %v6274_v31, %s7395_s2 }
 0x5c1   :  { %v940_v35 = vpop.xlane.xlu1 %939 }
 0x5c2   :  { %5779 = vrcp.f32 %v940_v35 }
 0x5c5   :  { %v943_v26 = vpop.xlane.xlu0 %942  ;;  %v1193_v41 = vpop.permute.xlu1 %1192 }
 0x5c6   :  { %5781 = vrcp.f32 %v943_v26 }
 0x5c9   :  { %v1072_v40 = vpop.permute.xlu0 %1071 }
 0x5cc   :  { %v5780_v36 = vpop.eup %5779 }
 0x5cd   :  { %v946_v6 = vmul.f32 %v5780_v36, %v6401_v16 }
 0x5d0   :  { %v5782_v0 = vpop.eup %5781 }
 0x5d1   :  { %v947_v37 = vmul.f32 %v5782_v0, %v6405_v19 }
 0x5d3   :  { %v948_v9 = vpack.c.bf16 %v947_v37, %v946_v6 }
 0x5d5   :  { %5263 = vmatmul.mubr.msk.bf16.vlgmr.msra.gmra.mrb[28].mxu1 %vm805_vm4, %v948_v9 }
 0x5d6   :  { %5273 = vmatpush3.bf16.msra.mxu1 %v1072_v40  ;;  %5274 = vmatprep.mubr.msk.bf16.mxu1 %vm5941_vm2, %v5940_v56 }
 0x5d7   :  { %5284 = vmatprep.subr.bf16.mxu1 %v5940_v56 }
 0x5f6   :  { %v1062_v17 = vpop.xlane.xlu1 %1061 }
 0x5f7   :  { %5783 = vrcp.f32 %v1062_v17 }
 0x5fa   :  { %v1065_v43 = vpop.xlane.xlu0 %1064  ;;  %v1183_v45 = vpop.xlane.xlu1 %1182 }
 0x5fb   :  { %5785 = vrcp.f32 %v1065_v43 }
 0x5fe   :  { %v1186_v25 = vpop.xlane.xlu0 %1185 }
 0x5ff   :  { %5787 = vrcp.f32 %v1186_v25 }
 0x600   :  { %5789 = vrcp.f32 %v1183_v45 }
 0x601   :  { %v5784_v16 = vpop.eup %5783 }
 0x602   :  { %v1343_v46 = vpop.xlane.xlu0 %1342  ;;  %v1068_v49 = vmul.f32 %v5784_v16, %v6420_v39 }
 0x605   :  { %v5786_v19 = vpop.eup %5785 }
 0x606   :  { %v1340_v48 = vpop.xlane.xlu1 %1339  ;;  %v1069_v51 = vmul.f32 %v5786_v19, %v6422_v14 }
 0x607   :  { %5791 = vrcp.f32 %v1340_v48 }
 0x608   :  { %v1070_v54 = vpack.c.bf16 %v1069_v51, %v1068_v49  ;;  %5793 = vrcp.f32 %v1343_v46 }
 0x609   :  { %v5788_v55 = vpop.eup %5787 }
 0x60a   :  { %v1460_v57 = vpop.xlane.xlu0 %1459  ;;  %5275 = vmatmul.mubr.msk.bf16.vlgmr.msra.gmra.mrb[32].mxu1 %vm805_vm4, %v1070_v54  ;;  %v5790_v38 = vpop.eup %5789  ;;  %v1190_v58 = vmul.f32 %v5788_v55, %v6434_v50 }
 0x60b   :  { %5285 = vmatpush3.bf16.msra.mxu1 %v1193_v41  ;;  %5286 = vmatprep.mubr.msk.bf16.mxu1 %vm5941_vm2, %v5940_v56  ;;  %v1189_v39 = vmul.f32 %v5790_v38, %v6426_v42  ;;  %v1471_v8 = vpop.permute.xlu1 %1470  ;;  %v5692_v38 = vld [vmem:[%s7371_s12 + $0x10] sm:$0xff]  }
 0x60c   :  { %5296 = vmatprep.subr.bf16.mxu1 %v5940_v56 }
 0x60d   :  { %v1191_v14 = vpack.c.bf16 %v1190_v58, %v1189_v39 }
 0x60e   :  { %v1463_v59 = vpop.xlane.xlu0 %1462 }
 0x60f   :  { %5795 = vrcp.f32 %v1463_v59 }
 0x610   :  { %5797 = vrcp.f32 %v1460_v57  ;;  %v5691_v57 = vld [vmem:[%s7371_s12] sm:$0xff]  }
 0x611   :  { %v5792_v63 = vpop.eup %5791  ;;  %5339 = vmatpush3.bf16.msra.mxu0 %v5691_v57 }
 0x612   :  { %v1585_v2 = vpop.xlane.xlu0 %1584  ;;  %5287 = vmatmul.mubr.msk.bf16.vlgmr.msra.gmra.mrb[36].mxu1 %vm805_vm4, %v1191_v14  ;;  %v5794_v61 = vpop.eup %5793  ;;  %v1346_v50 = vmul.f32 %v5792_v63, %v6444_v44  ;;  %5340 = vmatprep.subr.bf16.mxu0 %v5940_v56  ;;  %v5693_v14 = vld [vmem:[%s7371_s12 + $0x8] sm:$0xff]   ;;  %v5694_v63 = vld [vmem:[%s7371_s12 + $0x18] sm:$0xff]  }
 0x613   :  { %5297 = vmatpush3.bf16.msra.mxu1 %v6274_v31  ;;  %5298 = vmatprep.mubr.msk.bf16.mxu1 %vm5941_vm2, %v5940_v56  ;;  %v1347_v3 = vmul.f32 %v5794_v61, %v6440_v60  ;;  %5799 = vrcp.f32 %v1585_v2 }
 0x614   :  { %5308 = vmatprep.subr.bf16.mxu1 %v5940_v56 }
 0x615   :  { %v1348_v5 = vpack.c.bf16 %v1347_v3, %v1346_v50  ;;  %5341 = vmatpush3.bf16.msra.mxu0 %v5693_v14 }
 0x616   :  { %v1703_v42 = vpop.xlane.xlu0 %1702  ;;  %5354 = vmatprep.subr.bf16.mxu0 %v5940_v56 }
 0x619   :  { %v5796_v7 = vpop.eup %5795 }
 0x61a   :  { %5299 = vmatmul.mubr.msk.bf16.vlgmr.msra.gmra.mrb[40].mxu1 %vm805_vm4, %v1348_v5  ;;  %v5798_v10 = vpop.eup %5797  ;;  %v1467_v31 = vmul.f32 %v5796_v7, %v6454_v18  ;;  %v1706_v12 = vpop.xlane.xlu0 %1705 }
 0x61b   :  { %5309 = vmatpush3.bf16.msra.mxu1 %v1471_v8  ;;  %5310 = vmatprep.mubr.msk.bf16.mxu1 %vm5941_vm2, %v5940_v56  ;;  %v1466_v44 = vmul.f32 %v5798_v10, %v6450_v11 }
 0x61c   :  { %5320 = vmatprep.subr.bf16.mxu1 %v5940_v56 }
 0x61d   :  { %v1468_v13 = vpack.c.bf16 %v1467_v31, %v1466_v44  ;;  %v5800_v18 = vpop.eup %5799 }
 0x61e   :  { %v1592_v60 = vpop.permute.xlu0 %1591  ;;  %v1589_v52 = vmul.f32 %v5800_v18, %v6458_v1 }
 0x622   :  { %5311 = vmatmul.mubr.msk.bf16.vlgmr.msra.gmra.mrb[44].mxu1 %vm805_vm4, %v1468_v13 }
 0x623   :  { %5321 = vmatpush3.bf16.msra.mxu1 %v1592_v60  ;;  %5322 = vmatprep.mubr.msk.bf16.mxu1 %vm5941_vm2, %v5940_v56 }
 0x624   :  { %5332 = vmatprep.subr.bf16.mxu1 %v5940_v56 }
 0x63b   :  { %v1582_v15 = vpop.xlane.xlu1 %1581 }
 0x63c   :  { %5801 = vrcp.f32 %v1582_v15 }
 0x63d   :  { %5803 = vrcp.f32 %v1706_v12 }
 0x63e   :  { %5805 = vrcp.f32 %v1703_v42 }
 0x63f   :  { %v1713_v21 = vpop.permute.xlu1 %1712 }
 0x646   :  { %v5802_v20 = vpop.eup %5801 }
 0x647   :  { %v1588_v11 = vmul.f32 %v5802_v20, %v6482_v33  ;;  %v5804_v4 = vpop.eup %5803 }
 0x648   :  { %v5806_v22 = vpop.eup %5805  ;;  %v1710_v23 = vmul.f32 %v5804_v4, %v6473_v53 }
 0x649   :  { %v1590_v62 = vpack.c.bf16 %v1589_v52, %v1588_v11  ;;  %v1709_v47 = vmul.f32 %v5806_v22, %v6468_v24 }
 0x64b   :  { %5323 = vmatmul.mubr.msk.bf16.vlgmr.msra.gmra.mrb[48].mxu1 %vm805_vm4, %v1590_v62  ;;  %v1711_v28 = vpack.c.bf16 %v1710_v23, %v1709_v47 }
 0x64c   :  { %5333 = vmatpush3.bf16.msra.mxu1 %v1713_v21  ;;  %5334 = vmatprep.mubr.msk.bf16.mxu1 %vm5941_vm2, %v5940_v56 }
 0x64d   :  { %5346 = vmatprep.subr.bf16.mxu1 %v5940_v56 }
 0x653   :  { %5335 = vmatmul.mubr.msk.bf16.vlgmr.msra.gmra.mrb[52].mxu1 %vm805_vm4, %v1711_v28 }
 0x654   :  { %5350 = vmatprep.mubr.msk.bf16.mxu1 %vm5941_vm2, %v5940_v56  ;;  %5347 = vmatpush3.bf16.msra.mxu1 %v5692_v38  ;;  %v5936_v38 = vld [vmem:[%s7414_s3 + $0x8] sm:$0xff] }
 0x655   :  { %5348 = vmatprep.subr.bf16.mxu1 %v5940_v56 }
 0x657   :  { %v6530_v1 = vpop.f32.mrb[24].mxu1 }
 0x658   :  { %v5252_v29 = vpop.f32.mrb[25].mxu1  ;;  %5349 = vmatpush3.bf16.msra.mxu1 %v5694_v63 }
 0x659   :  { %v6532_v32 = vpop.f32.mrb[26].mxu1  ;;  %5362 = vmatprep.subr.bf16.mxu1 %v5940_v56 }
 0x65a   :  { %v5253_v33 = vpop.f32.mrb[27].mxu1 }
 0x6a8   :  { %v990_v34 = vpop.f32.mrb[28].mxu1 }
 0x6a9   :  { %v5264_v35 = vpop.f32.mrb[29].mxu1 }
 0x6aa   :  { %v993_v26 = vpop.f32.mrb[30].mxu1 }
 0x6ab   :  { %v5604_v53 = vpack.i.bf16 %v993_v26, %v990_v34  ;;  %v5265_v36 = vpop.f32.mrb[31].mxu1 }
 0x6ad   :  { %5605 = vrot.lane.b32.xlu1 %v5604_v53, %s7399_s6 }
 0x6dd   :  { %v1111_v24 = vpop.f32.mrb[32].mxu1 }
 0x6de   :  { %v5276_v0 = vpop.f32.mrb[33].mxu1 }
 0x6df   :  { %v1114_v6 = vpop.f32.mrb[34].mxu1 }
 0x6e0   :  { %v5609_v37 = vpack.i.bf16 %v1114_v6, %v1111_v24  ;;  %v5277_v9 = vpop.f32.mrb[35].mxu1 }
 0x6e2   :  { %5610 = vrot.lane.b32.xlu1 %v5609_v37, %s5946_s29 }
 0x6e5   :  { %v1232_v40 = vpop.f32.mrb[36].mxu1 }
 0x6e6   :  { %v5288_v41 = vpop.f32.mrb[37].mxu1 }
 0x6e7   :  { %v1235_v17 = vpop.f32.mrb[38].mxu1 }
 0x6e8   :  { %v5614_v43 = vpack.i.bf16 %v1235_v17, %v1232_v40  ;;  %v5289_v25 = vpop.f32.mrb[39].mxu1  ;;  %v4826_v40 = vld [vmem:[%s7372_s13] ss:$0 sm:$0xff] }
 0x6ea   :  { %5615 = vrot.lane.b32.xlu0 %v5614_v43, %s5947_s30  ;;  %v5935_v43 = vld [vmem:[%s7414_s3] sm:$0xff]  ;;  %s7423_s3 = smov 112  }
 0x6ed   :  { %v1386_v45 = vpop.f32.mrb[40].mxu1 }
 0x6ee   :  { %v5300_v16 = vpop.f32.mrb[41].mxu1 }
 0x6ef   :  { %v1389_v19 = vpop.f32.mrb[42].mxu1 }
 0x6f0   :  { %v5301_v46 = vpop.f32.mrb[43].mxu1 }
 0x6f5   :  { %v1510_v48 = vpop.f32.mrb[44].mxu1 }
 0x6f6   :  { %v5312_v49 = vpop.f32.mrb[45].mxu1 }
 0x6f7   :  { %v1513_v51 = vpop.f32.mrb[46].mxu1 }
 0x6f8   :  { %v5619_v54 = vpack.i.bf16 %v1513_v51, %v1510_v48  ;;  %v5313_v55 = vpop.f32.mrb[47].mxu1 }
 0x6fa   :  { %5620 = vrot.lane.b32.xlu1 %v5619_v54, %s7399_s6 }
 0x71e   :  { %v1631_v58 = vpop.f32.mrb[48].mxu1 }
 0x71f   :  { %v5324_v59 = vpop.f32.mrb[49].mxu1  ;;  %v5606_v8 = vpop.permute.xlu1 %5605 }
 0x720   :  { %v1634_v39 = vpop.f32.mrb[50].mxu1  ;;  %v5608_v44 = vunpack.i.h.bf16 %v5606_v8  ;;  %v5607_v13 = vunpack.i.l.bf16 %v5606_v8 }
 0x721   :  { %v5624_v2 = vpack.i.bf16 %v1634_v39, %v1631_v58  ;;  %v5325_v61 = vpop.f32.mrb[51].mxu1 }
 0x722   :  { %v1264_v22 = vsel %vm757_vm3, %v6532_v32, %v5608_v44  ;;  %v1263_v23 = vsel %vm757_vm3, %v6530_v1, %v5607_v13 }
 0x723   :  { %5625 = vrot.lane.b32.xlu1 %v5624_v2, %s5946_s29 }
 0x726   :  { %v1752_v50 = vpop.f32.mrb[52].mxu1 }
 0x727   :  { %v5336_v3 = vpop.f32.mrb[53].mxu1 }
 0x728   :  { %v1755_v42 = vpop.f32.mrb[54].mxu1 }
 0x729   :  { %v5629_v5 = vpack.i.bf16 %v1755_v42, %v1752_v50  ;;  %v5337_v7 = vpop.f32.mrb[55].mxu1 }
 0x72b   :  { %5630 = vrot.lane.b32.xlu1 %v5629_v5, %s5947_s30 }
 0x754   :  { %v5611_v10 = vpop.permute.xlu1 %5610 }
 0x755   :  { %v5613_v20 = vunpack.i.h.bf16 %v5611_v10  ;;  %v5612_v52 = vunpack.i.l.bf16 %v5611_v10 }
 0x757   :  { %v1266_v35 = vsel %vm805_vm4, %v1264_v22, %v5613_v20  ;;  %v1265_v26 = vsel %vm805_vm4, %v1263_v23, %v5612_v52  ;;  %v5697_v22 = vld [vmem:[%s7373_s18 + $0x10] sm:$0xff]   ;;  %v5698_v23 = vld [vmem:[%s7373_s18 + $0x18] sm:$0xff]  }
 0x75c   :  { %v5616_v60 = vpop.permute.xlu0 %5615 }
 0x75d   :  { %v5618_v4 = vunpack.i.h.bf16 %v5616_v60  ;;  %v5617_v21 = vunpack.i.l.bf16 %v5616_v60 }
 0x75f   :  { %v1269_v32 = vsel %vm1267_vm5, %v1266_v35, %v5618_v4  ;;  %v1268_v1 = vsel %vm1267_vm5, %v1265_v26, %v5617_v21  ;;  %v5695_v4 = vld [vmem:[%s7373_s18] sm:$0xff]   ;;  %v5696_v21 = vld [vmem:[%s7373_s18 + $0x8] sm:$0xff]  }
 0x76c   :  { %v5621_v31 = vpop.permute.xlu1 %5620 }
 0x76d   :  { %v5623_v15 = vunpack.i.h.bf16 %v5621_v31  ;;  %v5622_v18 = vunpack.i.l.bf16 %v5621_v31 }
 0x76f   :  { %v1784_v28 = vsel %vm757_vm3, %v1389_v19, %v5623_v15  ;;  %v1783_v29 = vsel %vm757_vm3, %v1386_v45, %v5622_v18  ;;  %v4835_v19 = vld [vmem:[%s7372_s13 + $0x1] ss:$0 sm:$0xff] }
 0x795   :  { %v5626_v12 = vpop.permute.xlu1 %5625 }
 0x796   :  { %v5628_v11 = vunpack.i.h.bf16 %v5626_v12  ;;  %v5627_v62 = vunpack.i.l.bf16 %v5626_v12 }
 0x798   :  { %v1786_v53 = vsel %vm805_vm4, %v1784_v28, %v5628_v11  ;;  %v1785_v36 = vsel %vm805_vm4, %v1783_v29, %v5627_v62 }
 0x79d   :  { %v5631_v47 = vpop.permute.xlu1 %5630 }
 0x79e   :  { %v5633_v33 = vunpack.i.h.bf16 %v5631_v47  ;;  %v5632_v34 = vunpack.i.l.bf16 %v5631_v47 }
 0x7a0   :  { %v1788_v24 = vsel %vm1267_vm5, %v1786_v53, %v5633_v33  ;;  %v1787_v0 = vsel %vm1267_vm5, %v1785_v36, %v5632_v34 }
 0x7a1   :  { %v1793_v6 = vpack.c.bf16 %v1787_v0, %v1268_v1  ;;  %v1866_v37 = vpack.c.bf16 %v1788_v24, %v1269_v32 }
 0x7a3   :  { %5343 = vmatmul.mubr.msk.bf16.vlgmr.msra.gmra.mrb[36].mxu0 %vm256_vm1, %v1793_v6  ;;  %5351 = vmatmul.mubr.msk.bf16.vlgmr.msra.gmra.mrb[56].mxu1 %vm256_vm1, %v1866_v37  ;;  %v4836_v6 = vld [vmem:[%s7374_s16] ss:$0 sm:$0xff] }
 0x7a4   :  { %5358 = vmatprep.mubr.msk.bf16.mxu0 %vm5941_vm2, %v5940_v56  ;;  %5366 = vmatprep.mubr.msk.bf16.mxu1 %vm5941_vm2, %v5940_v56 }
 0x7a5   :  { %5355 = vmatpush3.bf16.msra.mxu0 %v5695_v4  ;;  %5363 = vmatpush3.bf16.msra.mxu1 %v5697_v22 }
 0x7a6   :  { %5356 = vmatprep.subr.bf16.mxu0 %v5940_v56  ;;  %5364 = vmatprep.subr.bf16.mxu1 %v5940_v56 }
 0x7a9   :  { %5357 = vmatpush3.bf16.msra.mxu0 %v5696_v21  ;;  %5365 = vmatpush3.bf16.msra.mxu1 %v5698_v23 }
 0x7aa   :  { %5370 = vmatprep.subr.bf16.mxu0 %v5940_v56  ;;  %5382 = vmatprep.subr.bf16.mxu1 %v5940_v56 }
 0x876   :  { %v1843_v9 = vpop.f32.mrb[36].mxu0  ;;  %v1916_v41 = vpop.f32.mrb[56].mxu1 }
 0x877   :  { %v1850_v17 = vadd.f32 %v1843_v9, %v6137_v27  ;;  %v1923_v25 = vadd.f32 %v5935_v43, %v1916_v41  ;;  %v5344_v45 = vpop.f32.mrb[37].mxu0  ;;  %v5352_v16 = vpop.f32.mrb[57].mxu1  ;;  %v4837_v43 = vld [vmem:[%s7375_s17] ss:$0 sm:$0xff] }
 0x878   :  { %v1846_v46 = vpop.f32.mrb[38].mxu0  ;;  %v1919_v48 = vpop.f32.mrb[58].mxu1  ;;  %v4840_v16 = vld [vmem:[%s7374_s16 + $0x1] ss:$0 sm:$0xff] }
 0x879   :  { %v6586_v49 = vadd.f32 %v4826_v40, %v1850_v17  ;;  %v1851_v51 = vadd.f32 %v1846_v46, %v6139_v30  ;;  %v5345_v54 = vpop.f32.mrb[39].mxu0  ;;  %v5353_v55 = vpop.f32.mrb[59].mxu1  ;;  %v6589_v27 = vadd.f32 %v4835_v19, %v1923_v25  ;;  %v1924_v58 = vadd.f32 %v5936_v38, %v1919_v48  ;;  %v4841_v38 = vld [vmem:[%s7375_s17 + $0x1] ss:$0 sm:$0xff] }
 0x87b   :  { %v6591_v57 = vadd.f32 %v4826_v40, %v1851_v51  ;;  %v1937_v59 = vsel %vm256_vm1, %v6586_v49, 0.0  ;;  %v6600_v30 = vadd.f32 %v4835_v19, %v1924_v58  ;;  %v1983_v14 = vsel %vm256_vm1, %v6589_v27, 0.0 }
 0x87c   :  { %1938 = vadd.xlane.f32.xlu0 %v1937_v59 }
 0x87d   :  { %v1940_v39 = vsel %vm256_vm1, %v6591_v57, 0.0  ;;  %v1986_v63 = vsel %vm256_vm1, %v6600_v30, 0.0 }
 0x87e   :  { %1941 = vadd.xlane.f32.xlu1 %v1940_v39 }
 0x880   :  { %1984 = vadd.xlane.f32.xlu0 %v1983_v14 }
 0x884   :  { %1987 = vadd.xlane.f32.xlu0 %v1986_v63  ;;  %v5699_v63 = vld [vmem:[%s7376_s20] sm:$0xff]  }
 0x909   :  { %v1939_v2 = vpop.xlane.xlu0 %1938 }
 0x90a   :  { %v1943_v61 = vmul.f32 0.03125, %v1939_v2  ;;  %v5700_v2 = vld [vmem:[%s7376_s20 + $0x8] sm:$0xff]  }
 0x90b   :  { %v1942_v50 = vpop.xlane.xlu1 %1941 }
 0x90c   :  { %v1945_v3 = vsub.f32 %v6586_v49, %v1943_v61  ;;  %v1944_v42 = vmul.f32 0.03125, %v1942_v50  ;;  %v5701_v61 = vld [vmem:[%s7376_s20 + $0x20] sm:$0xff]   ;;  %v5702_v50 = vld [vmem:[%s7376_s20 + $0x10] sm:$0xff]  }
 0x90d   :  { %v1985_v5 = vpop.xlane.xlu0 %1984 }
 0x90e   :  { %v1946_v7 = vsub.f32 %v6591_v57, %v1944_v42  ;;  %v1989_v8 = vmul.f32 0.03125, %v1985_v5  ;;  %v1947_v10 = vmul.f32 %v1945_v3, %v1945_v3  ;;  %v5704_v42 = vld [vmem:[%s7376_s20 + $0x18] sm:$0xff]   ;;  %v5705_v5 = vld [vmem:[%s7376_s20 + $0x30] sm:$0xff]  }
 0x910   :  { %v1991_v31 = vsub.f32 %v6589_v27, %v1989_v8  ;;  %v1949_v12 = vsel %vm256_vm1, %v1947_v10, 0.0  ;;  %v1948_v44 = vmul.f32 %v1946_v7, %v1946_v7  ;;  %v4842_v8 = vld [vmem:[%s7377_s19] ss:$0 sm:$0xff] }
 0x911   :  { %v1988_v13 = vpop.xlane.xlu0 %1987  ;;  %1950 = vadd.xlane.f32.xlu1 %v1949_v12 }
 0x912   :  { %v1990_v60 = vmul.f32 0.03125, %v1988_v13  ;;  %v1952_v15 = vsel %vm256_vm1, %v1948_v44, 0.0  ;;  %v1993_v18 = vmul.f32 %v1991_v31, %v1991_v31 }
 0x913   :  { %1953 = vadd.xlane.f32.xlu0 %v1952_v15 }
 0x914   :  { %v1992_v20 = vsub.f32 %v6600_v30, %v1990_v60  ;;  %v1995_v52 = vsel %vm256_vm1, %v1993_v18, 0.0 }
 0x915   :  { %1996 = vadd.xlane.f32.xlu1 %v1995_v52  ;;  %v4855_v52 = vld [vmem:[%s7377_s19 + $0x1] ss:$0 sm:$0xff] }
 0x916   :  { %v1994_v11 = vmul.f32 %v1992_v20, %v1992_v20 }
 0x918   :  { %v1998_v62 = vsel %vm256_vm1, %v1994_v11, 0.0 }
 0x919   :  { %1999 = vadd.xlane.f32.xlu0 %v1998_v62 }
 0x99e   :  { %v1951_v47 = vpop.xlane.xlu1 %1950 }
 0x99f   :  { %v1955_v28 = vmul.f32 0.03125, %v1951_v47 }
 0x9a0   :  { %v1954_v29 = vpop.xlane.xlu0 %1953 }
 0x9a1   :  { %v1957_v33 = vadd.f32 1e-05, %v1955_v28  ;;  %v1956_v34 = vmul.f32 0.03125, %v1954_v29 }
 0x9a2   :  { %v1997_v35 = vpop.xlane.xlu1 %1996 }
 0x9a3   :  { %5807 = vrsqrt.f32 %v1957_v33  ;;  %v1958_v26 = vadd.f32 1e-05, %v1956_v34  ;;  %v2001_v53 = vmul.f32 0.03125, %v1997_v35 }
 0x9a5   :  { %5809 = vrsqrt.f32 %v1958_v26  ;;  %v2003_v36 = vadd.f32 1e-05, %v2001_v53 }
 0x9a6   :  { %v2000_v32 = vpop.xlane.xlu0 %1999 }
 0x9a7   :  { %5811 = vrsqrt.f32 %v2003_v36  ;;  %v2002_v1 = vmul.f32 0.03125, %v2000_v32 }
 0x9a9   :  { %v2004_v24 = vadd.f32 1e-05, %v2002_v1 }
 0x9ab   :  { %5813 = vrsqrt.f32 %v2004_v24 }
 0x9ad   :  { %v5808_v0 = vpop.eup %5807 }
 0x9ae   :  { %v1961_v37 = vmul.f32 %v5808_v0, %v1945_v3  ;;  %v5703_v3 = vld [vmem:[%s7376_s20 + $0x28] sm:$0xff]  }
 0x9af   :  { %v5810_v9 = vpop.eup %5809 }
 0x9b0   :  { %v1969_v40 = vmul.f32 %v4836_v6, %v1961_v37  ;;  %v1962_v41 = vmul.f32 %v5810_v9, %v1946_v7  ;;  %v5706_v7 = vld [vmem:[%s7376_s20 + $0x38] sm:$0xff]  }
 0x9b1   :  { %v5812_v17 = vpop.eup %5811 }
 0x9b2   :  { %v1970_v25 = vmul.f32 %v4836_v6, %v1962_v41  ;;  %v2007_v45 = vmul.f32 %v5812_v17, %v1991_v31  ;;  %v1977_v19 = vadd.f32 %v4837_v43, %v1969_v40 }
 0x9b4   :  { %v1978_v46 = vadd.f32 %v4837_v43, %v1970_v25  ;;  %v2015_v51 = vmul.f32 %v4840_v16, %v2007_v45 }
 0x9b5   :  { %v5814_v48 = vpop.eup %5813 }
 0x9b6   :  { %v2008_v54 = vmul.f32 %v5814_v48, %v1992_v20  ;;  %v2029_v55 = vpack.c.bf16 %v1978_v46, %v1977_v19  ;;  %v2023_v59 = vadd.f32 %v4841_v38, %v2015_v51 }
 0x9b8   :  { %v2016_v58 = vmul.f32 %v4840_v16, %v2008_v54  ;;  %5359 = vmatmul.mubr.msk.bf16.vlgmr.msra.gmra.mrb[40].mxu0 %vm256_vm1, %v2029_v55 }
 0x9b9   :  { %5378 = vmatprep.mubr.msk.bf16.mxu0 %vm5941_vm2, %v5940_v56  ;;  %5371 = vmatpush3.bf16.msra.mxu0 %v5699_v63 }
 0x9ba   :  { %v2024_v39 = vadd.f32 %v4841_v38, %v2016_v58  ;;  %5372 = vmatprep.subr.bf16.mxu0 %v5940_v56 }
 0x9bc   :  { %v2152_v14 = vpack.c.bf16 %v2024_v39, %v2023_v59 }
 0x9bd   :  { %5373 = vmatpush3.bf16.msra.mxu0 %v5700_v2 }
 0x9be   :  { %5367 = vmatmul.mubr.msk.bf16.vlgmr.msra.gmra.mrb[60].mxu1 %vm256_vm1, %v2152_v14  ;;  %5374 = vmatprep.subr.bf16.mxu0 %v5940_v56 }
 0x9bf   :  { %5390 = vmatprep.mubr.msk.bf16.mxu1 %vm5941_vm2, %v5940_v56  ;;  %5383 = vmatpush3.bf16.msra.mxu1 %v5701_v61 }
 0x9c0   :  { %5384 = vmatprep.subr.bf16.mxu1 %v5940_v56 }
 0x9c1   :  { %5375 = vmatpush3.bf16.msra.mxu0 %v5702_v50 }
 0x9c2   :  { %5376 = vmatprep.subr.bf16.mxu0 %v5940_v56 }
 0x9c3   :  { %5385 = vmatpush3.bf16.msra.mxu1 %v5703_v3 }
 0x9c4   :  { %5386 = vmatprep.subr.bf16.mxu1 %v5940_v56 }
 0x9c5   :  { %5377 = vmatpush3.bf16.msra.mxu0 %v5704_v42 }
 0x9c6   :  { %5394 = vmatprep.subr.bf16.mxu0 %v5940_v56 }
 0x9c7   :  { %5387 = vmatpush3.bf16.msra.mxu1 %v5705_v5 }
 0x9c8   :  { %5388 = vmatprep.subr.bf16.mxu1 %v5940_v56 }
 0x9cb   :  { %5389 = vmatpush3.bf16.msra.mxu1 %v5706_v7 }
 0x9cc   :  { %5402 = vmatprep.subr.bf16.mxu1 %v5940_v56 }
 0xa8b   :  { %v2086_v10 = vpop.f32.mrb[40].mxu0 }
 0xa8c   :  { %v6683_v31 = vadd.f32 %v4842_v8, %v2086_v10  ;;  %v5360_v12 = vpop.f32.mrb[41].mxu0 }
 0xa8d   :  { %v2089_v44 = vpop.f32.mrb[42].mxu0 }
 0xa8e   :  { %v6686_v13 = vmul.f32 0.70710677, %v6683_v31  ;;  %v6688_v60 = vadd.f32 %v4842_v8, %v2089_v44  ;;  %v5361_v15 = vpop.f32.mrb[43].mxu0 }
 0xa90   :  { %v2095_v18 = vand.u32 2147483647, %v6686_v13  ;;  %v6692_v20 = vmul.f32 0.70710677, %v6688_v60  ;;  %vm2135_vm6 = vcmp.ge.f32.partialorder %v6686_v13, 0.0 }
 0xa91   :  { %v2210_v11 = vpop.f32.mrb[60].mxu1 }
 0xa92   :  { %v2097_v62 = vmul.f32 0.3275911, %v2095_v18  ;;  %v2096_v4 = vand.u32 2147483647, %v6692_v20  ;;  %v6698_v21 = vadd.f32 %v4855_v52, %v2210_v11  ;;  %v5368_v22 = vpop.f32.mrb[61].mxu1  ;;  %v2123_v0 = vsub.f32 0.0, %v2095_v18 }
 0xa93   :  { %v2213_v28 = vpop.f32.mrb[62].mxu1  ;;  %vm2136_vm7 = vcmp.ge.f32.partialorder %v6692_v20, 0.0 }
 0xa94   :  { %v2099_v23 = vadd.f32 1.0, %v2097_v62  ;;  %v2098_v47 = vmul.f32 0.3275911, %v2096_v4  ;;  %v6701_v29 = vmul.f32 0.70710677, %v6698_v21  ;;  %v6703_v33 = vadd.f32 %v4855_v52, %v2213_v28  ;;  %v5369_v34 = vpop.f32.mrb[63].mxu1 }
 0xa95   :  { %v2124_v37 = vsub.f32 0.0, %v2096_v4  ;;  %v2125_v40 = vmul.f32 %v2123_v0, %v2095_v18 }
 0xa96   :  { %5815 = vrcp.f32 %v2099_v23  ;;  %v2100_v35 = vadd.f32 1.0, %v2098_v47  ;;  %v2219_v26 = vand.u32 2147483647, %v6701_v29  ;;  %v6707_v53 = vmul.f32 0.70710677, %v6703_v33 }
 0xa97   :  { %v2126_v25 = vmul.f32 %v2124_v37, %v2096_v4  ;;  %v2127_v16 = vmul.f32 1.442695, %v2125_v40  ;;  %vm2259_vm8 = vcmp.ge.f32.partialorder %v6701_v29, 0.0 }
 0xa98   :  { %5817 = vrcp.f32 %v2100_v35  ;;  %v2221_v36 = vmul.f32 0.3275911, %v2219_v26  ;;  %v2220_v32 = vand.u32 2147483647, %v6707_v53  ;;  %v2247_v45 = vsub.f32 0.0, %v2219_v26 }
 0xa99   :  { %v2129_v38 = vmul.f32 1.442695, %v2126_v25  ;;  %vm2260_vm9 = vcmp.ge.f32.partialorder %v6707_v53, 0.0 }
 0xa9a   :  { %v2223_v1 = vadd.f32 1.0, %v2221_v36  ;;  %v2222_v24 = vmul.f32 0.3275911, %v2220_v32  ;;  %v2248_v51 = vsub.f32 0.0, %v2220_v32  ;;  %v2249_v58 = vmul.f32 %v2247_v45, %v2219_v26 }
 0xa9c   :  { %5819 = vrcp.f32 %v2223_v1  ;;  %v2224_v6 = vadd.f32 1.0, %v2222_v24  ;;  %v2250_v50 = vmul.f32 %v2248_v51, %v2220_v32  ;;  %v2251_v42 = vmul.f32 1.442695, %v2249_v58 }
 0xa9d   :  { %v2141_v58 = vmul.f32 0.5, %v6683_v31  ;;  %v2265_v31 = vmul.f32 0.5, %v6698_v21 }
 0xa9e   :  { %5821 = vrcp.f32 %v2224_v6  ;;  %v2253_v18 = vmul.f32 1.442695, %v2250_v50 }
 0xa9f   :  { %5823 = vpow2.f32 %v2127_v16 }
 0xaa0   :  { %v5816_v9 = vpop.eup %5815  ;;  %5825 = vpow2.f32 %v2129_v38 }
 0xaa1   :  { %v2105_v41 = vmul.f32 1.0614054, %v5816_v9  ;;  %5827 = vpow2.f32 %v2251_v42 }
 0xaa2   :  { %v5818_v17 = vpop.eup %5817  ;;  %5829 = vpow2.f32 %v2253_v18 }
 0xaa3   :  { %v4846_v43 = vadd.f32 -1.4531521, %v2105_v41  ;;  %v2106_v19 = vmul.f32 1.0614054, %v5818_v17 }
 0xaa5   :  { %v2109_v46 = vmul.f32 %v5816_v9, %v4846_v43  ;;  %v4847_v48 = vadd.f32 -1.4531521, %v2106_v19 }
 0xaa6   :  { %v5820_v54 = vpop.eup %5819 }
 0xaa7   :  { %v2111_v55 = vadd.f32 1.4214138, %v2109_v46  ;;  %v2110_v59 = vmul.f32 %v5818_v17, %v4847_v48  ;;  %v2229_v39 = vmul.f32 1.0614054, %v5820_v54 }
 0xaa8   :  { %v5822_v63 = vpop.eup %5821 }
 0xaa9   :  { %v2113_v14 = vmul.f32 %v5816_v9, %v2111_v55  ;;  %v2112_v2 = vadd.f32 1.4214138, %v2110_v59  ;;  %v4859_v61 = vadd.f32 -1.4531521, %v2229_v39  ;;  %v2230_v5 = vmul.f32 1.0614054, %v5822_v63  ;;  %v5824_v47 = vpop.eup %5823 }
 0xaaa   :  { %v5826_v1 = vpop.eup %5825  ;;  %v2142_v59 = vmul.f32 0.5, %v6688_v60  ;;  %v2266_v60 = vmul.f32 0.5, %v6703_v33 }
 0xaab   :  { %v4848_v3 = vadd.f32 -0.28449672, %v2113_v14  ;;  %v2114_v7 = vmul.f32 %v5818_v17, %v2112_v2  ;;  %v2233_v8 = vmul.f32 %v5820_v54, %v4859_v61  ;;  %v4860_v12 = vadd.f32 -1.4531521, %v2230_v5  ;;  %v5828_v25 = vpop.eup %5827 }
 0xaac   :  { %v5830_v51 = vpop.eup %5829 }
 0xaad   :  { %v2117_v10 = vmul.f32 %v5816_v9, %v4848_v3  ;;  %v4849_v44 = vadd.f32 -0.28449672, %v2114_v7  ;;  %v2235_v15 = vadd.f32 1.4214138, %v2233_v8  ;;  %v2234_v11 = vmul.f32 %v5822_v63, %v4860_v12 }
 0xaaf   :  { %v2119_v52 = vadd.f32 0.2548296, %v2117_v10  ;;  %v2118_v62 = vmul.f32 %v5818_v17, %v4849_v44  ;;  %v2237_v4 = vmul.f32 %v5820_v54, %v2235_v15  ;;  %v2236_v23 = vadd.f32 1.4214138, %v2234_v11  ;;  %v4868_v10 = vld [vmem:[%s7378_s21] ss:$0 sm:$0xff] }
 0xab1   :  { %v2121_v22 = vmul.f32 %v5816_v9, %v2119_v52  ;;  %v2120_v28 = vadd.f32 0.2548296, %v2118_v62  ;;  %v4861_v34 = vadd.f32 -0.28449672, %v2237_v4  ;;  %v2238_v26 = vmul.f32 %v5822_v63, %v2236_v23  ;;  %v4883_v4 = vld [vmem:[%s7378_s21 + $0x1] ss:$0 sm:$0xff] }
 0xab3   :  { %v2131_v35 = vmul.f32 %v5824_v47, %v2121_v22  ;;  %v2122_v36 = vmul.f32 %v5818_v17, %v2120_v28  ;;  %v2241_v32 = vmul.f32 %v5820_v54, %v4861_v34  ;;  %v4862_v0 = vadd.f32 -0.28449672, %v2238_v26 }
 0xab5   :  { %v2133_v24 = vsub.f32 1.0, %v2131_v35  ;;  %v2132_v6 = vmul.f32 %v5826_v1, %v2122_v36  ;;  %v2243_v37 = vadd.f32 0.2548296, %v2241_v32  ;;  %v2242_v41 = vmul.f32 %v5822_v63, %v4862_v0 }
 0xab7   :  { %v2137_v40 = vsub.f32 0.0, %v2133_v24  ;;  %v2134_v43 = vsub.f32 1.0, %v2132_v6  ;;  %v2245_v9 = vmul.f32 %v5820_v54, %v2243_v37  ;;  %v2244_v16 = vadd.f32 0.2548296, %v2242_v41 }
 0xab9   :  { %v2139_v45 = vsel %vm2135_vm6, %v2133_v24, %v2137_v40  ;;  %v2138_v19 = vsub.f32 0.0, %v2134_v43  ;;  %v2255_v46 = vmul.f32 %v5828_v25, %v2245_v9  ;;  %v2246_v17 = vmul.f32 %v5822_v63, %v2244_v16 }
 0xaba   :  { %v2143_v48 = vadd.f32 1.0, %v2139_v45 }
 0xabb   :  { %v2140_v55 = vsel %vm2136_vm7, %v2134_v43, %v2138_v19  ;;  %v2257_v38 = vsub.f32 1.0, %v2255_v46  ;;  %v2256_v13 = vmul.f32 %v5830_v51, %v2246_v17 }
 0xabc   :  { %v2144_v39 = vadd.f32 1.0, %v2140_v55  ;;  %v2145_v54 = vmul.f32 %v2143_v48, %v2141_v58  ;;  %v5707_v55 = vld [vmem:[%s7416_s4 + $0x20] sm:$0xff]   ;;  %v5709_v58 = vld [vmem:[%s7416_s4 + $0x30] sm:$0xff]  }
 0xabd   :  { %v2261_v14 = vsub.f32 0.0, %v2257_v38  ;;  %v2258_v61 = vsub.f32 1.0, %v2256_v13 }
 0xabe   :  { %v2146_v2 = vmul.f32 %v2144_v39, %v2142_v59  ;;  %v5711_v59 = vld [vmem:[%s7416_s4 + $0x38] sm:$0xff]  }
 0xabf   :  { %v2263_v50 = vsel %vm2259_vm8, %v2257_v38, %v2261_v14  ;;  %v2262_v42 = vsub.f32 0.0, %v2258_v61  ;;  %v5708_v38 = vld [vmem:[%s7416_s4 + $0x28] sm:$0xff]  }
 0xac0   :  { %v2279_v3 = vpack.c.bf16 %v2146_v2, %v2145_v54  ;;  %v2267_v20 = vadd.f32 1.0, %v2263_v50 }
 0xac1   :  { %v2264_v63 = vsel %vm2260_vm9, %v2258_v61, %v2262_v42 }
 0xac2   :  { %5379 = vmatmul.mubr.msk.bf16.vlgmr.msra.gmra.mrb[44].mxu0 %vm187_vm0, %v2279_v3  ;;  %v2268_v5 = vadd.f32 1.0, %v2264_v63  ;;  %v2269_v7 = vmul.f32 %v2267_v20, %v2265_v31 }
 0xac3   :  { %5398 = vmatprep.mubr.msk.bf16.mxu0 %vm5941_vm2, %v5940_v56  ;;  %5395 = vmatpush3.bf16.msra.mxu0 %v5707_v55 }
 0xac4   :  { %v2270_v29 = vmul.f32 %v2268_v5, %v2266_v60  ;;  %5396 = vmatprep.subr.bf16.mxu0 %v5940_v56  ;;  %v4886_v5 = vld [vmem:[%s7417_s15 + $0x2] ss:$0 sm:$0xff] }
 0xac6   :  { %v2368_v8 = vpack.c.bf16 %v2270_v29, %v2269_v7 }
 0xac7   :  { %5397 = vmatpush3.bf16.msra.mxu0 %v5708_v38 }
 0xac8   :  { %5391 = vmatmul.mubr.msk.bf16.vlgmr.msra.gmra.mrb[64].mxu1 %vm187_vm0, %v2368_v8  ;;  %5410 = vmatprep.subr.bf16.mxu0 %v5940_v56 }
 0xac9   :  { %5406 = vmatprep.mubr.msk.bf16.mxu1 %vm5941_vm2, %v5940_v56  ;;  %5403 = vmatpush3.bf16.msra.mxu1 %v5709_v58 }
 0xaca   :  { %5404 = vmatprep.subr.bf16.mxu1 %v5940_v56 }
 0xacd   :  { %5405 = vmatpush3.bf16.msra.mxu1 %v5711_v59 }
 0xace   :  { %5418 = vmatprep.subr.bf16.mxu1 %v5940_v56 }
 0xb95   :  { %v2341_v53 = vpop.f32.mrb[44].mxu0 }
 0xb96   :  { %v2348_v21 = vadd.f32 %v2341_v53, %v6586_v49  ;;  %v5380_v33 = vpop.f32.mrb[45].mxu0 }
 0xb97   :  { %v2344_v12 = vpop.f32.mrb[46].mxu0 }
 0xb98   :  { %v6728_v44 = vadd.f32 %v4868_v10, %v2348_v21  ;;  %v2349_v15 = vadd.f32 %v2344_v12, %v6591_v57  ;;  %v5381_v18 = vpop.f32.mrb[47].mxu0  ;;  %v4890_v12 = vld [vmem:[%s7417_s15 + $0x3] ss:$0 sm:$0xff] }
 0xb9a   :  { %v6731_v52 = vadd.f32 %v4868_v10, %v2349_v15  ;;  %v2453_v11 = vsel %vm256_vm1, %v6728_v44, 0.0  ;;  %v4887_v10 = vld [vmem:[%s7418_s28 + $0x2] ss:$0 sm:$0xff] }
 0xb9b   :  { %2454 = vadd.xlane.f32.xlu1 %v2453_v11  ;;  %v2430_v62 = vpop.f32.mrb[64].mxu1 }
 0xb9c   :  { %v2456_v49 = vsel %vm256_vm1, %v6731_v52, 0.0  ;;  %v2437_v22 = vadd.f32 %v2430_v62, %v6589_v27  ;;  %v5392_v23 = vpop.f32.mrb[65].mxu1  ;;  %v5710_v62 = vld [vmem:[%s7419_s8 + $0x20] sm:$0xff]  }
 0xb9d   :  { %2457 = vadd.xlane.f32.xlu0 %v2456_v49  ;;  %v2433_v57 = vpop.f32.mrb[66].mxu1 }
 0xb9e   :  { %v6741_v47 = vadd.f32 %v4883_v4, %v2437_v22  ;;  %v2438_v28 = vadd.f32 %v2433_v57, %v6600_v30  ;;  %v5393_v34 = vpop.f32.mrb[67].mxu1  ;;  %v4891_v57 = vld [vmem:[%s7418_s28 + $0x3] ss:$0 sm:$0xff] }
 0xb9f   :  { %v5712_v34 = vld [vmem:[%s7419_s8 + $0x28] sm:$0xff]  }
 0xba0   :  { %v6744_v35 = vadd.f32 %v4883_v4, %v2438_v28  ;;  %v2499_v26 = vsel %vm256_vm1, %v6741_v47, 0.0 }
 0xba1   :  { %2500 = vadd.xlane.f32.xlu1 %v2499_v26 }
 0xba2   :  { %v2502_v36 = vsel %vm256_vm1, %v6744_v35, 0.0 }
 0xba3   :  { %2503 = vadd.xlane.f32.xlu0 %v2502_v36 }
 0xc28   :  { %v2455_v32 = vpop.xlane.xlu1 %2454 }
 0xc29   :  { %v2459_v27 = vmul.f32 0.03125, %v2455_v32  ;;  %v5713_v32 = vld [vmem:[%s7419_s8 + $0x30] sm:$0xff]  }
 0xc2a   :  { %v2458_v1 = vpop.xlane.xlu0 %2457 }
 0xc2b   :  { %v2461_v24 = vsub.f32 %v6728_v44, %v2459_v27  ;;  %v2460_v0 = vmul.f32 0.03125, %v2458_v1  ;;  %v5714_v1 = vld [vmem:[%s7420_s27 + $0x20] sm:$0xff]  }
 0xc2d   :  { %v2462_v6 = vsub.f32 %v6731_v52, %v2460_v0  ;;  %v2463_v30 = vmul.f32 %v2461_v24, %v2461_v24  ;;  %v5716_v0 = vld [vmem:[%s7420_s27 + $0x28] sm:$0xff]  }
 0xc2e   :  { %v2501_v37 = vpop.xlane.xlu1 %2500 }
 0xc2f   :  { %v2465_v40 = vsel %vm256_vm1, %v2463_v30, 0.0  ;;  %v2464_v41 = vmul.f32 %v2462_v6, %v2462_v6  ;;  %v2505_v43 = vmul.f32 0.03125, %v2501_v37  ;;  %v5718_v30 = vld [vmem:[%s7420_s27 + $0x38] sm:$0xff]  }
 0xc30   :  { %2466 = vadd.xlane.f32.xlu1 %v2465_v40  ;;  %v2504_v9 = vpop.xlane.xlu0 %2503 }
 0xc31   :  { %v2468_v25 = vsel %vm256_vm1, %v2464_v41, 0.0  ;;  %v2507_v45 = vsub.f32 %v6741_v47, %v2505_v43  ;;  %v2506_v16 = vmul.f32 0.03125, %v2504_v9  ;;  %v4897_v43 = vld [vmem:[%s7367_s7 + $0x2] ss:$0 sm:$0xff] }
 0xc32   :  { %2469 = vadd.xlane.f32.xlu0 %v2468_v25  ;;  %v4906_v25 = vld [vmem:[%s7367_s7 + $0x3] ss:$0 sm:$0xff] }
 0xc33   :  { %v2508_v19 = vsub.f32 %v6744_v35, %v2506_v16  ;;  %v2509_v46 = vmul.f32 %v2507_v45, %v2507_v45 }
 0xc35   :  { %v2511_v48 = vsel %vm256_vm1, %v2509_v46, 0.0  ;;  %v2510_v17 = vmul.f32 %v2508_v19, %v2508_v19 }
 0xc36   :  { %2512 = vadd.xlane.f32.xlu1 %v2511_v48 }
 0xc37   :  { %v2514_v51 = vsel %vm256_vm1, %v2510_v17, 0.0 }
 0xc38   :  { %2515 = vadd.xlane.f32.xlu0 %v2514_v51 }
 0xcbd   :  { %v2467_v39 = vpop.xlane.xlu1 %2466 }
 0xcbe   :  { %v2471_v13 = vmul.f32 0.03125, %v2467_v39 }
 0xcbf   :  { %v2470_v14 = vpop.xlane.xlu0 %2469 }
 0xcc0   :  { %v2473_v54 = vadd.f32 1e-05, %v2471_v13  ;;  %v2472_v2 = vmul.f32 0.03125, %v2470_v14 }
 0xcc2   :  { %5831 = vrsqrt.f32 %v2473_v54  ;;  %v2474_v61 = vadd.f32 1e-05, %v2472_v2 }
 0xcc3   :  { %v2513_v50 = vpop.xlane.xlu1 %2512 }
 0xcc4   :  { %5833 = vrsqrt.f32 %v2474_v61  ;;  %v2517_v3 = vmul.f32 0.03125, %v2513_v50  ;;  %v4915_v50 = vld [vmem:[%s7368_s9 + $0x2] ss:$0 sm:$0xff] }
 0xcc5   :  { %v2516_v42 = vpop.xlane.xlu0 %2515 }
 0xcc6   :  { %v2519_v20 = vadd.f32 1e-05, %v2517_v3  ;;  %v2518_v63 = vmul.f32 0.03125, %v2516_v42  ;;  %v4924_v3 = vld [vmem:[%s7368_s9 + $0x3] ss:$0 sm:$0xff]  ;;  %s7422_s9 = smov 104  }
 0xcc8   :  { %5835 = vrsqrt.f32 %v2519_v20  ;;  %v2520_v31 = vadd.f32 1e-05, %v2518_v63 }
 0xcca   :  { %5837 = vrsqrt.f32 %v2520_v31 }
 0xccc   :  { %v5832_v60 = vpop.eup %5831 }
 0xccd   :  { %v2477_v7 = vmul.f32 %v5832_v60, %v2461_v24  ;;  %v5715_v24 = vld [vmem:[%s7419_s8 + $0x38] sm:$0xff]  }
 0xcce   :  { %v5834_v29 = vpop.eup %5833 }
 0xccf   :  { %v2485_v8 = vmul.f32 %v4886_v5, %v2477_v7  ;;  %v2478_v53 = vmul.f32 %v5834_v29, %v2462_v6  ;;  %v5717_v6 = vld [vmem:[%s7420_s27 + $0x30] sm:$0xff]  }
 0xcd1   :  { %v2486_v21 = vmul.f32 %v4886_v5, %v2478_v53  ;;  %v2493_v15 = vadd.f32 %v4887_v10, %v2485_v8 }
 0xcd2   :  { %v5836_v33 = vpop.eup %5835 }
 0xcd3   :  { %v2494_v18 = vadd.f32 %v4887_v10, %v2486_v21  ;;  %v2523_v11 = vmul.f32 %v5836_v33, %v2507_v45  ;;  %v4933_v21 = vld [vmem:[%s7369_s11 + $0x2] ss:$0 sm:$0xff] }
 0xcd4   :  { %v5838_v4 = vpop.eup %5837 }
 0xcd5   :  { %v2546_v49 = vpack.c.bf16 %v2494_v18, %v2493_v15  ;;  %v2531_v22 = vmul.f32 %v4890_v12, %v2523_v11  ;;  %v2524_v23 = vmul.f32 %v5838_v4, %v2508_v19  ;;  %v4942_v4 = vld [vmem:[%s7369_s11 + $0x3] ss:$0 sm:$0xff] }
 0xcd7   :  { %5399 = vmatmul.mubr.msk.bf16.vlgmr.msra.gmra.mrb[48].mxu0 %vm256_vm1, %v2546_v49  ;;  %v2532_v28 = vmul.f32 %v4890_v12, %v2524_v23  ;;  %v2539_v26 = vadd.f32 %v4891_v57, %v2531_v22 }
 0xcd8   :  { %5411 = vmatpush3.bf16.msra.mxu0 %v5710_v62  ;;  %5414 = vmatprep.mubr.msk.bf16.mxu0 %vm5941_vm2, %v5940_v56 }
 0xcd9   :  { %5412 = vmatprep.subr.bf16.mxu0 %v5940_v56  ;;  %v2540_v36 = vadd.f32 %v4891_v57, %v2532_v28 }
 0xcdb   :  { %v2618_v27 = vpack.c.bf16 %v2540_v36, %v2539_v26 }
 0xcdc   :  { %5413 = vmatpush3.bf16.msra.mxu0 %v5712_v34 }
 0xcdd   :  { %5426 = vmatprep.subr.bf16.mxu0 %v5940_v56  ;;  %5407 = vmatmul.mubr.msk.bf16.vlgmr.msra.gmra.mrb[68].mxu1 %vm256_vm1, %v2618_v27 }
 0xcde   :  { %5419 = vmatpush3.bf16.msra.mxu1 %v5713_v32  ;;  %5422 = vmatprep.mubr.msk.bf16.mxu1 %vm5941_vm2, %v5940_v56 }
 0xcdf   :  { %5415 = vmatmul.mubr.msk.bf16.vlgmr.msra.gmra.mrb[52].mxu0 %vm256_vm1, %v2546_v49  ;;  %5420 = vmatprep.subr.bf16.mxu1 %v5940_v56 }
 0xce0   :  { %5427 = vmatpush3.bf16.msra.mxu0 %v5714_v1  ;;  %5430 = vmatprep.mubr.msk.bf16.mxu0 %vm5941_vm2, %v5940_v56 }
 0xce1   :  { %5428 = vmatprep.subr.bf16.mxu0 %v5940_v56 }
 0xce2   :  { %5421 = vmatpush3.bf16.msra.mxu1 %v5715_v24 }
 0xce3   :  { %5434 = vmatprep.subr.bf16.mxu1 %v5940_v56 }
 0xce4   :  { %5429 = vmatpush3.bf16.msra.mxu0 %v5716_v0 }
 0xce5   :  { %5442 = vmatprep.subr.bf16.mxu0 %v5940_v56  ;;  %5423 = vmatmul.mubr.msk.bf16.vlgmr.msra.gmra.mrb[72].mxu1 %vm256_vm1, %v2618_v27 }
 0xce6   :  { %5435 = vmatpush3.bf16.msra.mxu1 %v5717_v6  ;;  %5438 = vmatprep.mubr.msk.bf16.mxu1 %vm5941_vm2, %v5940_v56 }
 0xce7   :  { %5431 = vmatmul.mubr.msk.bf16.vlgmr.msra.gmra.mrb[56].mxu0 %vm256_vm1, %v2546_v49  ;;  %5436 = vmatprep.subr.bf16.mxu1 %v5940_v56 }
 0xce8   :  { %5444 = vmatprep.mubr.msk.bf16.mxu0 %vm5941_vm2, %v5940_v56 }
 0xcea   :  { %5437 = vmatpush3.bf16.msra.mxu1 %v5718_v30 }
 0xceb   :  { %5448 = vmatprep.subr.bf16.mxu1 %v5940_v56 }
 0xced   :  { %5439 = vmatmul.mubr.msk.bf16.vlgmr.msra.gmra.mrb[76].mxu1 %vm256_vm1, %v2618_v27 }
 0xcee   :  { %5450 = vmatprep.mubr.msk.bf16.mxu1 %vm5941_vm2, %v5940_v56 }
 0xdaa   :  { %v2604_v37 = vpop.f32.mrb[48].mxu0 }
 0xdab   :  { %v5400_v40 = vpop.f32.mrb[49].mxu0  ;;  %v2605_v45 = vadd.f32 %v4897_v43, %v2604_v37 }
 0xdac   :  { %v2607_v41 = vpop.f32.mrb[50].mxu0 }
 0xdad   :  { %v5401_v9 = vpop.f32.mrb[51].mxu0  ;;  %v2608_v19 = vadd.f32 %v4897_v43, %v2607_v41  ;;  %v2611_v38 = vmul.f32 0.35355338, %v2605_v45 }
 0xdaf   :  { %v2612_v54 = vmul.f32 0.35355338, %v2608_v19 }
 0xdb0   :  { %v2676_v16 = vpop.f32.mrb[68].mxu1 }
 0xdb1   :  { %v2677_v46 = vadd.f32 %v4906_v25, %v2676_v16  ;;  %v5408_v48 = vpop.f32.mrb[69].mxu1 }
 0xdb2   :  { %v2744_v17 = vpop.f32.mrb[52].mxu0  ;;  %v2679_v51 = vpop.f32.mrb[70].mxu1 }
 0xdb3   :  { %v5416_v55 = vpop.f32.mrb[53].mxu0  ;;  %v2683_v58 = vmul.f32 0.35355338, %v2677_v46  ;;  %v2680_v59 = vadd.f32 %v4906_v25, %v2679_v51  ;;  %v5409_v39 = vpop.f32.mrb[71].mxu1  ;;  %v2745_v63 = vadd.f32 %v4915_v50, %v2744_v17 }
 0xdb4   :  { %v2747_v13 = vpop.f32.mrb[54].mxu0 }
 0xdb5   :  { %v5417_v14 = vpop.f32.mrb[55].mxu0  ;;  %v2949_v2 = vpack.c.bf16 %v2683_v58, %v2611_v38  ;;  %v2684_v61 = vmul.f32 0.35355338, %v2680_v59  ;;  %v2748_v8 = vadd.f32 %v4915_v50, %v2747_v13  ;;  %v5937_v38 = vld [vmem:[%s7370_s5] ss:$0 sm:$0xff] }
 0xdb7   :  { %v6848_v42 = vpack.c.bf16 %v2684_v61, %v2612_v54  ;;  %3067 = vrot.lane.b32.xlu0 %v2949_v2, %s7421_s10 }
 0xdb8   :  { %v2810_v20 = vpop.f32.mrb[72].mxu1 }
 0xdb9   :  { %v2811_v31 = vadd.f32 %v4924_v3, %v2810_v20  ;;  %v5424_v60 = vpop.f32.mrb[73].mxu1 }
 0xdba   :  { %v2876_v5 = vpop.f32.mrb[56].mxu0  ;;  %v2813_v7 = vpop.f32.mrb[74].mxu1 }
 0xdbb   :  { %v5432_v29 = vpop.f32.mrb[57].mxu0  ;;  %v2950_v53 = vpack.c.bf16 %v2811_v31, %v2745_v63  ;;  %v2814_v10 = vadd.f32 %v4924_v3, %v2813_v7  ;;  %v5425_v33 = vpop.f32.mrb[75].mxu1  ;;  %v2877_v22 = vadd.f32 %v4933_v21, %v2876_v5 }
 0xdbc   :  { %v2879_v12 = vpop.f32.mrb[58].mxu0 }
 0xdbd   :  { %v2880_v15 = vadd.f32 %v4933_v21, %v2879_v12  ;;  %v5433_v18 = vpop.f32.mrb[59].mxu0  ;;  %v3463_v11 = vpack.c.bf16 %v2814_v10, %v2748_v8  ;;  %3313 = vrot.lane.b32.xlu0 %v2950_v53, %s7422_s9  ;;  %3070 = vrot.lane.b32.xlu1 %v2950_v53, %s7421_s10  ;;  %v2956_v62 = vsel %vm757_vm3, %v2950_v53, 0 }
 0xdbe   :  { %5443 = vmatpush3.bf16.xpose.msra.mxu0 %v2956_v62 }
 0xdbf   :  { %5454 = vmatprep.subr.bf16.mxu0 %v5940_v56  ;;  %v3469_v43 = vsel %vm757_vm3, %v3463_v11, 0 }
 0xdc0   :  { %v2942_v49 = vpop.f32.mrb[76].mxu1 }
 0xdc1   :  { %v2943_v23 = vadd.f32 %v4942_v4, %v2942_v49  ;;  %v5440_v57 = vpop.f32.mrb[77].mxu1  ;;  %3192 = vrot.lane.b32.xlu1 %v2950_v53, %s7423_s3  ;;  %3583 = vrot.lane.b32.xlu0 %v3463_v11, %s7421_s10 }
 0xdc2   :  { %v2945_v28 = vpop.f32.mrb[78].mxu1 }
 0xdc3   :  { %v6863_v34 = vpack.c.bf16 %v2943_v23, %v2877_v22  ;;  %v2946_v26 = vadd.f32 %v4942_v4, %v2945_v28  ;;  %v5441_v36 = vpop.f32.mrb[79].mxu1 }
 0xdc5   :  { %v6865_v32 = vpack.c.bf16 %v2946_v26, %v2880_v15  ;;  %3190 = vrot.lane.b32.xlu1 %v2949_v2, %s7423_s3  ;;  %5445 = vmatmul.mubr.msk.bf16.vlgmr.msra.gmra.mrb[60].mxu0 %vm757_vm3, %v2949_v2  ;;  %v5938_v26 = vld [vmem:[%s7370_s5 + $0x1] ss:$0 sm:$0xff]  ;;  %s7424_s5 = smov 8  }
 0xdc6   :  { %3705 = vrot.lane.b32.xlu0 %v3463_v11, %s7423_s3  ;;  %5449 = vmatpush3.bf16.msra.mxu1 %v6863_v34 }
 0xdc7   :  { %5456 = vmatprep.mubr.msk.bf16.mxu0 %vm5941_vm2, %v5940_v56  ;;  %5460 = vmatprep.subr.bf16.mxu1 %v5940_v56 }
 0xdc9   :  { %3311 = vrot.lane.b32.xlu1 %v2949_v2, %s7422_s9 }
 0xdca   :  { %3826 = vrot.lane.b32.xlu0 %v3463_v11, %s7422_s9 }
 0xdcd   :  { %3580 = vrot.lane.b32.xlu1 %v6848_v42, %s7421_s10 }
 0xdd1   :  { %3703 = vrot.lane.b32.xlu1 %v6848_v42, %s7423_s3 }
 0xdd5   :  { %3824 = vrot.lane.b32.xlu1 %v6848_v42, %s7422_s9 }
 0xe29   :  { %v3068_v0 = vpop.permute.xlu0 %3067 }
 0xe2f   :  { %v3071_v27 = vpop.permute.xlu1 %3070  ;;  %v3314_v30 = vpop.permute.xlu0 %3313 }
 0xe30   :  { %v3076_v1 = vsel %vm757_vm3, %v3071_v27, 0  ;;  %v3319_v40 = vsel %vm757_vm3, %v3314_v30, 0 }
 0xe31   :  { %5455 = vmatpush3.bf16.xpose.msra.mxu0 %v3076_v1 }
 0xe32   :  { %5466 = vmatprep.subr.bf16.mxu0 %v5940_v56 }
 0xe33   :  { %v3193_v24 = vpop.permute.xlu1 %3192  ;;  %v3584_v9 = vpop.permute.xlu0 %3583 }
 0xe34   :  { %v3198_v6 = vsel %vm757_vm3, %v3193_v24, 0  ;;  %v3589_v25 = vsel %vm757_vm3, %v3584_v9, 0 }
 0xe37   :  { %v3191_v37 = vpop.permute.xlu1 %3190 }
 0xe38   :  { %5457 = vmatmul.mubr.msk.bf16.vlgmr.msra.gmra.mrb[64].mxu0 %vm757_vm3, %v3068_v0  ;;  %v3706_v45 = vpop.permute.xlu0 %3705 }
 0xe39   :  { %5467 = vmatpush3.bf16.xpose.msra.mxu0 %v3198_v6  ;;  %5468 = vmatprep.mubr.msk.bf16.mxu0 %vm5941_vm2, %v5940_v56  ;;  %v3711_v19 = vsel %vm757_vm3, %v3706_v45, 0 }
 0xe3a   :  { %5478 = vmatprep.subr.bf16.mxu0 %v5940_v56 }
 0xe3b   :  { %v3312_v41 = vpop.permute.xlu1 %3311 }
 0xe3c   :  { %v3827_v46 = vpop.permute.xlu0 %3826 }
 0xe3d   :  { %v3832_v17 = vsel %vm757_vm3, %v3827_v46, 0 }
 0xe3f   :  { %v3581_v16 = vpop.permute.xlu1 %3580 }
 0xe40   :  { %5469 = vmatmul.mubr.msk.bf16.vlgmr.msra.gmra.mrb[68].mxu0 %vm757_vm3, %v3191_v37 }
 0xe41   :  { %5479 = vmatpush3.bf16.xpose.msra.mxu0 %v3319_v40  ;;  %5480 = vmatprep.mubr.msk.bf16.mxu0 %vm5941_vm2, %v5940_v56 }
 0xe42   :  { %5490 = vmatprep.subr.bf16.mxu0 %v5940_v56 }
 0xe43   :  { %v3704_v48 = vpop.permute.xlu1 %3703 }
 0xe47   :  { %v3825_v51 = vpop.permute.xlu1 %3824 }
 0xe48   :  { %5481 = vmatmul.mubr.msk.bf16.vlgmr.msra.gmra.mrb[72].mxu0 %vm757_vm3, %v3312_v41 }
 0xe49   :  { %5491 = vmatpush3.bf16.xpose.msra.mxu0 %v3469_v43  ;;  %5492 = vmatprep.mubr.msk.bf16.mxu0 %vm5941_vm2, %v5940_v56 }
 0xe4a   :  { %5502 = vmatprep.subr.bf16.mxu0 %v5940_v56 }
 0xe50   :  { %5493 = vmatmul.mubr.msk.bf16.vlgmr.msra.gmra.mrb[76].mxu0 %vm757_vm3, %v6848_v42 }
 0xe51   :  { %5503 = vmatpush3.bf16.xpose.msra.mxu0 %v3589_v25  ;;  %5504 = vmatprep.mubr.msk.bf16.mxu0 %vm5941_vm2, %v5940_v56 }
 0xe52   :  { %5514 = vmatprep.subr.bf16.mxu0 %v5940_v56 }
 0xe58   :  { %5505 = vmatmul.mubr.msk.bf16.vlgmr.msra.gmra.mrb[80].mxu0 %vm757_vm3, %v3581_v16 }
 0xe59   :  { %5515 = vmatpush3.bf16.xpose.msra.mxu0 %v3711_v19  ;;  %5516 = vmatprep.mubr.msk.bf16.mxu0 %vm5941_vm2, %v5940_v56 }
 0xe5a   :  { %5526 = vmatprep.subr.bf16.mxu0 %v5940_v56 }
 0xe60   :  { %5517 = vmatmul.mubr.msk.bf16.vlgmr.msra.gmra.mrb[84].mxu0 %vm757_vm3, %v3704_v48 }
 0xe61   :  { %5527 = vmatpush3.bf16.xpose.msra.mxu0 %v3832_v17  ;;  %5528 = vmatprep.mubr.msk.bf16.mxu0 %vm5941_vm2, %v5940_v56 }
 0xe62   :  { %5538 = vmatprep.subr.bf16.mxu0 %v5940_v56 }
 0xe68   :  { %5529 = vmatmul.mubr.msk.bf16.vlgmr.msra.gmra.mrb[88].mxu0 %vm757_vm3, %v3825_v51 }
 0xe69   :  { %5542 = vmatprep.mubr.msk.bf16.mxu0 %vm5941_vm2, %v5940_v56 }
 0xe98   :  { %v2992_v55 = vpop.f32.mrb[60].mxu0 }
 0xe99   :  { %v6921_v58 = vadd.f32 %v5937_v38, %v2992_v55  ;;  %v5446_v59 = vpop.f32.mrb[61].mxu0 }
 0xe9a   :  { %v2995_v39 = vpop.f32.mrb[62].mxu0 }
 0xe9b   :  { %v2996_v13 = vadd.f32 %v5937_v38, %v2995_v39  ;;  %v5447_v14 = vpop.f32.mrb[63].mxu0  ;;  %v2999_v54 = vsel %vm805_vm4, %v6921_v58, -inf }
 0xe9c   :  { %3000 = vmax.xlane.f32.xlu0 %v2999_v54 }
 0xe9d   :  { %v3002_v2 = vsel %vm805_vm4, %v2996_v13, -inf }
 0xe9e   :  { %3003 = vmax.xlane.f32.xlu1 %v3002_v2 }
 0xf0b   :  { %v3112_v61 = vpop.f32.mrb[64].mxu0 }
 0xf0c   :  { %v6926_v50 = vadd.f32 %v5937_v38, %v3112_v61  ;;  %v5458_v3 = vpop.f32.mrb[65].mxu0 }
 0xf0d   :  { %v3115_v42 = vpop.f32.mrb[66].mxu0 }
 0xf0e   :  { %v6928_v20 = vadd.f32 %v5937_v38, %v3115_v42  ;;  %v5459_v63 = vpop.f32.mrb[67].mxu0  ;;  %v3119_v31 = vsel %vm805_vm4, %v6926_v50, -inf }
 0xf0f   :  { %3120 = vmax.xlane.f32.xlu0 %v3119_v31 }
 0xf10   :  { %v3122_v60 = vsel %vm805_vm4, %v6928_v20, -inf }
 0xf13   :  { %3123 = vmax.xlane.f32.xlu0 %v3122_v60  ;;  %v3234_v5 = vpop.f32.mrb[68].mxu0 }
 0xf14   :  { %v6934_v7 = vadd.f32 %v5937_v38, %v3234_v5  ;;  %v5470_v29 = vpop.f32.mrb[69].mxu0 }
 0xf15   :  { %v3237_v8 = vpop.f32.mrb[70].mxu0 }
 0xf16   :  { %v6936_v53 = vadd.f32 %v5937_v38, %v3237_v8  ;;  %v5471_v10 = vpop.f32.mrb[71].mxu0  ;;  %v3241_v21 = vsel %vm805_vm4, %v6934_v7, -inf }
 0xf17   :  { %3242 = vmax.xlane.f32.xlu1 %v3241_v21 }
 0xf18   :  { %v3244_v33 = vsel %vm805_vm4, %v6936_v53, -inf }
 0xf19   :  { %3245 = vmax.xlane.f32.xlu0 %v3244_v33 }
 0xf1b   :  { %v3355_v12 = vpop.f32.mrb[72].mxu0 }
 0xf1c   :  { %v6942_v15 = vadd.f32 %v5937_v38, %v3355_v12  ;;  %v5482_v18 = vpop.f32.mrb[73].mxu0 }
 0xf1d   :  { %v3358_v11 = vpop.f32.mrb[74].mxu0 }
 0xf1e   :  { %v6944_v62 = vadd.f32 %v5937_v38, %v3358_v11  ;;  %v5483_v4 = vpop.f32.mrb[75].mxu0  ;;  %v3362_v49 = vsel %vm805_vm4, %v6942_v15, -inf }
 0xf1f   :  { %3363 = vmax.xlane.f32.xlu1 %v3362_v49 }
 0xf20   :  { %v3365_v22 = vsel %vm805_vm4, %v6944_v62, -inf }
 0xf21   :  { %3366 = vmax.xlane.f32.xlu0 %v3365_v22 }
 0xf23   :  { %v3505_v23 = vpop.f32.mrb[76].mxu0 }
 0xf24   :  { %v5494_v57 = vpop.f32.mrb[77].mxu0  ;;  %v6976_v3 = vadd.f32 %v5938_v26, %v3505_v23 }
 0xf25   :  { %v3508_v28 = vpop.f32.mrb[78].mxu0 }
 0xf26   :  { %v6953_v36 = vadd.f32 %v5938_v26, %v3508_v28  ;;  %v5495_v27 = vpop.f32.mrb[79].mxu0  ;;  %v3512_v63 = vsel %vm805_vm4, %v6976_v3, -inf }
 0xf28   :  { %v3515_v1 = vsel %vm805_vm4, %v6953_v36, -inf }
 0xf29   :  { %3516 = vmax.xlane.f32.xlu0 %v3515_v1  ;;  %v3001_v54 = vpop.xlane.xlu0 %3000 }
 0xf2a   :  { %v3005_v2 = vsub.f32 %v6921_v58, %v3001_v54 }
 0xf2b   :  { %v3004_v24 = vpop.xlane.xlu1 %3003  ;;  %v3625_v0 = vpop.f32.mrb[80].mxu0 }
 0xf2c   :  { %v3006_v6 = vsub.f32 %v2996_v13, %v3004_v24  ;;  %v5506_v30 = vpop.f32.mrb[81].mxu0  ;;  %v3007_v61 = vmul.f32 1.442695, %v3005_v2  ;;  %v6978_v42 = vadd.f32 %v5938_v26, %v3625_v0 }
 0xf2d   :  { %v3628_v37 = vpop.f32.mrb[82].mxu0 }
 0xf2e   :  { %v3009_v40 = vmul.f32 1.442695, %v3006_v6  ;;  %v6957_v41 = vadd.f32 %v5938_v26, %v3628_v37  ;;  %v5507_v43 = vpop.f32.mrb[83].mxu0  ;;  %v3632_v60 = vsel %vm805_vm4, %v6978_v42, -inf }
 0xf30   :  { %5839 = vpow2.f32 %v3009_v40  ;;  %3143 = vrot.lane.b32.xlu1 %v6863_v34, %s7421_s10  ;;  %v3635_v9 = vsel %vm805_vm4, %v6957_v41, -inf }
 0xf31   :  { %3636 = vmax.xlane.f32.xlu0 %v3635_v9  ;;  %5841 = vpow2.f32 %v3007_v61 }
 0xf33   :  { %v3747_v25 = vpop.f32.mrb[84].mxu0 }
 0xf34   :  { %v5518_v45 = vpop.f32.mrb[85].mxu0  ;;  %v6982_v31 = vadd.f32 %v5938_v26, %v3747_v25 }
 0xf35   :  { %v3750_v16 = vpop.f32.mrb[86].mxu0 }
 0xf36   :  { %v6963_v19 = vadd.f32 %v5938_v26, %v3750_v16  ;;  %v5519_v46 = vpop.f32.mrb[87].mxu0  ;;  %v3754_v5 = vsel %vm805_vm4, %v6982_v31, -inf }
 0xf38   :  { %v3757_v48 = vsel %vm805_vm4, %v6963_v19, -inf }
 0xf39   :  { %3758 = vmax.xlane.f32.xlu0 %v3757_v48 }
 0xf3a   :  { %v6967_v17 = vpop.eup %5839 }
 0xf3b   :  { %v3868_v51 = vpop.f32.mrb[88].mxu0  ;;  %v3014_v55 = vsel %vm805_vm4, %v6967_v17, 0.0  ;;  %v6988_v58 = vpop.eup %5841 }
 0xf3c   :  { %v5530_v38 = vpop.f32.mrb[89].mxu0  ;;  %v6990_v29 = vadd.f32 %v5938_v26, %v3868_v51  ;;  %v3011_v8 = vsel %vm805_vm4, %v6988_v58, 0.0 }
 0xf3d   :  { %3015 = vadd.xlane.f32.xlu0 %v3014_v55  ;;  %v3871_v59 = vpop.f32.mrb[90].mxu0 }
 0xf3e   :  { %v6971_v39 = vadd.f32 %v5938_v26, %v3871_v59  ;;  %v5531_v13 = vpop.f32.mrb[91].mxu0  ;;  %v3875_v10 = vsel %vm805_vm4, %v6990_v29, -inf }
 0xf40   :  { %v3878_v14 = vsel %vm805_vm4, %v6971_v39, -inf }
 0xf41   :  { %3879 = vmax.xlane.f32.xlu0 %v3878_v14 }
 0xf54   :  { %3513 = vmax.xlane.f32.xlu1 %v3512_v63 }
 0xf58   :  { %3633 = vmax.xlane.f32.xlu1 %v3632_v60 }
 0xf5c   :  { %3755 = vmax.xlane.f32.xlu1 %v3754_v5 }
 0xf60   :  { %3012 = vadd.xlane.f32.xlu1 %v3011_v8 }
 0xf64   :  { %3876 = vmax.xlane.f32.xlu1 %v3875_v10 }
 0xf9c   :  { %v3121_v21 = vpop.xlane.xlu0 %3120 }
 0xf9d   :  { %v3125_v33 = vsub.f32 %v6926_v50, %v3121_v21 }
 0xf9f   :  { %v3127_v12 = vmul.f32 1.442695, %v3125_v33 }
 0xfa0   :  { %v3124_v18 = vpop.xlane.xlu0 %3123 }
 0xfa1   :  { %5843 = vpow2.f32 %v3127_v12  ;;  %v3126_v11 = vsub.f32 %v6928_v20, %v3124_v18 }
 0xfa3   :  { %v3129_v4 = vmul.f32 1.442695, %v3126_v11 }
 0xfa4   :  { %v3243_v50 = vpop.xlane.xlu1 %3242 }
 0xfa5   :  { %5845 = vpow2.f32 %v3129_v4  ;;  %v3247_v20 = vsub.f32 %v6934_v7, %v3243_v50 }
 0xfa6   :  { %v3246_v28 = vpop.xlane.xlu0 %3245 }
 0xfa7   :  { %v3248_v27 = vsub.f32 %v6936_v53, %v3246_v28  ;;  %v3249_v1 = vmul.f32 1.442695, %v3247_v20 }
 0xfa9   :  { %v3251_v6 = vmul.f32 1.442695, %v3248_v27  ;;  %5847 = vpow2.f32 %v3249_v1 }
 0xfab   :  { %v6998_v49 = vpop.eup %5843  ;;  %5849 = vpow2.f32 %v3251_v6 }
 0xfac   :  { %v3131_v22 = vsel %vm805_vm4, %v6998_v49, 0.0  ;;  %v3364_v26 = vpop.xlane.xlu1 %3363 }
 0xfad   :  { %3132 = vadd.xlane.f32.xlu1 %v3131_v22  ;;  %v3368_v24 = vsub.f32 %v6942_v15, %v3364_v26 }
 0xfae   :  { %v3367_v0 = vpop.xlane.xlu0 %3366 }
 0xfaf   :  { %v7002_v23 = vpop.eup %5845  ;;  %v3370_v30 = vmul.f32 1.442695, %v3368_v24  ;;  %v3369_v37 = vsub.f32 %v6944_v62, %v3367_v0 }
 0xfb0   :  { %v3134_v57 = vsel %vm805_vm4, %v7002_v23, 0.0  ;;  %v7015_v9 = vpop.permute.xlu1 %3143 }
 0xfb1   :  { %3135 = vadd.xlane.f32.xlu0 %v3134_v57  ;;  %5851 = vpow2.f32 %v3370_v30 }
 0xfb3   :  { %v7017_v25 = vpop.eup %5847 }
 0xfb4   :  { %v3253_v62 = vsel %vm805_vm4, %v7017_v25, 0.0 }
 0xfb5   :  { %v7019_v15 = vpop.eup %5849 }
 0xfb6   :  { %v3517_v40 = vpop.xlane.xlu0 %3516  ;;  %v3256_v59 = vsel %vm805_vm4, %v7019_v15, 0.0 }
 0xfb7   :  { %v3519_v43 = vsub.f32 %v6953_v36, %v3517_v40 }
 0xfb9   :  { %v3522_v7 = vmul.f32 1.442695, %v3519_v43 }
 0xfbb   :  { %v7023_v46 = vpop.eup %5851 }
 0xfbc   :  { %v3374_v38 = vsel %vm805_vm4, %v7023_v46, 0.0 }
 0xfbe   :  { %3385 = vrot.lane.b32.xlu1 %v6863_v34, %s7422_s9  ;;  %v3637_v53 = vpop.xlane.xlu0 %3636 }
 0xfbf   :  { %v3639_v36 = vsub.f32 %v6957_v41, %v3637_v53 }
 0xfc1   :  { %v3642_v2 = vmul.f32 1.442695, %v3639_v36 }
 0xfc6   :  { %v3759_v45 = vpop.xlane.xlu0 %3758 }
 0xfc7   :  { %3264 = vrot.lane.b32.xlu0 %v6863_v34, %s7423_s3  ;;  %v3372_v34 = vmul.f32 1.442695, %v3369_v37  ;;  %v3761_v61 = vsub.f32 %v6963_v19, %v3759_v45 }
 0xfc9   :  { %5853 = vpow2.f32 %v3372_v34  ;;  %v3764_v5 = vmul.f32 1.442695, %v3761_v61 }
 0xfca   :  { %5855 = vpow2.f32 %v3522_v7  ;;  %v3016_v54 = vpop.xlane.xlu0 %3015 }
 0xfce   :  { %v3880_v8 = vpop.xlane.xlu0 %3879 }
 0xfcf   :  { %v3882_v21 = vsub.f32 %v6971_v39, %v3880_v8 }
 0xfd1   :  { %v3885_v4 = vmul.f32 1.442695, %v3882_v21 }
 0xfd3   :  { %v7031_v13 = vpop.eup %5853 }
 0xfd4   :  { %v3377_v63 = vsel %vm805_vm4, %v7031_v13, 0.0  ;;  %v7037_v60 = vpop.eup %5855 }
 0xfd5   :  { %v3527_v10 = vsel %vm805_vm4, %v7037_v60, 0.0 }
 0xfe1   :  { %v3514_v16 = vpop.xlane.xlu1 %3513 }
 0xfe2   :  { %v3518_v48 = vsub.f32 %v6976_v3, %v3514_v16  ;;  %3254 = vadd.xlane.f32.xlu1 %v3253_v62 }
 0xfe4   :  { %v3520_v51 = vmul.f32 1.442695, %v3518_v48 }
 0xfe5   :  { %v3634_v55 = vpop.xlane.xlu1 %3633 }
 0xfe6   :  { %5857 = vpow2.f32 %v3520_v51  ;;  %v3638_v14 = vsub.f32 %v6978_v42, %v3634_v55  ;;  %3375 = vadd.xlane.f32.xlu1 %v3374_v38  ;;  %3257 = vadd.xlane.f32.xlu0 %v3256_v59 }
 0xfe8   :  { %v3640_v41 = vmul.f32 1.442695, %v3638_v14 }
 0xfe9   :  { %v3756_v3 = vpop.xlane.xlu1 %3755 }
 0xfea   :  { %5859 = vpow2.f32 %v3640_v41  ;;  %3378 = vadd.xlane.f32.xlu0 %v3377_v63  ;;  %v3760_v30 = vsub.f32 %v6982_v31, %v3756_v3 }
 0xfeb   :  { %5861 = vpow2.f32 %v3642_v2 }
 0xfec   :  { %5863 = vrcp.f32 %v3016_v54  ;;  %v3762_v37 = vmul.f32 1.442695, %v3760_v30 }
 0xfed   :  { %v3013_v42 = vpop.xlane.xlu1 %3012 }
 0xfee   :  { %3528 = vadd.xlane.f32.xlu0 %v3527_v10  ;;  %5865 = vrcp.f32 %v3013_v42 }
 0xfef   :  { %5867 = vpow2.f32 %v3764_v5 }
 0xff0   :  { %v7041_v19 = vpop.eup %5857 }
 0xff1   :  { %v3877_v33 = vpop.xlane.xlu1 %3876  ;;  %v3524_v12 = vsel %vm805_vm4, %v7041_v19, 0.0 }
 0xff2   :  { %v3881_v18 = vsub.f32 %v6990_v29, %v3877_v33  ;;  %3525 = vadd.xlane.f32.xlu1 %v3524_v12 }
 0xff4   :  { %v7047_v11 = vpop.eup %5859  ;;  %v3883_v22 = vmul.f32 1.442695, %v3881_v18 }
 0xff5   :  { %v3644_v57 = vsel %vm805_vm4, %v7047_v11, 0.0  ;;  %v7051_v50 = vpop.eup %5861 }
 0xff6   :  { %5869 = vpow2.f32 %v3883_v22  ;;  %3645 = vadd.xlane.f32.xlu0 %v3644_v57  ;;  %v5864_v20 = vpop.eup %5863  ;;  %v3647_v28 = vsel %vm805_vm4, %v7051_v50, 0.0 }
 0xff7   :  { %5871 = vpow2.f32 %v3885_v4  ;;  %v3020_v29 = vmul.f32 %v5864_v20, %v6967_v17 }
 0xff8   :  { %v5866_v39 = vpop.eup %5865  ;;  %5873 = vpow2.f32 %v3762_v37 }
 0xff9   :  { %v7055_v26 = vpop.eup %5867  ;;  %v3019_v27 = vmul.f32 %v5866_v39, %v6988_v58 }
 0xffa   :  { %3648 = vadd.xlane.f32.xlu0 %v3647_v28  ;;  %v3769_v24 = vsel %vm805_vm4, %v7055_v26, 0.0 }
 0xffb   :  { %v3021_v1 = vpack.c.bf16 %v3020_v29, %v3019_v27 }
 0xffd   :  { %5451 = vmatmul.mubr.msk.bf16.vlgmr.msra.gmra.mrb[80].mxu1 %vm805_vm4, %v3021_v1 }
 0xffe   :  { %3770 = vadd.xlane.f32.xlu0 %v3769_v24  ;;  %5461 = vmatpush3.bf16.msra.mxu1 %v7015_v9 }
 0xfff   :  { %5462 = vmatprep.mubr.msk.bf16.mxu1 %vm5941_vm2, %v5940_v56  ;;  %5472 = vmatprep.subr.bf16.mxu1 %v5940_v56 }
0x1000   :  { %v7065_v0 = vpop.eup %5869 }
0x1001   :  { %v3887_v17 = vsel %vm805_vm4, %v7065_v0, 0.0  ;;  %v7070_v58 = vpop.eup %5871 }
0x1002   :  { %3888 = vadd.xlane.f32.xlu0 %v3887_v17  ;;  %v3890_v6 = vsel %vm805_vm4, %v7070_v58, 0.0  ;;  %v7079_v40 = vpop.eup %5873 }
0x1003   :  { %3656 = vrot.lane.b32.xlu1 %v6865_v32, %s7421_s10  ;;  %v3766_v34 = vsel %vm805_vm4, %v7079_v40, 0.0 }
0x1006   :  { %3891 = vadd.xlane.f32.xlu0 %v3890_v6 }
0x101c   :  { %3777 = vrot.lane.b32.xlu0 %v6865_v32, %s7423_s3 }
0x1027   :  { %3767 = vadd.xlane.f32.xlu1 %v3766_v34 }
0x1038   :  { %3898 = vrot.lane.b32.xlu1 %v6865_v32, %s7422_s9 }
0x103a   :  { %v3133_v43 = vpop.xlane.xlu1 %3132 }
0x103b   :  { %5875 = vrcp.f32 %v3133_v43 }
0x103e   :  { %v3136_v7 = vpop.xlane.xlu0 %3135  ;;  %v3386_v48 = vpop.permute.xlu1 %3385 }
0x103f   :  { %5877 = vrcp.f32 %v3136_v7 }
0x1042   :  { %v3265_v62 = vpop.permute.xlu0 %3264 }
0x1045   :  { %v5876_v9 = vpop.eup %5875 }
0x1046   :  { %v3139_v53 = vmul.f32 %v5876_v9, %v6998_v49 }
0x1049   :  { %v5878_v31 = vpop.eup %5877 }
0x104a   :  { %v3140_v45 = vmul.f32 %v5878_v31, %v7002_v23 }
0x104c   :  { %v3141_v16 = vpack.c.bf16 %v3140_v45, %v3139_v53 }
0x104e   :  { %5463 = vmatmul.mubr.msk.bf16.vlgmr.msra.gmra.mrb[84].mxu1 %vm805_vm4, %v3141_v16 }
0x104f   :  { %5473 = vmatpush3.bf16.msra.mxu1 %v3265_v62  ;;  %5474 = vmatprep.mubr.msk.bf16.mxu1 %vm5941_vm2, %v5940_v56 }
0x1050   :  { %5484 = vmatprep.subr.bf16.mxu1 %v5940_v56 }
0x106f   :  { %v3255_v36 = vpop.xlane.xlu1 %3254 }
0x1070   :  { %5879 = vrcp.f32 %v3255_v36 }
0x1073   :  { %v3258_v51 = vpop.xlane.xlu0 %3257  ;;  %v3376_v38 = vpop.xlane.xlu1 %3375 }
0x1074   :  { %5881 = vrcp.f32 %v3258_v51 }
0x1077   :  { %v3379_v55 = vpop.xlane.xlu0 %3378 }
0x1078   :  { %5883 = vrcp.f32 %v3379_v55 }
0x1079   :  { %5885 = vrcp.f32 %v3376_v38 }
0x107a   :  { %v5880_v49 = vpop.eup %5879 }
0x107b   :  { %v3529_v59 = vpop.xlane.xlu0 %3528  ;;  %v3261_v54 = vmul.f32 %v5880_v49, %v7017_v25 }
0x107e   :  { %v5882_v23 = vpop.eup %5881 }
0x107f   :  { %v3526_v14 = vpop.xlane.xlu1 %3525  ;;  %v3262_v2 = vmul.f32 %v5882_v23, %v7019_v15 }
0x1080   :  { %5887 = vrcp.f32 %v3526_v14 }
0x1081   :  { %v3263_v61 = vpack.c.bf16 %v3262_v2, %v3261_v54  ;;  %5889 = vrcp.f32 %v3529_v59 }
0x1082   :  { %v5884_v41 = vpop.eup %5883 }
0x1083   :  { %v3646_v3 = vpop.xlane.xlu0 %3645  ;;  %5475 = vmatmul.mubr.msk.bf16.vlgmr.msra.gmra.mrb[88].mxu1 %vm805_vm4, %v3263_v61  ;;  %v5886_v63 = vpop.eup %5885  ;;  %v3383_v5 = vmul.f32 %v5884_v41, %v7031_v13 }
0x1084   :  { %5485 = vmatpush3.bf16.msra.mxu1 %v3386_v48  ;;  %5486 = vmatprep.mubr.msk.bf16.mxu1 %vm5941_vm2, %v5940_v56  ;;  %v3382_v25 = vmul.f32 %v5886_v63, %v7023_v46  ;;  %v3657_v4 = vpop.permute.xlu1 %3656 }
0x1085   :  { %5496 = vmatprep.subr.bf16.mxu1 %v5940_v56 }
0x1086   :  { %v3384_v15 = vpack.c.bf16 %v3383_v5, %v3382_v25  ;;  %v5719_v5 = vld [vmem:[%s7371_s12 + $0x20] sm:$0xff]  }
0x1087   :  { %v3649_v8 = vpop.xlane.xlu0 %3648  ;;  %5539 = vmatpush3.bf16.msra.mxu0 %v5719_v5 }
0x1088   :  { %5891 = vrcp.f32 %v3649_v8  ;;  %v5720_v8 = vld [vmem:[%s7371_s12 + $0x30] sm:$0xff]   ;;  %5540 = vmatprep.subr.bf16.mxu0 %v5940_v56 }
0x1089   :  { %5893 = vrcp.f32 %v3646_v3 }
0x108a   :  { %v5888_v42 = vpop.eup %5887 }
0x108b   :  { %v3771_v10 = vpop.xlane.xlu0 %3770  ;;  %5487 = vmatmul.mubr.msk.bf16.vlgmr.msra.gmra.mrb[92].mxu1 %vm805_vm4, %v3384_v15  ;;  %v5890_v21 = vpop.eup %5889  ;;  %v3532_v13 = vmul.f32 %v5888_v42, %v7041_v19 }
0x108c   :  { %5497 = vmatpush3.bf16.msra.mxu1 %v6865_v32  ;;  %5498 = vmatprep.mubr.msk.bf16.mxu1 %vm5941_vm2, %v5940_v56  ;;  %v3533_v33 = vmul.f32 %v5890_v21, %v7037_v60  ;;  %5895 = vrcp.f32 %v3771_v10  ;;  %v5721_v10 = vld [vmem:[%s7371_s12 + $0x28] sm:$0xff]   ;;  %v5722_v21 = vld [vmem:[%s7371_s12 + $0x38] sm:$0xff]  }
0x108d   :  { %5508 = vmatprep.subr.bf16.mxu1 %v5940_v56  ;;  %5541 = vmatpush3.bf16.msra.mxu0 %v5721_v10 }
0x108e   :  { %v3534_v12 = vpack.c.bf16 %v3533_v33, %v3532_v13  ;;  %5554 = vmatprep.subr.bf16.mxu0 %v5940_v56 }
0x108f   :  { %v3889_v46 = vpop.xlane.xlu0 %3888 }
0x1092   :  { %v5892_v18 = vpop.eup %5891 }
0x1093   :  { %5499 = vmatmul.mubr.msk.bf16.vlgmr.msra.gmra.mrb[96].mxu1 %vm805_vm4, %v3534_v12  ;;  %v5894_v22 = vpop.eup %5893  ;;  %v3653_v32 = vmul.f32 %v5892_v18, %v7051_v50  ;;  %v3892_v57 = vpop.xlane.xlu0 %3891 }
0x1094   :  { %5509 = vmatpush3.bf16.msra.mxu1 %v3657_v4  ;;  %5510 = vmatprep.mubr.msk.bf16.mxu1 %vm5941_vm2, %v5940_v56  ;;  %v3652_v19 = vmul.f32 %v5894_v22, %v7047_v11 }
0x1095   :  { %5520 = vmatprep.subr.bf16.mxu1 %v5940_v56 }
0x1096   :  { %v3654_v20 = vpack.c.bf16 %v3653_v32, %v3652_v19  ;;  %v5896_v50 = vpop.eup %5895 }
0x1097   :  { %v3778_v60 = vpop.permute.xlu0 %3777  ;;  %v3775_v29 = vmul.f32 %v5896_v50, %v7055_v26 }
0x109b   :  { %5511 = vmatmul.mubr.msk.bf16.vlgmr.msra.gmra.mrb[100].mxu1 %vm805_vm4, %v3654_v20 }
0x109c   :  { %5521 = vmatpush3.bf16.msra.mxu1 %v3778_v60  ;;  %5522 = vmatprep.mubr.msk.bf16.mxu1 %vm5941_vm2, %v5940_v56 }
0x109d   :  { %5532 = vmatprep.subr.bf16.mxu1 %v5940_v56 }
0x10b4   :  { %v3768_v39 = vpop.xlane.xlu1 %3767 }
0x10b5   :  { %5897 = vrcp.f32 %v3768_v39 }
0x10b6   :  { %5899 = vrcp.f32 %v3892_v57 }
0x10b7   :  { %5901 = vrcp.f32 %v3889_v46 }
0x10b8   :  { %v3899_v24 = vpop.permute.xlu1 %3898 }
0x10bf   :  { %v5898_v28 = vpop.eup %5897 }
0x10c0   :  { %v3774_v11 = vmul.f32 %v5898_v28, %v7079_v40  ;;  %v5900_v1 = vpop.eup %5899 }
0x10c1   :  { %v5902_v17 = vpop.eup %5901  ;;  %v3896_v6 = vmul.f32 %v5900_v1, %v7070_v58 }
0x10c2   :  { %v3776_v27 = vpack.c.bf16 %v3775_v29, %v3774_v11  ;;  %v3895_v30 = vmul.f32 %v5902_v17, %v7065_v0 }
0x10c4   :  { %5523 = vmatmul.mubr.msk.bf16.vlgmr.msra.gmra.mrb[104].mxu1 %vm805_vm4, %v3776_v27  ;;  %v3897_v37 = vpack.c.bf16 %v3896_v6, %v3895_v30 }
0x10c5   :  { %5533 = vmatpush3.bf16.msra.mxu1 %v3899_v24  ;;  %5534 = vmatprep.mubr.msk.bf16.mxu1 %vm5941_vm2, %v5940_v56 }
0x10c6   :  { %5546 = vmatprep.subr.bf16.mxu1 %v5940_v56 }
0x10cc   :  { %5535 = vmatmul.mubr.msk.bf16.vlgmr.msra.gmra.mrb[108].mxu1 %vm805_vm4, %v3897_v37 }
0x10cd   :  { %5550 = vmatprep.mubr.msk.bf16.mxu1 %vm5941_vm2, %v5940_v56  ;;  %5547 = vmatpush3.bf16.msra.mxu1 %v5720_v8 }
0x10ce   :  { %5548 = vmatprep.subr.bf16.mxu1 %v5940_v56 }
0x10d0   :  { %v7127_v26 = vpop.f32.mrb[80].mxu1 }
0x10d1   :  { %v5452_v40 = vpop.f32.mrb[81].mxu1  ;;  %5549 = vmatpush3.bf16.msra.mxu1 %v5722_v21 }
0x10d2   :  { %v7129_v34 = vpop.f32.mrb[82].mxu1  ;;  %5562 = vmatprep.subr.bf16.mxu1 %v5940_v56 }
0x10d3   :  { %v5453_v43 = vpop.f32.mrb[83].mxu1 }
0x1121   :  { %v3183_v7 = vpop.f32.mrb[84].mxu1 }
0x1122   :  { %v5464_v9 = vpop.f32.mrb[85].mxu1 }
0x1123   :  { %v3186_v31 = vpop.f32.mrb[86].mxu1 }
0x1124   :  { %v5634_v58 = vpack.i.bf16 %v3186_v31, %v3183_v7  ;;  %v5465_v53 = vpop.f32.mrb[87].mxu1 }
0x1126   :  { %5635 = vrot.lane.b32.xlu1 %v5634_v58, %s7424_s5 }
0x1156   :  { %v3304_v0 = vpop.f32.mrb[88].mxu1 }
0x1157   :  { %v5476_v45 = vpop.f32.mrb[89].mxu1 }
0x1158   :  { %v3307_v16 = vpop.f32.mrb[90].mxu1 }
0x1159   :  { %v5639_v62 = vpack.i.bf16 %v3307_v16, %v3304_v0  ;;  %v5477_v48 = vpop.f32.mrb[91].mxu1 }
0x115b   :  { %5640 = vrot.lane.b32.xlu1 %v5639_v62, %s5946_s29 }
0x115e   :  { %v3425_v36 = vpop.f32.mrb[92].mxu1 }
0x115f   :  { %v5488_v51 = vpop.f32.mrb[93].mxu1 }
0x1160   :  { %v3428_v55 = vpop.f32.mrb[94].mxu1 }
0x1161   :  { %v5644_v38 = vpack.i.bf16 %v3428_v55, %v3425_v36  ;;  %v5489_v49 = vpop.f32.mrb[95].mxu1  ;;  %v4970_v55 = vld [vmem:[%s7372_s13 + $0x2] ss:$0 sm:$0xff] }
0x1163   :  { %5645 = vrot.lane.b32.xlu0 %v5644_v38, %s5947_s30 }
0x1166   :  { %v3572_v23 = vpop.f32.mrb[96].mxu1 }
0x1167   :  { %v5500_v59 = vpop.f32.mrb[97].mxu1 }
0x1168   :  { %v3575_v14 = vpop.f32.mrb[98].mxu1 }
0x1169   :  { %v5501_v54 = vpop.f32.mrb[99].mxu1 }
0x116a   :  { %v4979_v54 = vld [vmem:[%s7372_s13 + $0x3] ss:$0 sm:$0xff] }
0x116e   :  { %v3696_v2 = vpop.f32.mrb[100].mxu1 }
0x116f   :  { %v5512_v61 = vpop.f32.mrb[101].mxu1 }
0x1170   :  { %v3699_v41 = vpop.f32.mrb[102].mxu1 }
0x1171   :  { %v5649_v3 = vpack.i.bf16 %v3699_v41, %v3696_v2  ;;  %v5513_v63 = vpop.f32.mrb[103].mxu1 }
0x1173   :  { %5650 = vrot.lane.b32.xlu1 %v5649_v3, %s7424_s5 }
0x1197   :  { %v3817_v25 = vpop.f32.mrb[104].mxu1 }
0x1198   :  { %v5524_v15 = vpop.f32.mrb[105].mxu1  ;;  %v5636_v32 = vpop.permute.xlu1 %5635 }
0x1199   :  { %v3820_v42 = vpop.f32.mrb[106].mxu1  ;;  %v5638_v60 = vunpack.i.h.bf16 %v5636_v32  ;;  %v5637_v39 = vunpack.i.l.bf16 %v5636_v32 }
0x119a   :  { %v5654_v13 = vpack.i.bf16 %v3820_v42, %v3817_v25  ;;  %v5525_v33 = vpop.f32.mrb[107].mxu1 }
0x119b   :  { %v3457_v30 = vsel %vm757_vm3, %v7129_v34, %v5638_v60  ;;  %v3456_v37 = vsel %vm757_vm3, %v7127_v26, %v5637_v39 }
0x119c   :  { %5655 = vrot.lane.b32.xlu1 %v5654_v13, %s5946_s29 }
0x119f   :  { %v3938_v46 = vpop.f32.mrb[108].mxu1 }
0x11a0   :  { %v5536_v12 = vpop.f32.mrb[109].mxu1 }
0x11a1   :  { %v3941_v18 = vpop.f32.mrb[110].mxu1 }
0x11a2   :  { %v5659_v4 = vpack.i.bf16 %v3941_v18, %v3938_v46  ;;  %v5537_v22 = vpop.f32.mrb[111].mxu1 }
0x11a4   :  { %5660 = vrot.lane.b32.xlu1 %v5659_v4, %s5947_s30 }
0x11cd   :  { %v5641_v57 = vpop.permute.xlu1 %5640 }
0x11ce   :  { %v5643_v11 = vunpack.i.h.bf16 %v5641_v57  ;;  %v5642_v27 = vunpack.i.l.bf16 %v5641_v57 }
0x11d0   :  { %v3459_v58 = vsel %vm805_vm4, %v3457_v30, %v5643_v11  ;;  %v3458_v53 = vsel %vm805_vm4, %v3456_v37, %v5642_v27 }
0x11d5   :  { %v5646_v50 = vpop.permute.xlu0 %5645 }
0x11d6   :  { %v5648_v17 = vunpack.i.h.bf16 %v5646_v50  ;;  %v5647_v6 = vunpack.i.l.bf16 %v5646_v50 }
0x11d8   :  { %v3461_v34 = vsel %vm1267_vm5, %v3459_v58, %v5648_v17  ;;  %v3460_v16 = vsel %vm1267_vm5, %v3458_v53, %v5647_v6  ;;  %v5725_v17 = vld [vmem:[%s7373_s18 + $0x30] sm:$0xff]   ;;  %v5726_v6 = vld [vmem:[%s7373_s18 + $0x38] sm:$0xff]  }
0x11e5   :  { %v5651_v19 = vpop.permute.xlu1 %5650 }
0x11e6   :  { %v5653_v28 = vunpack.i.h.bf16 %v5651_v19  ;;  %v5652_v29 = vunpack.i.l.bf16 %v5651_v19 }
0x11e8   :  { %v3970_v43 = vsel %vm757_vm3, %v3575_v14, %v5653_v28  ;;  %v3969_v7 = vsel %vm757_vm3, %v3572_v23, %v5652_v29 }
0x120e   :  { %v5656_v20 = vpop.permute.xlu1 %5655 }
0x120f   :  { %v5658_v1 = vunpack.i.h.bf16 %v5656_v20  ;;  %v5657_v24 = vunpack.i.l.bf16 %v5656_v20 }
0x1211   :  { %v3972_v0 = vsel %vm805_vm4, %v3970_v43, %v5658_v1  ;;  %v3971_v45 = vsel %vm805_vm4, %v3969_v7, %v5657_v24  ;;  %v5723_v1 = vld [vmem:[%s7373_s18 + $0x20] sm:$0xff]   ;;  %v5724_v24 = vld [vmem:[%s7373_s18 + $0x28] sm:$0xff]  }
0x1216   :  { %v5661_v40 = vpop.permute.xlu1 %5660 }
0x1217   :  { %v5663_v9 = vunpack.i.h.bf16 %v5661_v40  ;;  %v5662_v31 = vunpack.i.l.bf16 %v5661_v40 }
0x1219   :  { %v3974_v26 = vsel %vm1267_vm5, %v3972_v0, %v5663_v9  ;;  %v3973_v62 = vsel %vm1267_vm5, %v3971_v45, %v5662_v31 }
0x121a   :  { %v3980_v48 = vpack.c.bf16 %v3973_v62, %v3460_v16  ;;  %v4054_v36 = vpack.c.bf16 %v3974_v26, %v3461_v34  ;;  %v4982_v26 = vld [vmem:[%s7374_s16 + $0x2] ss:$0 sm:$0xff] }
0x121c   :  { %5543 = vmatmul.mubr.msk.bf16.vlgmr.msra.gmra.mrb[92].mxu0 %vm256_vm1, %v3980_v48  ;;  %5551 = vmatmul.mubr.msk.bf16.vlgmr.msra.gmra.mrb[112].mxu1 %vm256_vm1, %v4054_v36 }
0x121d   :  { %5558 = vmatprep.mubr.msk.bf16.mxu0 %vm5941_vm2, %v5940_v56  ;;  %5566 = vmatprep.mubr.msk.bf16.mxu1 %vm5941_vm2, %v5940_v56 }
0x121e   :  { %5555 = vmatpush3.bf16.msra.mxu0 %v5723_v1  ;;  %5563 = vmatpush3.bf16.msra.mxu1 %v5725_v17 }
0x121f   :  { %5556 = vmatprep.subr.bf16.mxu0 %v5940_v56  ;;  %5564 = vmatprep.subr.bf16.mxu1 %v5940_v56 }
0x1222   :  { %5557 = vmatpush3.bf16.msra.mxu0 %v5724_v24  ;;  %5565 = vmatpush3.bf16.msra.mxu1 %v5726_v6 }
0x1223   :  { %5570 = vmatprep.subr.bf16.mxu0 %v5940_v56  ;;  %5582 = vmatprep.subr.bf16.mxu1 %v5940_v56 }
0x12ef   :  { %v4030_v51 = vpop.f32.mrb[92].mxu0  ;;  %v4104_v38 = vpop.f32.mrb[112].mxu1 }
0x12f0   :  { %v4037_v49 = vadd.f32 %v4030_v51, %v6728_v44  ;;  %v4111_v23 = vadd.f32 %v4104_v38, %v6741_v47  ;;  %v5544_v59 = vpop.f32.mrb[93].mxu0  ;;  %v5552_v14 = vpop.f32.mrb[113].mxu1  ;;  %v4983_v38 = vld [vmem:[%s7375_s17 + $0x2] ss:$0 sm:$0xff] }
0x12f1   :  { %v4033_v2 = vpop.f32.mrb[94].mxu0  ;;  %v4107_v61 = vpop.f32.mrb[114].mxu1  ;;  %v4986_v59 = vld [vmem:[%s7374_s16 + $0x3] ss:$0 sm:$0xff] }
0x12f2   :  { %v7181_v41 = vadd.f32 %v4970_v55, %v4037_v49  ;;  %v4038_v3 = vadd.f32 %v4033_v2, %v6731_v52  ;;  %v5545_v63 = vpop.f32.mrb[95].mxu0  ;;  %v5553_v5 = vpop.f32.mrb[115].mxu1  ;;  %v7184_v8 = vadd.f32 %v4979_v54, %v4111_v23  ;;  %v4112_v44 = vadd.f32 %v4107_v61, %v6744_v35 }
0x12f3   :  { %v4987_v5 = vld [vmem:[%s7375_s17 + $0x3] ss:$0 sm:$0xff] }
0x12f4   :  { %v7186_v25 = vadd.f32 %v4970_v55, %v4038_v3  ;;  %v4127_v47 = vsel %vm256_vm1, %v7181_v41, 0.0  ;;  %v7193_v42 = vadd.f32 %v4979_v54, %v4112_v44  ;;  %v4173_v52 = vsel %vm256_vm1, %v7184_v8, 0.0 }
0x12f5   :  { %4128 = vadd.xlane.f32.xlu0 %v4127_v47 }
0x12f6   :  { %v4130_v15 = vsel %vm256_vm1, %v7186_v25, 0.0  ;;  %v4176_v10 = vsel %vm256_vm1, %v7193_v42, 0.0 }
0x12f7   :  { %4131 = vadd.xlane.f32.xlu1 %v4130_v15 }
0x12f9   :  { %4174 = vadd.xlane.f32.xlu0 %v4173_v52 }
0x12fd   :  { %4177 = vadd.xlane.f32.xlu0 %v4176_v10  ;;  %v5727_v10 = vld [vmem:[%s7376_s20 + $0x40] sm:$0xff]  }
0x1382   :  { %v4129_v21 = vpop.xlane.xlu0 %4128 }
0x1383   :  { %v4133_v35 = vmul.f32 0.03125, %v4129_v21  ;;  %v5728_v21 = vld [vmem:[%s7376_s20 + $0x48] sm:$0xff]  }
0x1384   :  { %v4132_v13 = vpop.xlane.xlu1 %4131 }
0x1385   :  { %v4135_v33 = vsub.f32 %v7181_v41, %v4133_v35  ;;  %v4134_v46 = vmul.f32 0.03125, %v4132_v13  ;;  %v5729_v35 = vld [vmem:[%s7376_s20 + $0x60] sm:$0xff]   ;;  %v5730_v13 = vld [vmem:[%s7376_s20 + $0x50] sm:$0xff]  }
0x1386   :  { %v4175_v12 = vpop.xlane.xlu0 %4174 }
0x1387   :  { %v4136_v18 = vsub.f32 %v7186_v25, %v4134_v46  ;;  %v4179_v4 = vmul.f32 0.03125, %v4175_v12  ;;  %v4137_v22 = vmul.f32 %v4135_v33, %v4135_v33  ;;  %v5732_v46 = vld [vmem:[%s7376_s20 + $0x58] sm:$0xff]   ;;  %v5733_v12 = vld [vmem:[%s7376_s20 + $0x70] sm:$0xff]  }
0x1389   :  { %v4181_v32 = vsub.f32 %v7184_v8, %v4179_v4  ;;  %v4139_v57 = vsel %vm256_vm1, %v4137_v22, 0.0  ;;  %v4138_v19 = vmul.f32 %v4136_v18, %v4136_v18  ;;  %v4993_v4 = vld [vmem:[%s7377_s19 + $0x2] ss:$0 sm:$0xff] }
0x138a   :  { %v4178_v20 = vpop.xlane.xlu0 %4177  ;;  %4140 = vadd.xlane.f32.xlu1 %v4139_v57 }
0x138b   :  { %v4180_v60 = vmul.f32 0.03125, %v4178_v20  ;;  %v4142_v39 = vsel %vm256_vm1, %v4138_v19, 0.0  ;;  %v4183_v50 = vmul.f32 %v4181_v32, %v4181_v32 }
0x138c   :  { %4143 = vadd.xlane.f32.xlu0 %v4142_v39 }
0x138d   :  { %v4182_v28 = vsub.f32 %v7193_v42, %v4180_v60  ;;  %v4185_v29 = vsel %vm256_vm1, %v4183_v50, 0.0 }
0x138e   :  { %4186 = vadd.xlane.f32.xlu1 %v4185_v29 }
0x138f   :  { %v4184_v11 = vmul.f32 %v4182_v28, %v4182_v28 }
0x1391   :  { %v4188_v27 = vsel %vm256_vm1, %v4184_v11, 0.0 }
0x1392   :  { %4189 = vadd.xlane.f32.xlu0 %v4188_v27 }
0x1417   :  { %v4141_v30 = vpop.xlane.xlu1 %4140 }
0x1418   :  { %v4145_v37 = vmul.f32 0.03125, %v4141_v30 }
0x1419   :  { %v4144_v40 = vpop.xlane.xlu0 %4143 }
0x141a   :  { %v4147_v43 = vadd.f32 1e-05, %v4145_v37  ;;  %v4146_v7 = vmul.f32 0.03125, %v4144_v40 }
0x141b   :  { %v4187_v9 = vpop.xlane.xlu1 %4186 }
0x141c   :  { %5903 = vrsqrt.f32 %v4147_v43  ;;  %v4148_v31 = vadd.f32 1e-05, %v4146_v7  ;;  %v4191_v58 = vmul.f32 0.03125, %v4187_v9 }
0x141e   :  { %5905 = vrsqrt.f32 %v4148_v31  ;;  %v4193_v53 = vadd.f32 1e-05, %v4191_v58 }
0x141f   :  { %v4190_v0 = vpop.xlane.xlu0 %4189 }
0x1420   :  { %5907 = vrsqrt.f32 %v4193_v53  ;;  %v4192_v45 = vmul.f32 0.03125, %v4190_v0 }
0x1422   :  { %v4194_v34 = vadd.f32 1e-05, %v4192_v45 }
0x1424   :  { %5909 = vrsqrt.f32 %v4194_v34 }
0x1426   :  { %v5904_v16 = vpop.eup %5903 }
0x1427   :  { %v4151_v62 = vmul.f32 %v5904_v16, %v4135_v33  ;;  %v5731_v33 = vld [vmem:[%s7376_s20 + $0x68] sm:$0xff]  }
0x1428   :  { %v5906_v48 = vpop.eup %5905 }
0x1429   :  { %v4159_v36 = vmul.f32 %v4982_v26, %v4151_v62  ;;  %v4152_v51 = vmul.f32 %v5906_v48, %v4136_v18  ;;  %v5734_v18 = vld [vmem:[%s7376_s20 + $0x78] sm:$0xff]  }
0x142a   :  { %v5908_v55 = vpop.eup %5907 }
0x142b   :  { %v4160_v49 = vmul.f32 %v4982_v26, %v4152_v51  ;;  %v4197_v23 = vmul.f32 %v5908_v55, %v4181_v32  ;;  %v4167_v14 = vadd.f32 %v4983_v38, %v4159_v36 }
0x142d   :  { %v4168_v54 = vadd.f32 %v4983_v38, %v4160_v49  ;;  %v4205_v61 = vmul.f32 %v4986_v59, %v4197_v23 }
0x142e   :  { %v5910_v2 = vpop.eup %5909 }
0x142f   :  { %v4198_v3 = vmul.f32 %v5910_v2, %v4182_v28  ;;  %v4220_v63 = vpack.c.bf16 %v4168_v54, %v4167_v14  ;;  %v4213_v47 = vadd.f32 %v4987_v5, %v4205_v61  ;;  %v5006_v28 = vld [vmem:[%s7377_s19 + $0x3] ss:$0 sm:$0xff] }
0x1431   :  { %v4206_v44 = vmul.f32 %v4986_v59, %v4198_v3  ;;  %5559 = vmatmul.mubr.msk.bf16.vlgmr.msra.gmra.mrb[96].mxu0 %vm256_vm1, %v4220_v63 }
0x1432   :  { %5578 = vmatprep.mubr.msk.bf16.mxu0 %vm5941_vm2, %v5940_v56  ;;  %5571 = vmatpush3.bf16.msra.mxu0 %v5727_v10 }
0x1433   :  { %v4214_v15 = vadd.f32 %v4987_v5, %v4206_v44  ;;  %5572 = vmatprep.subr.bf16.mxu0 %v5940_v56 }
0x1435   :  { %v4344_v52 = vpack.c.bf16 %v4214_v15, %v4213_v47 }
0x1436   :  { %5573 = vmatpush3.bf16.msra.mxu0 %v5728_v21 }
0x1437   :  { %5567 = vmatmul.mubr.msk.bf16.vlgmr.msra.gmra.mrb[116].mxu1 %vm256_vm1, %v4344_v52  ;;  %5574 = vmatprep.subr.bf16.mxu0 %v5940_v56 }
0x1438   :  { %5590 = vmatprep.mubr.msk.bf16.mxu1 %vm5941_vm2, %v5940_v56  ;;  %5583 = vmatpush3.bf16.msra.mxu1 %v5729_v35 }
0x1439   :  { %5584 = vmatprep.subr.bf16.mxu1 %v5940_v56 }
0x143a   :  { %5575 = vmatpush3.bf16.msra.mxu0 %v5730_v13 }
0x143b   :  { %5576 = vmatprep.subr.bf16.mxu0 %v5940_v56 }
0x143c   :  { %5585 = vmatpush3.bf16.msra.mxu1 %v5731_v33 }
0x143d   :  { %5586 = vmatprep.subr.bf16.mxu1 %v5940_v56 }
0x143e   :  { %5577 = vmatpush3.bf16.msra.mxu0 %v5732_v46 }
0x1440   :  { %5587 = vmatpush3.bf16.msra.mxu1 %v5733_v12 }
0x1441   :  { %5588 = vmatprep.subr.bf16.mxu1 %v5940_v56 }
0x1444   :  { %5589 = vmatpush3.bf16.msra.mxu1 %v5734_v18 }
0x1504   :  { %v4278_v22 = vpop.f32.mrb[96].mxu0 }
0x1505   :  { %v7274_v32 = vadd.f32 %v4993_v4, %v4278_v22  ;;  %v5560_v57 = vpop.f32.mrb[97].mxu0 }
0x1506   :  { %v4281_v19 = vpop.f32.mrb[98].mxu0 }
0x1507   :  { %v7277_v20 = vmul.f32 0.70710677, %v7274_v32  ;;  %v7279_v60 = vadd.f32 %v4993_v4, %v4281_v19  ;;  %v5561_v56 = vpop.f32.mrb[99].mxu0 }
0x1509   :  { %v4287_v39 = vand.u32 2147483647, %v7277_v20  ;;  %v7283_v50 = vmul.f32 0.70710677, %v7279_v60  ;;  %vm4327_vm10 = vcmp.ge.f32.partialorder %v7277_v20, 0.0 }
0x150a   :  { %v4402_v29 = vpop.f32.mrb[116].mxu1 }
0x150b   :  { %v4289_v11 = vmul.f32 0.3275911, %v4287_v39  ;;  %v4288_v27 = vand.u32 2147483647, %v7283_v50  ;;  %v7289_v1 = vadd.f32 %v5006_v28, %v4402_v29  ;;  %v5568_v24 = vpop.f32.mrb[117].mxu1  ;;  %v4315_v34 = vsub.f32 0.0, %v4287_v39 }
0x150c   :  { %v4405_v30 = vpop.f32.mrb[118].mxu1  ;;  %vm4328_vm11 = vcmp.ge.f32.partialorder %v7283_v50, 0.0 }
0x150d   :  { %v4291_v17 = vadd.f32 1.0, %v4289_v11  ;;  %v4290_v6 = vmul.f32 0.3275911, %v4288_v27  ;;  %v7292_v37 = vmul.f32 0.70710677, %v7289_v1  ;;  %v7294_v40 = vadd.f32 %v5006_v28, %v4405_v30  ;;  %v5569_v43 = vpop.f32.mrb[119].mxu1 }
0x150e   :  { %v4316_v26 = vsub.f32 0.0, %v4288_v27  ;;  %v4317_v48 = vmul.f32 %v4315_v34, %v4287_v39 }
0x150f   :  { %5911 = vrcp.f32 %v4291_v17  ;;  %v4292_v7 = vadd.f32 1.0, %v4290_v6  ;;  %v4411_v9 = vand.u32 2147483647, %v7292_v37  ;;  %v7298_v31 = vmul.f32 0.70710677, %v7294_v40 }
0x1510   :  { %v4318_v38 = vmul.f32 %v4316_v26, %v4288_v27  ;;  %v4319_v23 = vmul.f32 1.442695, %v4317_v48  ;;  %vm4451_vm12 = vcmp.ge.f32.partialorder %v7292_v37, 0.0 }
0x1511   :  { %5913 = vrcp.f32 %v4292_v7  ;;  %v4413_v58 = vmul.f32 0.3275911, %v4411_v9  ;;  %v4412_v53 = vand.u32 2147483647, %v7298_v31  ;;  %v4439_v49 = vsub.f32 0.0, %v4411_v9 }
0x1512   :  { %v4321_v63 = vmul.f32 1.442695, %v4318_v38  ;;  %vm4452_vm13 = vcmp.ge.f32.partialorder %v7298_v31, 0.0 }
0x1513   :  { %v4415_v0 = vadd.f32 1.0, %v4413_v58  ;;  %v4414_v45 = vmul.f32 0.3275911, %v4412_v53  ;;  %v4440_v2 = vsub.f32 0.0, %v4412_v53  ;;  %v4441_v5 = vmul.f32 %v4439_v49, %v4411_v9 }
0x1515   :  { %5915 = vrcp.f32 %v4415_v0  ;;  %v4416_v16 = vadd.f32 1.0, %v4414_v45  ;;  %v4442_v35 = vmul.f32 %v4440_v2, %v4412_v53  ;;  %v4443_v33 = vmul.f32 1.442695, %v4441_v5 }
0x1516   :  { %v4334_v5 = vmul.f32 0.5, %v7279_v60  ;;  %v4458_v60 = vmul.f32 0.5, %v7294_v40 }
0x1517   :  { %5917 = vrcp.f32 %v4416_v16  ;;  %v4445_v56 = vmul.f32 1.442695, %v4442_v35 }
0x1518   :  { %5919 = vpow2.f32 %v4319_v23 }
0x1519   :  { %v5912_v62 = vpop.eup %5911  ;;  %5921 = vpow2.f32 %v4321_v63  ;;  %v4333_v63 = vmul.f32 0.5, %v7274_v32  ;;  %v4457_v32 = vmul.f32 0.5, %v7289_v1 }
0x151a   :  { %v4297_v36 = vmul.f32 1.0614054, %v5912_v62  ;;  %5923 = vpow2.f32 %v4443_v33 }
0x151b   :  { %v5914_v51 = vpop.eup %5913  ;;  %5925 = vpow2.f32 %v4445_v56 }
0x151c   :  { %v4997_v55 = vadd.f32 -1.4531521, %v4297_v36  ;;  %v4298_v59 = vmul.f32 1.0614054, %v5914_v51 }
0x151e   :  { %v4301_v14 = vmul.f32 %v5912_v62, %v4997_v55  ;;  %v4998_v54 = vadd.f32 -1.4531521, %v4298_v59 }
0x151f   :  { %v5916_v61 = vpop.eup %5915 }
0x1520   :  { %v4303_v3 = vadd.f32 1.4214138, %v4301_v14  ;;  %v4302_v44 = vmul.f32 %v5914_v51, %v4998_v54  ;;  %v4421_v47 = vmul.f32 1.0614054, %v5916_v61 }
0x1521   :  { %v5918_v52 = vpop.eup %5917 }
0x1522   :  { %v4305_v15 = vmul.f32 %v5912_v62, %v4303_v3  ;;  %v4304_v10 = vadd.f32 1.4214138, %v4302_v44  ;;  %v5010_v21 = vadd.f32 -1.4531521, %v4421_v47  ;;  %v4422_v46 = vmul.f32 1.0614054, %v5918_v52  ;;  %v5920_v17 = vpop.eup %5919 }
0x1523   :  { %v5922_v53 = vpop.eup %5921 }
0x1524   :  { %v4999_v13 = vadd.f32 -0.28449672, %v4305_v15  ;;  %v4306_v12 = vmul.f32 %v5914_v51, %v4304_v10  ;;  %v4425_v18 = vmul.f32 %v5916_v61, %v5010_v21  ;;  %v5011_v22 = vadd.f32 -1.4531521, %v4422_v46  ;;  %v5924_v55 = vpop.eup %5923 }
0x1525   :  { %v5926_v54 = vpop.eup %5925 }
0x1526   :  { %v4309_v4 = vmul.f32 %v5912_v62, %v4999_v13  ;;  %v5000_v57 = vadd.f32 -0.28449672, %v4306_v12  ;;  %v4427_v19 = vadd.f32 1.4214138, %v4425_v18  ;;  %v4426_v28 = vmul.f32 %v5918_v52, %v5011_v22 }
0x1528   :  { %v4311_v39 = vadd.f32 0.2548296, %v4309_v4  ;;  %v4310_v29 = vmul.f32 %v5914_v51, %v5000_v57  ;;  %v4429_v11 = vmul.f32 %v5916_v61, %v4427_v19  ;;  %v4428_v24 = vadd.f32 1.4214138, %v4426_v28  ;;  %v5028_v4 = vld [vmem:[%s7378_s21 + $0x2] ss:$0 sm:$0xff] }
0x152a   :  { %v4313_v27 = vmul.f32 %v5912_v62, %v4311_v39  ;;  %v4312_v6 = vadd.f32 0.2548296, %v4310_v29  ;;  %v5012_v30 = vadd.f32 -0.28449672, %v4429_v11  ;;  %v4430_v7 = vmul.f32 %v5918_v52, %v4428_v24  ;;  %v5043_v29 = vld [vmem:[%s7378_s21 + $0x3] ss:$0 sm:$0xff] }
0x152c   :  { %v4323_v43 = vmul.f32 %v5920_v17, %v4313_v27  ;;  %v4314_v9 = vmul.f32 %v5914_v51, %v4312_v6  ;;  %v4433_v58 = vmul.f32 %v5916_v61, %v5012_v30  ;;  %v5013_v45 = vadd.f32 -0.28449672, %v4430_v7 }
0x152e   :  { %v4325_v0 = vsub.f32 1.0, %v4323_v43  ;;  %v4324_v34 = vmul.f32 %v5922_v53, %v4314_v9  ;;  %v4435_v16 = vadd.f32 0.2548296, %v4433_v58  ;;  %v4434_v48 = vmul.f32 %v5918_v52, %v5013_v45 }
0x1530   :  { %v4329_v26 = vsub.f32 0.0, %v4325_v0  ;;  %v4326_v36 = vsub.f32 1.0, %v4324_v34  ;;  %v4437_v62 = vmul.f32 %v5916_v61, %v4435_v16  ;;  %v4436_v49 = vadd.f32 0.2548296, %v4434_v48 }
0x1532   :  { %v4331_v38 = vsel %vm4327_vm10, %v4325_v0, %v4329_v26  ;;  %v4330_v23 = vsub.f32 0.0, %v4326_v36  ;;  %v4447_v59 = vmul.f32 %v5924_v55, %v4437_v62  ;;  %v4438_v51 = vmul.f32 %v5918_v52, %v4436_v49 }
0x1533   :  { %v4335_v14 = vadd.f32 1.0, %v4331_v38 }
0x1534   :  { %v4332_v2 = vsel %vm4328_vm11, %v4326_v36, %v4330_v23  ;;  %v4449_v3 = vsub.f32 1.0, %v4447_v59  ;;  %v4448_v20 = vmul.f32 %v5926_v54, %v4438_v51 }
0x1535   :  { %v4336_v44 = vadd.f32 1.0, %v4332_v2  ;;  %v4337_v61 = vmul.f32 %v4335_v14, %v4333_v63 }
0x1536   :  { %v4453_v47 = vsub.f32 0.0, %v4449_v3  ;;  %v4450_v10 = vsub.f32 1.0, %v4448_v20 }
0x1537   :  { %v4338_v15 = vmul.f32 %v4336_v44, %v4334_v5 }
0x1538   :  { %v4455_v21 = vsel %vm4451_vm12, %v4449_v3, %v4453_v47  ;;  %v4454_v13 = vsub.f32 0.0, %v4450_v10 }
0x1539   :  { %v4472_v35 = vpack.c.bf16 %v4338_v15, %v4337_v61  ;;  %v4459_v50 = vadd.f32 1.0, %v4455_v21 }
0x153a   :  { %v4456_v52 = vsel %vm4452_vm13, %v4450_v10, %v4454_v13  ;;  %v5044_v13 = vld [vmem:[%s7379_s22] ss:$0 sm:$0xff] }
0x153b   :  { %5579 = vmatmul.mubr.msk.bf16.vlgmr.msra.gmra.mrb[100].mxu0 %vm187_vm0, %v4472_v35  ;;  %v4460_v33 = vadd.f32 1.0, %v4456_v52  ;;  %v4461_v46 = vmul.f32 %v4459_v50, %v4457_v32  ;;  %v5045_v32 = vld [vmem:[%s7380_s23] ss:$0 sm:$0xff] }
0x153d   :  { %v4462_v12 = vmul.f32 %v4460_v33, %v4458_v60 }
0x153f   :  { %v4562_v18 = vpack.c.bf16 %v4462_v12, %v4461_v46 }
0x1541   :  { %5591 = vmatmul.mubr.msk.bf16.vlgmr.msra.gmra.mrb[120].mxu1 %vm187_vm0, %v4562_v18 }
0x160e   :  { %v4534_v37 = vpop.f32.mrb[100].mxu0 }
0x160f   :  { %v4541_v31 = vadd.f32 %v4534_v37, %v7181_v41  ;;  %v5580_v22 = vpop.f32.mrb[101].mxu0 }
0x1610   :  { %v4537_v57 = vpop.f32.mrb[102].mxu0 }
0x1611   :  { %v4551_v19 = vadd.f32 %v5028_v4, %v4541_v31  ;;  %v4542_v1 = vadd.f32 %v4537_v57, %v7186_v25  ;;  %v5581_v56 = vpop.f32.mrb[103].mxu0  ;;  %v5049_v57 = vld [vmem:[%s7380_s23 + $0x1] ss:$0 sm:$0xff] }
0x1613   :  { %v4552_v40 = vadd.f32 %v5028_v4, %v4542_v1  ;;  %v4645_v39 = vsel %vm256_vm1, %v4551_v19, 0.0  ;;  %v5048_v4 = vld [vmem:[%s7379_s22 + $0x1] ss:$0 sm:$0xff] }
0x1614   :  { %4646 = vadd.xlane.f32.xlu1 %v4645_v39  ;;  %v4624_v28 = vpop.f32.mrb[120].mxu1 }
0x1615   :  { %v4648_v11 = vsel %vm256_vm1, %v4552_v40, 0.0  ;;  %v4631_v27 = vadd.f32 %v4624_v28, %v7184_v8  ;;  %v5592_v41 = vpop.f32.mrb[121].mxu1 }
0x1616   :  { %4649 = vadd.xlane.f32.xlu0 %v4648_v11  ;;  %v4627_v24 = vpop.f32.mrb[122].mxu1 }
0x1617   :  { %v4641_v17 = vadd.f32 %v5043_v29, %v4631_v27  ;;  %v4632_v25 = vadd.f32 %v4627_v24, %v7193_v42  ;;  %v5593_v6 = vpop.f32.mrb[123].mxu1 }
0x1619   :  { %v4642_v30 = vadd.f32 %v5043_v29, %v4632_v25  ;;  %v4693_v43 = vsel %vm256_vm1, %v4641_v17, 0.0 }
0x161a   :  { %4694 = vadd.xlane.f32.xlu1 %v4693_v43 }
0x161b   :  { %v4696_v7 = vsel %vm256_vm1, %v4642_v30, 0.0 }
0x161c   :  { %4697 = vadd.xlane.f32.xlu0 %v4696_v7 }
0x16a1   :  { %v4647_v9 = vpop.xlane.xlu1 %4646 }
0x16a2   :  { %v4651_v58 = vmul.f32 0.03125, %v4647_v9 }
0x16a3   :  { %v4650_v53 = vpop.xlane.xlu0 %4649 }
0x16a4   :  { %v4653_v0 = vsub.f32 %v4551_v19, %v4651_v58  ;;  %v4652_v45 = vmul.f32 0.03125, %v4650_v53 }
0x16a6   :  { %v4654_v8 = vsub.f32 %v4552_v40, %v4652_v45  ;;  %v4655_v34 = vmul.f32 %v4653_v0, %v4653_v0 }
0x16a7   :  { %v4695_v16 = vpop.xlane.xlu1 %4694 }
0x16a8   :  { %v4657_v26 = vsel %vm256_vm1, %v4655_v34, 0.0  ;;  %v4656_v48 = vmul.f32 %v4654_v8, %v4654_v8  ;;  %v4699_v42 = vmul.f32 0.03125, %v4695_v16 }
0x16a9   :  { %4658 = vadd.xlane.f32.xlu1 %v4657_v26  ;;  %v4698_v36 = vpop.xlane.xlu0 %4697 }
0x16aa   :  { %v4660_v62 = vsel %vm256_vm1, %v4656_v48, 0.0  ;;  %v4701_v55 = vsub.f32 %v4641_v17, %v4699_v42  ;;  %v4700_v38 = vmul.f32 0.03125, %v4698_v36 }
0x16ab   :  { %4661 = vadd.xlane.f32.xlu0 %v4660_v62 }
0x16ac   :  { %v4702_v49 = vsub.f32 %v4642_v30, %v4700_v38  ;;  %v4703_v23 = vmul.f32 %v4701_v55, %v4701_v55 }
0x16ae   :  { %v4705_v59 = vsel %vm256_vm1, %v4703_v23, 0.0  ;;  %v4704_v14 = vmul.f32 %v4702_v49, %v4702_v49 }
0x16af   :  { %4706 = vadd.xlane.f32.xlu1 %v4705_v59 }
0x16b0   :  { %v4708_v51 = vsel %vm256_vm1, %v4704_v14, 0.0 }
0x16b1   :  { %4709 = vadd.xlane.f32.xlu0 %v4708_v51 }
0x1736   :  { %v4659_v54 = vpop.xlane.xlu1 %4658 }
0x1737   :  { %v4663_v2 = vmul.f32 0.03125, %v4659_v54 }
0x1738   :  { %v4662_v3 = vpop.xlane.xlu0 %4661 }
0x1739   :  { %v4665_v63 = vadd.f32 1e-05, %v4663_v2  ;;  %v4664_v5 = vmul.f32 0.03125, %v4662_v3 }
0x173b   :  { %5927 = vrsqrt.f32 %v4665_v63  ;;  %v4666_v44 = vadd.f32 1e-05, %v4664_v5 }
0x173c   :  { %v4707_v20 = vpop.xlane.xlu1 %4706 }
0x173d   :  { %5929 = vrsqrt.f32 %v4666_v44  ;;  %v4711_v47 = vmul.f32 0.03125, %v4707_v20 }
0x173e   :  { %v4710_v61 = vpop.xlane.xlu0 %4709 }
0x173f   :  { %v4713_v15 = vadd.f32 1e-05, %v4711_v47  ;;  %v4712_v10 = vmul.f32 0.03125, %v4710_v61 }
0x1741   :  { %5931 = vrsqrt.f32 %v4713_v15  ;;  %v4714_v21 = vadd.f32 1e-05, %v4712_v10 }
0x1743   :  { %5933 = vrsqrt.f32 %v4714_v21 }
0x1745   :  { %v5928_v35 = vpop.eup %5927 }
0x1746   :  { %v4669_v50 = vmul.f32 %v5928_v35, %v4653_v0 }
0x1747   :  { %v5930_v52 = vpop.eup %5929 }
0x1748   :  { %v4677_v60 = vmul.f32 %v5044_v13, %v4669_v50  ;;  %v4670_v33 = vmul.f32 %v5930_v52, %v4654_v8 }
0x174a   :  { %v4685_v46 = vadd.f32 %v5045_v32, %v4677_v60  ;;  %v4678_v12 = vmul.f32 %v5044_v13, %v4670_v33 }
0x174b   :  { %v5932_v18 = vpop.eup %5931 }
0x174c   :  { %4687 = vst.msk [vmem:[%s7381_s24] sm:$0xff] %vm256_vm1, %v4685_v46  ;;  %v4686_v37 = vadd.f32 %v5045_v32, %v4678_v12  ;;  %v4717_v31 = vmul.f32 %v5932_v18, %v4701_v55 }
0x174d   :  { %v5934_v22 = vpop.eup %5933 }
0x174e   :  { %4688 = vst.msk [vmem:[%s7381_s24 + $0x8] sm:$0xff] %vm256_vm1, %v4686_v37  ;;  %v4725_v19 = vmul.f32 %v5048_v4, %v4717_v31  ;;  %v4718_v1 = vmul.f32 %v5934_v22, %v4702_v49 }
0x1750   :  { %v4733_v56 = vadd.f32 %v5049_v57, %v4725_v19  ;;  %v4726_v40 = vmul.f32 %v5048_v4, %v4718_v1 }
0x1752   :  { %4735 = vst.msk [vmem:[%s7382_s25] sm:$0xff] %vm256_vm1, %v4733_v56  ;;  %v4734_v39 = vadd.f32 %v5049_v57, %v4726_v40 }
0x1754   :  { %4736 = vst.msk [vmem:[%s7382_s25 + $0x8] sm:$0xff] %vm256_vm1, %v4734_v39 }

</bundles_post_ra>
